<compile_context>
chip_gen: v7x
topology: tpu7x:2x2x1
jax: 0.10.0
libtpu: 0.0.40
codegen_flags: <defaults>
</compile_context>

<pallas_src>
import functools
import math

import jax
import jax.numpy as jnp
from jax.experimental import pallas as pl
from jax.experimental.pallas import tpu as pltpu


# ----------------------------------------------------------------------------
# Tiling / VMEM helpers
# ----------------------------------------------------------------------------

TM_DEFAULT = 512                      # row tile (second-to-last dim, multiple of 8)
TN_DEFAULT = 1024                     # output-column tile (lane dim, multiple of 128)
TK_DEFAULT = 512                      # reduction tile (must divide K exactly)


def _default_vmem_limit():
    """Generation-aware scoped-VMEM budget (v7x has 64 MiB physical; v5e/v6e 128)."""
    kind = ""
    try:
        kind = jax.devices()[0].device_kind.lower()
    except Exception:
        pass
    if not kind:
        return 48 * 1024 * 1024
    if "v2" in kind or "v3" in kind:
        return 12 * 1024 * 1024
    if "v7" in kind or "7x" in kind:
        return 48 * 1024 * 1024            # 64 MiB physical -> keep headroom
    return 96 * 1024 * 1024                # v4/v5e/v6e: 128 MiB physical


VMEM_LIMIT_BYTES = _default_vmem_limit()


def _pick_tile(dim, target, align):
    """Full dim when it fits, else the largest `align`-multiple <= target."""
    if dim <= target:
        return dim
    return max(align, (target // align) * align)


def _pick_k_tile(dim, target):
    """Reduction tile: full K when small, else a 256/128-multiple dividing K exactly;
    fallback is the largest multiple-of-8 divisor <= target (keeps VMEM bounded)."""
    if dim <= target:
        return dim
    for step in (256, 128):
        t = (min(target, dim) // step) * step
        while t >= step:
            if dim % t == 0:
                return t
            t -= step
    t = (min(target, dim) // 8) * 8
    while t >= 8:
        if dim % t == 0:
            return t
        t -= 8
    return dim


def _apply_activation(y, activation):
    if activation == "tanh":
        return jnp.tanh(y)
    if activation == "gelu_new":
        c = math.sqrt(2.0 / math.pi)
        return 0.5 * y * (1.0 + jnp.tanh(c * (y + 0.044715 * y * y * y)))
    return y


def _mm_cost(M, K, N, itemsize, activation=None, ln=False):
    flops = 2 * M * K * N + (8 * M * K if ln else 0)
    trans = (M if ln else 0) + (M * N if activation in ("tanh", "gelu_new") else 0)
    bytes_acc = (M * K + K * N + M * N + N + 2 * K) * itemsize
    return pl.CostEstimate(flops=int(flops), transcendentals=int(trans),
                           bytes_accessed=int(bytes_acc))


# ----------------------------------------------------------------------------
# Kernel 1: fused LayerNorm + Linear (+bias, +activation), full-K blocks
# (used where N has only a few tiles: c_attn and c_fc; LN recompute cost is ~3x)
# ----------------------------------------------------------------------------

def _ln_linear_kernel(*refs, activation, has_bias, eps):
    x_ref, g_ref, b_ref, w_ref = refs[:4]
    bias_ref = refs[4] if has_bias else None
    o_ref = refs[4 + (1 if has_bias else 0)]

    x = x_ref[...].astype(jnp.float32)
    mu = jnp.mean(x, axis=-1, keepdims=True)
    var = jnp.mean(jnp.square(x - mu), axis=-1, keepdims=True)
    xn = (x - mu) * jax.lax.rsqrt(var + eps)
    xn = xn * g_ref[...].astype(jnp.float32) + b_ref[...].astype(jnp.float32)
    xn = xn.astype(w_ref.dtype)                      # bf16 path hits bf16 MXU inputs
    y = jnp.dot(xn, w_ref[...], preferred_element_type=jnp.float32)
    if has_bias:
        y = y + bias_ref[...].astype(jnp.float32)
    y = _apply_activation(y, activation)
    o_ref[...] = y.astype(o_ref.dtype)


def fused_ln_linear(x, gamma, beta, w, bias=None, *, activation=None,
                    tm=TM_DEFAULT, tn=TN_DEFAULT, eps=1e-5):
    M, K = x.shape
    N = w.shape[1]
    tm = _pick_tile(M, tm, 8)
    tn = _pick_tile(N, tn, 128)
    grid = (pl.cdiv(M, tm), pl.cdiv(N, tn))

    in_specs = [pl.BlockSpec((tm, K), lambda i, j: (i, 0)),
                pl.BlockSpec((1, K), lambda i, j: (0, 0)),
                pl.BlockSpec((1, K), lambda i, j: (0, 0)),
                pl.BlockSpec((K, tn), lambda i, j: (0, j))]
    inputs = [x, gamma.reshape(1, K), beta.reshape(1, K), w]
    if bias is not None:
        in_specs.append(pl.BlockSpec((1, tn), lambda i, j: (0, j)))
        inputs.append(bias.reshape(1, N))

    kernel = functools.partial(_ln_linear_kernel, activation=activation,
                               has_bias=bias is not None, eps=eps)
    return pl.pallas_call(
        kernel,
        grid=grid,
        in_specs=in_specs,
        out_specs=pl.BlockSpec((tm, tn), lambda i, j: (i, j)),
        out_shape=jax.ShapeDtypeStruct((M, N), x.dtype),
        compiler_params=pltpu.CompilerParams(
            dimension_semantics=("parallel", "parallel"),
            vmem_limit_bytes=VMEM_LIMIT_BYTES),
        cost_estimate=_mm_cost(M, K, N, x.dtype.itemsize, activation, ln=True),
    )(*inputs)


# ----------------------------------------------------------------------------
# Kernel 2: standalone LayerNorm (LM-head LN hoisted out of the vocab loop)
# ----------------------------------------------------------------------------

def _layernorm_kernel(x_ref, g_ref, b_ref, o_ref, *, eps):
    x = x_ref[...].astype(jnp.float32)
    mu = jnp.mean(x, axis=-1, keepdims=True)
    var = jnp.mean(jnp.square(x - mu), axis=-1, keepdims=True)
    xn = (x - mu) * jax.lax.rsqrt(var + eps)
    xn = xn * g_ref[...].astype(jnp.float32) + b_ref[...].astype(jnp.float32)
    o_ref[...] = xn.astype(o_ref.dtype)


def pallas_layernorm(x, gamma, beta, *, eps=1e-5, tm=TM_DEFAULT):
    M, K = x.shape
    tm = _pick_tile(M, tm, 8)
    return pl.pallas_call(
        functools.partial(_layernorm_kernel, eps=eps),
        grid=(pl.cdiv(M, tm),),
        in_specs=[pl.BlockSpec((tm, K), lambda i: (i, 0)),
                  pl.BlockSpec((1, K), lambda i: (0, 0)),
                  pl.BlockSpec((1, K), lambda i: (0, 0))],
        out_specs=pl.BlockSpec((tm, K), lambda i: (i, 0)),
        out_shape=jax.ShapeDtypeStruct((M, K), x.dtype),
        compiler_params=pltpu.CompilerParams(
            dimension_semantics=("parallel",),
            vmem_limit_bytes=VMEM_LIMIT_BYTES),
    )(x, gamma.reshape(1, K), beta.reshape(1, K))


# ----------------------------------------------------------------------------
# Kernel 3: tiled Linear (+bias, +activation, +fused residual), K-tiled accumulator
# Supports w_transposed=True (weight stored (N, K), contracted on dim 1) so the
# weight-tied LM head never materializes wte^T.
# ----------------------------------------------------------------------------

def _linear_kernel(*refs, activation, has_bias, has_residual, w_transposed):
    x_ref, w_ref = refs[0], refs[1]
    idx = 2
    bias_ref = refs[idx] if has_bias else None
    idx += 1 if has_bias else 0
    res_ref = refs[idx] if has_residual else None
    idx += 1 if has_residual else 0
    o_ref, acc_ref = refs[idx], refs[idx + 1]

    k = pl.program_id(2)

    @pl.when(k == 0)
    def _init():
        acc_ref[...] = jnp.zeros_like(acc_ref)

    if w_transposed:
        # TODO(synk): on v5e verify (via pl.lower_as_mlir) this lowers to a native
        # transposed-RHS MXU op (no per-tile XLU vxpose); else pre-transpose wte once.
        acc_ref[...] += jax.lax.dot_general(
            x_ref[...], w_ref[...], (((1,), (1,)), ((), ())),
            preferred_element_type=jnp.float32)
    else:
        acc_ref[...] += jnp.dot(x_ref[...], w_ref[...],
                                preferred_element_type=jnp.float32)

    @pl.when(k == pl.num_programs(2) - 1)
    def _finalize():
        y = acc_ref[...]
        if has_bias:
            y = y + bias_ref[...].astype(jnp.float32)
        y = _apply_activation(y, activation)
        if has_residual:
            y = y + res_ref[...].astype(jnp.float32)
        o_ref[...] = y.astype(o_ref.dtype)


def pallas_linear(x, w, *, bias=None, residual=None, activation=None,
                  w_transposed=False, tm=TM_DEFAULT, tn=TN_DEFAULT, tk=TK_DEFAULT):
    M, K = x.shape
    N = w.shape[0] if w_transposed else w.shape[1]
    tm = _pick_tile(M, tm, 8)
    tn = _pick_tile(N, tn, 128)
    tk = _pick_k_tile(K, tk)
    grid = (pl.cdiv(M, tm), pl.cdiv(N, tn), pl.cdiv(K, tk))

    if w_transposed:
        w_spec = pl.BlockSpec((tn, tk), lambda i, j, k: (j, k))
    else:
        w_spec = pl.BlockSpec((tk, tn), lambda i, j, k: (k, j))
    in_specs = [pl.BlockSpec((tm, tk), lambda i, j, k: (i, k)), w_spec]
    inputs = [x, w]
    if bias is not None:
        in_specs.append(pl.BlockSpec((1, tn), lambda i, j, k: (0, j)))
        inputs.append(bias.reshape(1, N))
    if residual is not None:
        in_specs.append(pl.BlockSpec((tm, tn), lambda i, j, k: (i, j)))
        inputs.append(residual)

    kernel = functools.partial(_linear_kernel, activation=activation,
                               has_bias=bias is not None,
                               has_residual=residual is not None,
                               w_transposed=w_transposed)
    return pl.pallas_call(
        kernel,
        grid=grid,
        in_specs=in_specs,
        out_specs=pl.BlockSpec((tm, tn), lambda i, j, k: (i, j)),
        out_shape=jax.ShapeDtypeStruct((M, N), x.dtype),
        scratch_shapes=[pltpu.VMEM((tm, tn), jnp.float32)],
        compiler_params=pltpu.CompilerParams(
            dimension_semantics=("parallel", "parallel", "arbitrary"),
            vmem_limit_bytes=VMEM_LIMIT_BYTES),
        cost_estimate=_mm_cost(M, K, N, x.dtype.itemsize, activation),
    )(*inputs)


# ----------------------------------------------------------------------------
# Kernel 4: causal multi-head attention.
# grid=(B,); one lane-dense (1, S, 3D) qkv block per batch element (no external
# transposes); static per-head loop (live intermediates O(S^2), not O(H*S^2));
# per-head q/k/v taken with static slices of the ref; single lane-dense (1, S, D)
# output store.
# ----------------------------------------------------------------------------

def _attn_kernel(qkv_ref, m_ref, o_ref, *, n_head, scale):
    # qkv_ref: (1, S, 3D) = [q | k | v], head-major within each D.  m_ref: (1, 1, S).
    S = qkv_ref.shape[1]
    D = qkv_ref.shape[2] // 3
    Dh = D // n_head

    # causal + key-padding bias, computed once for all heads (scores stay f32)
    qi = jax.lax.broadcasted_iota(jnp.int32, (S, S), 0)
    ki = jax.lax.broadcasted_iota(jnp.int32, (S, S), 1)
    bias = jnp.where(ki <= qi, m_ref[0].astype(jnp.float32), -1e30)      # (S, S)

    outs = []
    for h in range(n_head):                       # static loop -> static lane slices
        q = qkv_ref[0, :, h * Dh:(h + 1) * Dh].astype(jnp.float32) * scale
        k = qkv_ref[0, :, D + h * Dh:D + (h + 1) * Dh].astype(jnp.float32)
        v = qkv_ref[0, :, 2 * D + h * Dh:2 * D + (h + 1) * Dh]           # storage dtype
        # TODO(synk): for very long S, tile over keys with online softmax (flash-style)
        # instead of the whole (S, S) score block.
        s = jax.lax.dot_general(q, k, (((1,), (1,)), ((), ())),
                                preferred_element_type=jnp.float32) + bias
        s = s - jnp.max(s, axis=-1, keepdims=True)
        p = jnp.exp(s)
        p = p * pl.reciprocal(jnp.sum(p, axis=-1, keepdims=True), approx=True)
        o = jnp.dot(p.astype(v.dtype), v, preferred_element_type=jnp.float32)
        outs.append(o.astype(o_ref.dtype))
    # one unmasked, lane-dense (S, D) store (avoids Dh<128 masked partial stores)
    o_ref[0] = jnp.concatenate(outs, axis=-1)


def pallas_attention(qkv, mask_bias, *, n_head):
    # qkv: (B, S, 3D)   mask_bias: (B, 1, S) float32
    # TODO(synk): for B=1 inference on v7x, split the grid over heads too so the
    # second TensorCore gets work (requires dynamic lane slicing or 2-head groups).
    B, S, D3 = qkv.shape
    D = D3 // 3
    Dh = D // n_head
    kernel = functools.partial(_attn_kernel, n_head=n_head, scale=1.0 / math.sqrt(Dh))
    cost = pl.CostEstimate(
        flops=int(4 * B * n_head * S * S * Dh),
        transcendentals=int(B * n_head * S * S),
        bytes_accessed=int((B * S * D3 + B * S * D + B * S) * qkv.dtype.itemsize))
    return pl.pallas_call(
        kernel,
        grid=(B,),
        in_specs=[pl.BlockSpec((1, S, D3), lambda b: (b, 0, 0)),
                  pl.BlockSpec((1, 1, S), lambda b: (b, 0, 0))],
        out_specs=pl.BlockSpec((1, S, D), lambda b: (b, 0, 0)),
        out_shape=jax.ShapeDtypeStruct((B, S, D), qkv.dtype),
        compiler_params=pltpu.CompilerParams(
            dimension_semantics=("parallel",),
            vmem_limit_bytes=VMEM_LIMIT_BYTES),
        cost_estimate=cost,
    )(qkv, mask_bias)


# ----------------------------------------------------------------------------
# Synthetic GPT-2 + ClipCaptionModel (parameter setup & glue in plain JAX)
# ----------------------------------------------------------------------------

def init_params(key, *, vocab, n_embd, n_head, n_layer, n_positions,
                prefix_size, prefix_length):
    def nrm(k, shape, scale=0.02):
        return (scale * jax.random.normal(k, shape)).astype(jnp.float32)

    keys = jax.random.split(key, 8 + 8 * n_layer)
    ki = iter(keys)
    params = {
        "wte": nrm(next(ki), (vocab, n_embd)),
        "wpe": nrm(next(ki), (n_positions, n_embd)),
        "lnf_g": jnp.ones((n_embd,), jnp.float32),
        "lnf_b": jnp.zeros((n_embd,), jnp.float32),
        # clip_project MLP: (prefix_size, n_embd*prefix_length//2, n_embd*prefix_length)
        "mlp_w1": nrm(next(ki), (prefix_size, n_embd * prefix_length // 2)),
        "mlp_b1": jnp.zeros((n_embd * prefix_length // 2,), jnp.float32),
        "mlp_w2": nrm(next(ki), (n_embd * prefix_length // 2, n_embd * prefix_length)),
        "mlp_b2": jnp.zeros((n_embd * prefix_length,), jnp.float32),
        "blocks": [],
    }
    for _ in range(n_layer):
        blk = {
            "ln1_g": jnp.ones((n_embd,), jnp.float32),
            "ln1_b": jnp.zeros((n_embd,), jnp.float32),
            "c_attn_w": nrm(next(ki), (n_embd, 3 * n_embd)),
            "c_attn_b": jnp.zeros((3 * n_embd,), jnp.float32),
            "c_proj_w": nrm(next(ki), (n_embd, n_embd)),
            "c_proj_b": jnp.zeros((n_embd,), jnp.float32),
            "ln2_g": jnp.ones((n_embd,), jnp.float32),
            "ln2_b": jnp.zeros((n_embd,), jnp.float32),
            "c_fc_w": nrm(next(ki), (n_embd, 4 * n_embd)),
            "c_fc_b": jnp.zeros((4 * n_embd,), jnp.float32),
            "c_proj2_w": nrm(next(ki), (4 * n_embd, n_embd)),
            "c_proj2_b": jnp.zeros((n_embd,), jnp.float32),
        }
        params["blocks"].append(blk)
    return params


def gpt2_forward(params, inputs_embeds, *, n_head, attention_mask=None, labels=None):
    B, S, D = inputs_embeds.shape
    vocab = params["wte"].shape[0]

    # Pad sequence length: multiple of 128 when already large (lane-dense scores),
    # else multiple of 8 (sublane).  Padded keys are masked out and padded-query
    # logits are sliced away at the end.
    align = 128 if S >= 128 else 8
    S_pad = ((S + align - 1) // align) * align
    if attention_mask is None:
        attention_mask = jnp.ones((B, S), jnp.float32)
    attention_mask = attention_mask.astype(jnp.float32)
    if S_pad != S:
        inputs_embeds = jnp.pad(inputs_embeds, ((0, 0), (0, S_pad - S), (0, 0)))
        attention_mask = jnp.pad(attention_mask, ((0, 0), (0, S_pad - S)))

    # token + position embedding add (gather stays in JAX glue)
    h = inputs_embeds + params["wpe"][None, :S_pad, :].astype(inputs_embeds.dtype)
    mask_bias = ((1.0 - attention_mask) * -1e9)[:, None, :]      # (B, 1, S_pad) f32

    M = B * S_pad
    h2d = h.reshape(M, D)
    for blk in params["blocks"]:
        # --- attention sub-block: LN1 + c_attn fused; attention reads (B,S,3D)
        #     directly and writes lane-dense (B,S,D): no XLA transposes ---
        qkv = fused_ln_linear(h2d, blk["ln1_g"], blk["ln1_b"],
                              blk["c_attn_w"], blk["c_attn_b"])          # (M, 3D)
        a = pallas_attention(qkv.reshape(B, S_pad, 3 * D), mask_bias,
                             n_head=n_head)                              # (B, S, D)
        h2d = pallas_linear(a.reshape(M, D), blk["c_proj_w"],
                            bias=blk["c_proj_b"], residual=h2d)          # + residual
        # --- MLP sub-block: LN2 + c_fc(+gelu) fused, c_proj2 + residual fused ---
        m = fused_ln_linear(h2d, blk["ln2_g"], blk["ln2_b"],
                            blk["c_fc_w"], blk["c_fc_b"], activation="gelu_new")
        h2d = pallas_linear(m, blk["c_proj2_w"], bias=blk["c_proj2_b"],
                            residual=h2d)

    # final LN runs ONCE (hoisted out of the ~vocab/tn tile loop), then weight-tied
    # LM head as a K-tiled matmul against untransposed wte (no bias)
    xn = pallas_layernorm(h2d, params["lnf_g"], params["lnf_b"])
    logits = pallas_linear(xn, params["wte"], w_transposed=True)
    logits = logits.reshape(B, S_pad, vocab)[:, :S, :]

    loss = None
    if labels is not None:
        # shifted cross-entropy, mean reduction (matches HF GPT2LMHeadModel with
        # dummy label 0 at prefix positions, as in the reference forward) -- JAX glue
        shift_logits = logits[:, :-1, :]
        shift_labels = labels[:, 1:]
        logp = jax.nn.log_softmax(shift_logits.astype(jnp.float32), axis=-1)
        nll = -jnp.take_along_axis(logp, shift_labels[..., None], axis=-1)[..., 0]
        loss = jnp.mean(nll)
    return logits, loss


def clip_caption_forward(params, tokens, prefix, *, prefix_length, n_head,
                         mask=None, labels=None):
    B = tokens.shape[0]
    D = params["wte"].shape[1]
    # embedding_text = gpt.transformer.wte(tokens)   (gather stays in JAX glue)
    embedding_text = jnp.take(params["wte"], tokens, axis=0)
    # prefix_projections = clip_project(prefix)  ==  Linear -> Tanh -> Linear (tiled)
    hmid = pallas_linear(prefix, params["mlp_w1"], bias=params["mlp_b1"],
                         activation="tanh")
    prefix_proj = pallas_linear(hmid, params["mlp_w2"], bias=params["mlp_b2"])
    prefix_proj = prefix_proj.reshape(-1, prefix_length, D)
    embedding_cat = jnp.concatenate([prefix_proj, embedding_text], axis=1)
    if labels is not None:
        dummy = jnp.zeros((B, prefix_length), dtype=tokens.dtype)   # get_dummy_token
        labels = jnp.concatenate([dummy, tokens], axis=1)
    return gpt2_forward(params, embedding_cat, n_head=n_head,
                        attention_mask=mask, labels=labels)


# ----------------------------------------------------------------------------
# Demo
# ----------------------------------------------------------------------------

if __name__ == "__main__":
    # small synthetic GPT-2 config (pretrained gpt2 cannot be loaded in a kernel script)
    VOCAB = 64
    N_EMBD = 32          # gpt_embedding_size
    N_HEAD = 4
    N_LAYER = 2          # num_layers
    N_POS = 32
    PREFIX_LENGTH = 4
    PREFIX_SIZE = 16
    BATCH = 2
    SEQ = 8

    key = jax.random.PRNGKey(0)
    kp, kt, kx = jax.random.split(key, 3)

    params = init_params(kp, vocab=VOCAB, n_embd=N_EMBD, n_head=N_HEAD,
                         n_layer=N_LAYER, n_positions=N_POS,
                         prefix_size=PREFIX_SIZE, prefix_length=PREFIX_LENGTH)

    tokens = jax.random.randint(kt, (BATCH, SEQ), 0, VOCAB, dtype=jnp.int32)
    prefix = jax.random.normal(kx, (BATCH, PREFIX_SIZE), dtype=jnp.float32)
    mask = jnp.ones((BATCH, PREFIX_LENGTH + SEQ), dtype=jnp.float32)

    fwd = jax.jit(functools.partial(clip_caption_forward,
                                    prefix_length=PREFIX_LENGTH, n_head=N_HEAD))

    # f32 run (parity with the torch reference)
    logits, loss = fwd(params, tokens, prefix, mask=mask, labels=tokens)
    jax.block_until_ready(logits)
    jax.block_until_ready(loss)
    assert logits.shape == (BATCH, PREFIX_LENGTH + SEQ, VOCAB)
    assert bool(jnp.all(jnp.isfinite(logits)))
    assert bool(jnp.isfinite(loss))

    # bf16 smoke run (half the HBM traffic; LN/softmax stats + accumulators stay f32)
    params_bf16 = jax.tree_util.tree_map(
        lambda a: a.astype(jnp.bfloat16) if a.dtype == jnp.float32 else a, params)
    logits16, loss16 = fwd(params_bf16, tokens, prefix.astype(jnp.bfloat16),
                           mask=mask, labels=tokens)
    jax.block_until_ready(logits16)
    assert logits16.shape == (BATCH, PREFIX_LENGTH + SEQ, VOCAB)
    assert bool(jnp.all(jnp.isfinite(logits16.astype(jnp.float32))))
    assert bool(jnp.isfinite(loss16))

    print("KERNEL_OK")
</pallas_src>

<mosaic_0001>
module attributes {stable_mosaic.version = 11 : i64} {
  func.func @_linear_kernel(%arg0: i32, %arg1: i32, %arg2: i32, %arg3: memref<2x64xf32, #tpu.memory_space<vmem>>, %arg4: memref<64x128xf32, #tpu.memory_space<vmem>>, %arg5: memref<1x128xf32, #tpu.memory_space<vmem>>, %arg6: memref<2x128xf32, #tpu.memory_space<vmem>>, %arg7: memref<2x128xf32, #tpu.memory_space<vmem>>) attributes {dimension_semantics = [#tpu.dimension_semantics<parallel>, #tpu.dimension_semantics<parallel>, #tpu.dimension_semantics<arbitrary>], iteration_bounds = array<i64: 1, 1, 1>, scalar_prefetch = 0 : i64, scratch_operands = 1 : i64, tpu.core_type = #tpu.core_type<tc>, window_params = [{transform_indices = @transform_0, window_bounds = array<i64: 2, 64>}, {transform_indices = @transform_1, window_bounds = array<i64: 64, 128>}, {transform_indices = @transform_2, window_bounds = array<i64: 1, 128>}, {transform_indices = @transform_3, window_bounds = array<i64: 2, 128>}]} {
    %c0_i32 = arith.constant 0 : i32
    %0 = arith.cmpi eq, %arg2, %c0_i32 : i32
    %1 = arith.extui %0 : i1 to i32
    %c0_i32_0 = arith.constant 0 : i32
    %2 = arith.cmpi ne, %1, %c0_i32_0 : i32
    scf.if %2 {
      %cst_10 = arith.constant 0.000000e+00 : f32
      %12 = vector.broadcast %cst_10 : f32 to vector<2x128xf32>
      %c0_11 = arith.constant 0 : index
      %c0_12 = arith.constant 0 : index
      %13 = vector.load %arg7[%c0_11, %c0_12] : memref<2x128xf32, #tpu.memory_space<vmem>>, vector<2x128xf32>
      tpu.vector_store %arg7[%c0_11, %c0_12], %12 {strides = array<i32>} : memref<2x128xf32, #tpu.memory_space<vmem>>, vector<2x128xf32>,
    } else {
    }
    %c0 = arith.constant 0 : index
    %c0_1 = arith.constant 0 : index
    %3 = vector.load %arg7[%c0, %c0_1] : memref<2x128xf32, #tpu.memory_space<vmem>>, vector<2x128xf32>
    %c0_2 = arith.constant 0 : index
    %c0_3 = arith.constant 0 : index
    %4 = vector.load %arg3[%c0_2, %c0_3] : memref<2x64xf32, #tpu.memory_space<vmem>>, vector<2x64xf32>
    %c0_4 = arith.constant 0 : index
    %c0_5 = arith.constant 0 : index
    %5 = vector.load %arg4[%c0_4, %c0_5] : memref<64x128xf32, #tpu.memory_space<vmem>>, vector<64x128xf32>
    %cst = arith.constant dense<0.000000e+00> : vector<2x128xf32>
    %6 = tpu.matmul %4, %5, %cst {dimension_numbers = #tpu.dot_dimension_numbers<[1], [0], [0], [1], [0, 0, 1, 1], [], []>} : vector<2x64xf32>, vector<64x128xf32>, vector<2x128xf32> -> vector<2x128xf32>
    %7 = arith.addf %3, %6 : vector<2x128xf32>
    %c0_6 = arith.constant 0 : index
    %c0_7 = arith.constant 0 : index
    %8 = vector.load %arg7[%c0_6, %c0_7] : memref<2x128xf32, #tpu.memory_space<vmem>>, vector<2x128xf32>
    tpu.vector_store %arg7[%c0_6, %c0_7], %7 {strides = array<i32>} : memref<2x128xf32, #tpu.memory_space<vmem>>, vector<2x128xf32>,
    %c0_i32_8 = arith.constant 0 : i32
    %9 = arith.cmpi eq, %arg2, %c0_i32_8 : i32
    %10 = arith.extui %9 : i1 to i32
    %c0_i32_9 = arith.constant 0 : i32
    %11 = arith.cmpi ne, %10, %c0_i32_9 : i32
    scf.if %11 {
      %c0_10 = arith.constant 0 : index
      %c0_11 = arith.constant 0 : index
      %12 = vector.load %arg7[%c0_10, %c0_11] : memref<2x128xf32, #tpu.memory_space<vmem>>, vector<2x128xf32>
      %c0_12 = arith.constant 0 : index
      %c0_13 = arith.constant 0 : index
      %13 = vector.load %arg5[%c0_12, %c0_13] : memref<1x128xf32, #tpu.memory_space<vmem>>, vector<1x128xf32>
      %14 = vector.broadcast %13 : vector<1x128xf32> to vector<2x128xf32>
      %15 = arith.addf %12, %14 : vector<2x128xf32>
      %c0_14 = arith.constant 0 : index
      %c0_15 = arith.constant 0 : index
      %16 = vector.load %arg6[%c0_14, %c0_15] : memref<2x128xf32, #tpu.memory_space<vmem>>, vector<2x128xf32>
      tpu.vector_store %arg6[%c0_14, %c0_15], %15 {strides = array<i32>} : memref<2x128xf32, #tpu.memory_space<vmem>>, vector<2x128xf32>,
    } else {
    }
    return
  }
  func.func @transform_0(%arg0: i32, %arg1: i32, %arg2: i32) -> (i32, i32) {
    %c0_i32 = arith.constant 0 : i32
    return %arg0, %arg2 : i32, i32
  }
  func.func @transform_1(%arg0: i32, %arg1: i32, %arg2: i32) -> (i32, i32) {
    %c0_i32 = arith.constant 0 : i32
    return %arg2, %arg1 : i32, i32
  }
  func.func @transform_2(%arg0: i32, %arg1: i32, %arg2: i32) -> (i32, i32) {
    %c0_i32 = arith.constant 0 : i32
    %c0_i32_0 = arith.constant 0 : i32
    return %c0_i32, %arg1 : i32, i32
  }
  func.func @transform_3(%arg0: i32, %arg1: i32, %arg2: i32) -> (i32, i32) {
    %c0_i32 = arith.constant 0 : i32
    return %arg0, %arg1 : i32, i32
  }
}

module attributes {stable_mosaic.version = 11 : i64} {
  func.func @_linear_kernel(%arg0: i32, %arg1: i32, %arg2: i32, %arg3: memref<2x16xf32, #tpu.memory_space<vmem>>, %arg4: memref<16x64xf32, #tpu.memory_space<vmem>>, %arg5: memref<1x64xf32, #tpu.memory_space<vmem>>, %arg6: memref<2x64xf32, #tpu.memory_space<vmem>>, %arg7: memref<2x64xf32, #tpu.memory_space<vmem>>) attributes {dimension_semantics = [#tpu.dimension_semantics<parallel>, #tpu.dimension_semantics<parallel>, #tpu.dimension_semantics<arbitrary>], iteration_bounds = array<i64: 1, 1, 1>, scalar_prefetch = 0 : i64, scratch_operands = 1 : i64, tpu.core_type = #tpu.core_type<tc>, window_params = [{transform_indices = @transform_0, window_bounds = array<i64: 2, 16>}, {transform_indices = @transform_1, window_bounds = array<i64: 16, 64>}, {transform_indices = @transform_2, window_bounds = array<i64: 1, 64>}, {transform_indices = @transform_3, window_bounds = array<i64: 2, 64>}]} {
    %c0_i32 = arith.constant 0 : i32
    %0 = arith.cmpi eq, %arg2, %c0_i32 : i32
    %1 = arith.extui %0 : i1 to i32
    %c0_i32_0 = arith.constant 0 : i32
    %2 = arith.cmpi ne, %1, %c0_i32_0 : i32
    scf.if %2 {
      %cst_10 = arith.constant 0.000000e+00 : f32
      %12 = vector.broadcast %cst_10 : f32 to vector<2x64xf32>
      %c0_11 = arith.constant 0 : index
      %c0_12 = arith.constant 0 : index
      %13 = vector.load %arg7[%c0_11, %c0_12] : memref<2x64xf32, #tpu.memory_space<vmem>>, vector<2x64xf32>
      tpu.vector_store %arg7[%c0_11, %c0_12], %12 {strides = array<i32>} : memref<2x64xf32, #tpu.memory_space<vmem>>, vector<2x64xf32>,
    } else {
    }
    %c0 = arith.constant 0 : index
    %c0_1 = arith.constant 0 : index
    %3 = vector.load %arg7[%c0, %c0_1] : memref<2x64xf32, #tpu.memory_space<vmem>>, vector<2x64xf32>
    %c0_2 = arith.constant 0 : index
    %c0_3 = arith.constant 0 : index
    %4 = vector.load %arg3[%c0_2, %c0_3] : memref<2x16xf32, #tpu.memory_space<vmem>>, vector<2x16xf32>
    %c0_4 = arith.constant 0 : index
    %c0_5 = arith.constant 0 : index
    %5 = vector.load %arg4[%c0_4, %c0_5] : memref<16x64xf32, #tpu.memory_space<vmem>>, vector<16x64xf32>
    %cst = arith.constant dense<0.000000e+00> : vector<2x64xf32>
    %6 = tpu.matmul %4, %5, %cst {dimension_numbers = #tpu.dot_dimension_numbers<[1], [0], [0], [1], [0, 0, 1, 1], [], []>} : vector<2x16xf32>, vector<16x64xf32>, vector<2x64xf32> -> vector<2x64xf32>
    %7 = arith.addf %3, %6 : vector<2x64xf32>
    %c0_6 = arith.constant 0 : index
    %c0_7 = arith.constant 0 : index
    %8 = vector.load %arg7[%c0_6, %c0_7] : memref<2x64xf32, #tpu.memory_space<vmem>>, vector<2x64xf32>
    tpu.vector_store %arg7[%c0_6, %c0_7], %7 {strides = array<i32>} : memref<2x64xf32, #tpu.memory_space<vmem>>, vector<2x64xf32>,
    %c0_i32_8 = arith.constant 0 : i32
    %9 = arith.cmpi eq, %arg2, %c0_i32_8 : i32
    %10 = arith.extui %9 : i1 to i32
    %c0_i32_9 = arith.constant 0 : i32
    %11 = arith.cmpi ne, %10, %c0_i32_9 : i32
    scf.if %11 {
      %c0_10 = arith.constant 0 : index
      %c0_11 = arith.constant 0 : index
      %12 = vector.load %arg7[%c0_10, %c0_11] : memref<2x64xf32, #tpu.memory_space<vmem>>, vector<2x64xf32>
      %c0_12 = arith.constant 0 : index
      %c0_13 = arith.constant 0 : index
      %13 = vector.load %arg5[%c0_12, %c0_13] : memref<1x64xf32, #tpu.memory_space<vmem>>, vector<1x64xf32>
      %14 = vector.broadcast %13 : vector<1x64xf32> to vector<2x64xf32>
      %15 = arith.addf %12, %14 : vector<2x64xf32>
      %16 = math.tanh %15 : vector<2x64xf32>
      %c0_14 = arith.constant 0 : index
      %c0_15 = arith.constant 0 : index
      %17 = vector.load %arg6[%c0_14, %c0_15] : memref<2x64xf32, #tpu.memory_space<vmem>>, vector<2x64xf32>
      tpu.vector_store %arg6[%c0_14, %c0_15], %16 {strides = array<i32>} : memref<2x64xf32, #tpu.memory_space<vmem>>, vector<2x64xf32>,
    } else {
    }
    return
  }
  func.func @transform_0(%arg0: i32, %arg1: i32, %arg2: i32) -> (i32, i32) {
    %c0_i32 = arith.constant 0 : i32
    return %arg0, %arg2 : i32, i32
  }
  func.func @transform_1(%arg0: i32, %arg1: i32, %arg2: i32) -> (i32, i32) {
    %c0_i32 = arith.constant 0 : i32
    return %arg2, %arg1 : i32, i32
  }
  func.func @transform_2(%arg0: i32, %arg1: i32, %arg2: i32) -> (i32, i32) {
    %c0_i32 = arith.constant 0 : i32
    %c0_i32_0 = arith.constant 0 : i32
    return %c0_i32, %arg1 : i32, i32
  }
  func.func @transform_3(%arg0: i32, %arg1: i32, %arg2: i32) -> (i32, i32) {
    %c0_i32 = arith.constant 0 : i32
    return %arg0, %arg1 : i32, i32
  }
}

module attributes {stable_mosaic.version = 11 : i64} {
  func.func @_ln_linear_kernel(%arg0: i32, %arg1: i32, %arg2: memref<32x32xf32, #tpu.memory_space<vmem>>, %arg3: memref<1x32xf32, #tpu.memory_space<vmem>>, %arg4: memref<1x32xf32, #tpu.memory_space<vmem>>, %arg5: memref<32x96xf32, #tpu.memory_space<vmem>>, %arg6: memref<1x96xf32, #tpu.memory_space<vmem>>, %arg7: memref<32x96xf32, #tpu.memory_space<vmem>>) attributes {dimension_semantics = [#tpu.dimension_semantics<parallel>, #tpu.dimension_semantics<parallel>], iteration_bounds = array<i64: 1, 1>, scalar_prefetch = 0 : i64, scratch_operands = 0 : i64, tpu.core_type = #tpu.core_type<tc>, window_params = [{transform_indices = @transform_0, window_bounds = array<i64: 32, 32>}, {pipeline_mode = #tpu.pipeline_mode<synchronous>, transform_indices = @transform_1, window_bounds = array<i64: 1, 32>}, {pipeline_mode = #tpu.pipeline_mode<synchronous>, transform_indices = @transform_2, window_bounds = array<i64: 1, 32>}, {transform_indices = @transform_3, window_bounds = array<i64: 32, 96>}, {transform_indices = @transform_4, window_bounds = array<i64: 1, 96>}, {transform_indices = @transform_5, window_bounds = array<i64: 32, 96>}]} {
    %c0 = arith.constant 0 : index
    %c0_0 = arith.constant 0 : index
    %0 = vector.load %arg2[%c0, %c0_0] : memref<32x32xf32, #tpu.memory_space<vmem>>, vector<32x32xf32>
    %cst = arith.constant dense<0.000000e+00> : vector<32xf32>
    %1 = vector.multi_reduction <add>, %0, %cst [1] : vector<32x32xf32> to vector<32xf32>
    %2 = vector.shape_cast %1 : vector<32xf32> to vector<32x1xf32>
    %cst_1 = arith.constant 3.200000e+01 : f32
    %3 = vector.broadcast %cst_1 : f32 to vector<32x1xf32>
    %4 = arith.divf %2, %3 : vector<32x1xf32>
    %5 = vector.broadcast %4 : vector<32x1xf32> to vector<32x32xf32>
    %6 = arith.subf %0, %5 : vector<32x32xf32>
    %7 = arith.mulf %6, %6 : vector<32x32xf32>
    %cst_2 = arith.constant dense<0.000000e+00> : vector<32xf32>
    %8 = vector.multi_reduction <add>, %7, %cst_2 [1] : vector<32x32xf32> to vector<32xf32>
    %9 = vector.shape_cast %8 : vector<32xf32> to vector<32x1xf32>
    %cst_3 = arith.constant 3.200000e+01 : f32
    %10 = vector.broadcast %cst_3 : f32 to vector<32x1xf32>
    %11 = arith.divf %9, %10 : vector<32x1xf32>
    %12 = vector.broadcast %4 : vector<32x1xf32> to vector<32x32xf32>
    %13 = arith.subf %0, %12 : vector<32x32xf32>
    %cst_4 = arith.constant 9.99999974E-6 : f32
    %14 = vector.broadcast %cst_4 : f32 to vector<32x1xf32>
    %15 = arith.addf %11, %14 : vector<32x1xf32>
    %16 = math.rsqrt %15 : vector<32x1xf32>
    %17 = vector.broadcast %16 : vector<32x1xf32> to vector<32x32xf32>
    %18 = arith.mulf %13, %17 : vector<32x32xf32>
    %c0_5 = arith.constant 0 : index
    %c0_6 = arith.constant 0 : index
    %19 = vector.load %arg3[%c0_5, %c0_6] : memref<1x32xf32, #tpu.memory_space<vmem>>, vector<1x32xf32>
    %20 = vector.broadcast %19 : vector<1x32xf32> to vector<32x32xf32>
    %21 = arith.mulf %18, %20 : vector<32x32xf32>
    %c0_7 = arith.constant 0 : index
    %c0_8 = arith.constant 0 : index
    %22 = vector.load %arg4[%c0_7, %c0_8] : memref<1x32xf32, #tpu.memory_space<vmem>>, vector<1x32xf32>
    %23 = vector.broadcast %22 : vector<1x32xf32> to vector<32x32xf32>
    %24 = arith.addf %21, %23 : vector<32x32xf32>
    %c0_9 = arith.constant 0 : index
    %c0_10 = arith.constant 0 : index
    %25 = vector.load %arg5[%c0_9, %c0_10] : memref<32x96xf32, #tpu.memory_space<vmem>>, vector<32x96xf32>
    %cst_11 = arith.constant dense<0.000000e+00> : vector<32x96xf32>
    %26 = tpu.matmul %24, %25, %cst_11 {dimension_numbers = #tpu.dot_dimension_numbers<[1], [0], [0], [1], [0, 0, 1, 1], [], []>} : vector<32x32xf32>, vector<32x96xf32>, vector<32x96xf32> -> vector<32x96xf32>
    %c0_12 = arith.constant 0 : index
    %c0_13 = arith.constant 0 : index
    %27 = vector.load %arg6[%c0_12, %c0_13] : memref<1x96xf32, #tpu.memory_space<vmem>>, vector<1x96xf32>
    %28 = vector.broadcast %27 : vector<1x96xf32> to vector<32x96xf32>
    %29 = arith.addf %26, %28 : vector<32x96xf32>
    %c0_14 = arith.constant 0 : index
    %c0_15 = arith.constant 0 : index
    %30 = vector.load %arg7[%c0_14, %c0_15] : memref<32x96xf32, #tpu.memory_space<vmem>>, vector<32x96xf32>
    tpu.vector_store %arg7[%c0_14, %c0_15], %29 {strides = array<i32>} : memref<32x96xf32, #tpu.memory_space<vmem>>, vector<32x96xf32>,
    return
  }
  func.func @transform_0(%arg0: i32, %arg1: i32) -> (i32, i32) {
    %c0_i32 = arith.constant 0 : i32
    %c0_i32_0 = arith.constant 0 : i32
    return %arg0, %c0_i32 : i32, i32
  }
  func.func @transform_1(%arg0: i32, %arg1: i32) -> (i32, i32) {
    %c0_i32 = arith.constant 0 : i32
    %c0_i32_0 = arith.constant 0 : i32
    %c0_i32_1 = arith.constant 0 : i32
    return %c0_i32, %c0_i32_0 : i32, i32
  }
  func.func @transform_2(%arg0: i32, %arg1: i32) -> (i32, i32) {
    %c0_i32 = arith.constant 0 : i32
    %c0_i32_0 = arith.constant 0 : i32
    %c0_i32_1 = arith.constant 0 : i32
    return %c0_i32, %c0_i32_0 : i32, i32
  }
  func.func @transform_3(%arg0: i32, %arg1: i32) -> (i32, i32) {
    %c0_i32 = arith.constant 0 : i32
    %c0_i32_0 = arith.constant 0 : i32
    return %c0_i32, %arg1 : i32, i32
  }
  func.func @transform_4(%arg0: i32, %arg1: i32) -> (i32, i32) {
    %c0_i32 = arith.constant 0 : i32
    %c0_i32_0 = arith.constant 0 : i32
    return %c0_i32, %arg1 : i32, i32
  }
  func.func @transform_5(%arg0: i32, %arg1: i32) -> (i32, i32) {
    %c0_i32 = arith.constant 0 : i32
    return %arg0, %arg1 : i32, i32
  }
}

module attributes {stable_mosaic.version = 11 : i64} {
  func.func @_attn_kernel(%arg0: i32, %arg1: memref<1x16x96xf32, #tpu.memory_space<vmem>>, %arg2: memref<1x1x16xf32, #tpu.memory_space<vmem>>, %arg3: memref<1x16x32xf32, #tpu.memory_space<vmem>>) attributes {dimension_semantics = [#tpu.dimension_semantics<parallel>], iteration_bounds = array<i64: 2>, scalar_prefetch = 0 : i64, scratch_operands = 0 : i64, tpu.core_type = #tpu.core_type<tc>, window_params = [{transform_indices = @transform_0, window_bounds = array<i64: 1, 16, 96>}, {transform_indices = @transform_1, window_bounds = array<i64: 1, 1, 16>}, {transform_indices = @transform_2, window_bounds = array<i64: 1, 16, 32>}]} {
    %0 = tpu.iota {dimensions = array<i32: 0>} : vector<16x16xi32>
    %1 = tpu.iota {dimensions = array<i32: 1>} : vector<16x16xi32>
    %2 = arith.cmpi sle, %1, %0 : vector<16x16xi32>
    %c0 = arith.constant 0 : index
    %c0_0 = arith.constant 0 : index
    %c0_1 = arith.constant 0 : index
    %3 = vector.load %arg2[%c0, %c0_0, %c0_1] : memref<1x1x16xf32, #tpu.memory_space<vmem>>, vector<1x1x16xf32>
    %4 = vector.shape_cast %3 : vector<1x1x16xf32> to vector<1x16xf32>
    %cst = arith.constant -1.000000e+30 : f32
    %5 = vector.shape_cast %4 : vector<1x16xf32> to vector<1x16xf32>
    %6 = vector.broadcast %5 : vector<1x16xf32> to vector<16x16xf32>
    %7 = vector.broadcast %cst : f32 to vector<16x16xf32>
    %8 = arith.select %2, %6, %7 : vector<16x16xi1>, vector<16x16xf32>
    %c0_2 = arith.constant 0 : index
    %c0_3 = arith.constant 0 : index
    %c0_4 = arith.constant 0 : index
    %9 = vector.load %arg1[%c0_2, %c0_3, %c0_4] : memref<1x16x96xf32, #tpu.memory_space<vmem>>, vector<1x16x8xf32>
    %10 = vector.shape_cast %9 : vector<1x16x8xf32> to vector<16x8xf32>
    %cst_5 = arith.constant 0.353553385 : f32
    %11 = vector.broadcast %cst_5 : f32 to vector<16x8xf32>
    %12 = arith.mulf %10, %11 : vector<16x8xf32>
    %c0_6 = arith.constant 0 : index
    %c0_7 = arith.constant 0 : index
    %c32 = arith.constant 32 : index
    %13 = vector.load %arg1[%c0_6, %c0_7, %c32] : memref<1x16x96xf32, #tpu.memory_space<vmem>>, vector<1x16x8xf32>
    %14 = vector.shape_cast %13 : vector<1x16x8xf32> to vector<16x8xf32>
    %c0_8 = arith.constant 0 : index
    %c0_9 = arith.constant 0 : index
    %c64 = arith.constant 64 : index
    %15 = vector.load %arg1[%c0_8, %c0_9, %c64] : memref<1x16x96xf32, #tpu.memory_space<vmem>>, vector<1x16x8xf32>
    %16 = vector.shape_cast %15 : vector<1x16x8xf32> to vector<16x8xf32>
    %cst_10 = arith.constant dense<0.000000e+00> : vector<16x16xf32>
    %17 = tpu.matmul %12, %14, %cst_10 {dimension_numbers = #tpu.dot_dimension_numbers<[1], [1], [0], [0], [0, 0, 1, 0], [], []>} : vector<16x8xf32>, vector<16x8xf32>, vector<16x16xf32> -> vector<16x16xf32>
    %18 = arith.addf %17, %8 : vector<16x16xf32>
    %cst_11 = arith.constant dense<0xFF800000> : vector<16xf32>
    %19 = vector.multi_reduction <maximumf>, %18, %cst_11 [1] : vector<16x16xf32> to vector<16xf32>
    %20 = vector.shape_cast %19 : vector<16xf32> to vector<16x1xf32>
    %21 = vector.broadcast %20 : vector<16x1xf32> to vector<16x16xf32>
    %22 = arith.subf %18, %21 : vector<16x16xf32>
    %23 = math.exp %22 : vector<16x16xf32>
    %cst_12 = arith.constant dense<0.000000e+00> : vector<16xf32>
    %24 = vector.multi_reduction <add>, %23, %cst_12 [1] : vector<16x16xf32> to vector<16xf32>
    %25 = vector.shape_cast %24 : vector<16xf32> to vector<16x1xf32>
    %26 = tpu.reciprocal %25 {approx = true} : vector<16x1xf32> -> vector<16x1xf32>
    %27 = vector.broadcast %26 : vector<16x1xf32> to vector<16x16xf32>
    %28 = arith.mulf %23, %27 : vector<16x16xf32>
    %cst_13 = arith.constant dense<0.000000e+00> : vector<16x8xf32>
    %29 = tpu.matmul %28, %16, %cst_13 {dimension_numbers = #tpu.dot_dimension_numbers<[1], [0], [0], [1], [0, 0, 1, 1], [], []>} : vector<16x16xf32>, vector<16x8xf32>, vector<16x8xf32> -> vector<16x8xf32>
    %c0_14 = arith.constant 0 : index
    %c0_15 = arith.constant 0 : index
    %c8 = arith.constant 8 : index
    %30 = vector.load %arg1[%c0_14, %c0_15, %c8] : memref<1x16x96xf32, #tpu.memory_space<vmem>>, vector<1x16x8xf32>
    %31 = vector.shape_cast %30 : vector<1x16x8xf32> to vector<16x8xf32>
    %cst_16 = arith.constant 0.353553385 : f32
    %32 = vector.broadcast %cst_16 : f32 to vector<16x8xf32>
    %33 = arith.mulf %31, %32 : vector<16x8xf32>
    %c0_17 = arith.constant 0 : index
    %c0_18 = arith.constant 0 : index
    %c40 = arith.constant 40 : index
    %34 = vector.load %arg1[%c0_17, %c0_18, %c40] : memref<1x16x96xf32, #tpu.memory_space<vmem>>, vector<1x16x8xf32>
    %35 = vector.shape_cast %34 : vector<1x16x8xf32> to vector<16x8xf32>
    %c0_19 = arith.constant 0 : index
    %c0_20 = arith.constant 0 : index
    %c72 = arith.constant 72 : index
    %36 = vector.load %arg1[%c0_19, %c0_20, %c72] : memref<1x16x96xf32, #tpu.memory_space<vmem>>, vector<1x16x8xf32>
    %37 = vector.shape_cast %36 : vector<1x16x8xf32> to vector<16x8xf32>
    %cst_21 = arith.constant dense<0.000000e+00> : vector<16x16xf32>
    %38 = tpu.matmul %33, %35, %cst_21 {dimension_numbers = #tpu.dot_dimension_numbers<[1], [1], [0], [0], [0, 0, 1, 0], [], []>} : vector<16x8xf32>, vector<16x8xf32>, vector<16x16xf32> -> vector<16x16xf32>
    %39 = arith.addf %38, %8 : vector<16x16xf32>
    %cst_22 = arith.constant dense<0xFF800000> : vector<16xf32>
    %40 = vector.multi_reduction <maximumf>, %39, %cst_22 [1] : vector<16x16xf32> to vector<16xf32>
    %41 = vector.shape_cast %40 : vector<16xf32> to vector<16x1xf32>
    %42 = vector.broadcast %41 : vector<16x1xf32> to vector<16x16xf32>
    %43 = arith.subf %39, %42 : vector<16x16xf32>
    %44 = math.exp %43 : vector<16x16xf32>
    %cst_23 = arith.constant dense<0.000000e+00> : vector<16xf32>
    %45 = vector.multi_reduction <add>, %44, %cst_23 [1] : vector<16x16xf32> to vector<16xf32>
    %46 = vector.shape_cast %45 : vector<16xf32> to vector<16x1xf32>
    %47 = tpu.reciprocal %46 {approx = true} : vector<16x1xf32> -> vector<16x1xf32>
    %48 = vector.broadcast %47 : vector<16x1xf32> to vector<16x16xf32>
    %49 = arith.mulf %44, %48 : vector<16x16xf32>
    %cst_24 = arith.constant dense<0.000000e+00> : vector<16x8xf32>
    %50 = tpu.matmul %49, %37, %cst_24 {dimension_numbers = #tpu.dot_dimension_numbers<[1], [0], [0], [1], [0, 0, 1, 1], [], []>} : vector<16x16xf32>, vector<16x8xf32>, vector<16x8xf32> -> vector<16x8xf32>
    %c0_25 = arith.constant 0 : index
    %c0_26 = arith.constant 0 : index
    %c16 = arith.constant 16 : index
    %51 = vector.load %arg1[%c0_25, %c0_26, %c16] : memref<1x16x96xf32, #tpu.memory_space<vmem>>, vector<1x16x8xf32>
    %52 = vector.shape_cast %51 : vector<1x16x8xf32> to vector<16x8xf32>
    %cst_27 = arith.constant 0.353553385 : f32
    %53 = vector.broadcast %cst_27 : f32 to vector<16x8xf32>
    %54 = arith.mulf %52, %53 : vector<16x8xf32>
    %c0_28 = arith.constant 0 : index
    %c0_29 = arith.constant 0 : index
    %c48 = arith.constant 48 : index
    %55 = vector.load %arg1[%c0_28, %c0_29, %c48] : memref<1x16x96xf32, #tpu.memory_space<vmem>>, vector<1x16x8xf32>
    %56 = vector.shape_cast %55 : vector<1x16x8xf32> to vector<16x8xf32>
    %c0_30 = arith.constant 0 : index
    %c0_31 = arith.constant 0 : index
    %c80 = arith.constant 80 : index
    %57 = vector.load %arg1[%c0_30, %c0_31, %c80] : memref<1x16x96xf32, #tpu.memory_space<vmem>>, vector<1x16x8xf32>
    %58 = vector.shape_cast %57 : vector<1x16x8xf32> to vector<16x8xf32>
    %cst_32 = arith.constant dense<0.000000e+00> : vector<16x16xf32>
    %59 = tpu.matmul %54, %56, %cst_32 {dimension_numbers = #tpu.dot_dimension_numbers<[1], [1], [0], [0], [0, 0, 1, 0], [], []>} : vector<16x8xf32>, vector<16x8xf32>, vector<16x16xf32> -> vector<16x16xf32>
    %60 = arith.addf %59, %8 : vector<16x16xf32>
    %cst_33 = arith.constant dense<0xFF800000> : vector<16xf32>
    %61 = vector.multi_reduction <maximumf>, %60, %cst_33 [1] : vector<16x16xf32> to vector<16xf32>
    %62 = vector.shape_cast %61 : vector<16xf32> to vector<16x1xf32>
    %63 = vector.broadcast %62 : vector<16x1xf32> to vector<16x16xf32>
    %64 = arith.subf %60, %63 : vector<16x16xf32>
    %65 = math.exp %64 : vector<16x16xf32>
    %cst_34 = arith.constant dense<0.000000e+00> : vector<16xf32>
    %66 = vector.multi_reduction <add>, %65, %cst_34 [1] : vector<16x16xf32> to vector<16xf32>
    %67 = vector.shape_cast %66 : vector<16xf32> to vector<16x1xf32>
    %68 = tpu.reciprocal %67 {approx = true} : vector<16x1xf32> -> vector<16x1xf32>
    %69 = vector.broadcast %68 : vector<16x1xf32> to vector<16x16xf32>
    %70 = arith.mulf %65, %69 : vector<16x16xf32>
    %cst_35 = arith.constant dense<0.000000e+00> : vector<16x8xf32>
    %71 = tpu.matmul %70, %58, %cst_35 {dimension_numbers = #tpu.dot_dimension_numbers<[1], [0], [0], [1], [0, 0, 1, 1], [], []>} : vector<16x16xf32>, vector<16x8xf32>, vector<16x8xf32> -> vector<16x8xf32>
    %c0_36 = arith.constant 0 : index
    %c0_37 = arith.constant 0 : index
    %c24 = arith.constant 24 : index
    %72 = vector.load %arg1[%c0_36, %c0_37, %c24] : memref<1x16x96xf32, #tpu.memory_space<vmem>>, vector<1x16x8xf32>
    %73 = vector.shape_cast %72 : vector<1x16x8xf32> to vector<16x8xf32>
    %cst_38 = arith.constant 0.353553385 : f32
    %74 = vector.broadcast %cst_38 : f32 to vector<16x8xf32>
    %75 = arith.mulf %73, %74 : vector<16x8xf32>
    %c0_39 = arith.constant 0 : index
    %c0_40 = arith.constant 0 : index
    %c56 = arith.constant 56 : index
    %76 = vector.load %arg1[%c0_39, %c0_40, %c56] : memref<1x16x96xf32, #tpu.memory_space<vmem>>, vector<1x16x8xf32>
    %77 = vector.shape_cast %76 : vector<1x16x8xf32> to vector<16x8xf32>
    %c0_41 = arith.constant 0 : index
    %c0_42 = arith.constant 0 : index
    %c88 = arith.constant 88 : index
    %78 = vector.load %arg1[%c0_41, %c0_42, %c88] : memref<1x16x96xf32, #tpu.memory_space<vmem>>, vector<1x16x8xf32>
    %79 = vector.shape_cast %78 : vector<1x16x8xf32> to vector<16x8xf32>
    %cst_43 = arith.constant dense<0.000000e+00> : vector<16x16xf32>
    %80 = tpu.matmul %75, %77, %cst_43 {dimension_numbers = #tpu.dot_dimension_numbers<[1], [1], [0], [0], [0, 0, 1, 0], [], []>} : vector<16x8xf32>, vector<16x8xf32>, vector<16x16xf32> -> vector<16x16xf32>
    %81 = arith.addf %80, %8 : vector<16x16xf32>
    %cst_44 = arith.constant dense<0xFF800000> : vector<16xf32>
    %82 = vector.multi_reduction <maximumf>, %81, %cst_44 [1] : vector<16x16xf32> to vector<16xf32>
    %83 = vector.shape_cast %82 : vector<16xf32> to vector<16x1xf32>
    %84 = vector.broadcast %83 : vector<16x1xf32> to vector<16x16xf32>
    %85 = arith.subf %81, %84 : vector<16x16xf32>
    %86 = math.exp %85 : vector<16x16xf32>
    %cst_45 = arith.constant dense<0.000000e+00> : vector<16xf32>
    %87 = vector.multi_reduction <add>, %86, %cst_45 [1] : vector<16x16xf32> to vector<16xf32>
    %88 = vector.shape_cast %87 : vector<16xf32> to vector<16x1xf32>
    %89 = tpu.reciprocal %88 {approx = true} : vector<16x1xf32> -> vector<16x1xf32>
    %90 = vector.broadcast %89 : vector<16x1xf32> to vector<16x16xf32>
    %91 = arith.mulf %86, %90 : vector<16x16xf32>
    %cst_46 = arith.constant dense<0.000000e+00> : vector<16x8xf32>
    %92 = tpu.matmul %91, %79, %cst_46 {dimension_numbers = #tpu.dot_dimension_numbers<[1], [0], [0], [1], [0, 0, 1, 1], [], []>} : vector<16x16xf32>, vector<16x8xf32>, vector<16x8xf32> -> vector<16x8xf32>
    %93 = tpu.concatenate %29, %50, %71, %92 in 1 : vector<16x8xf32>, vector<16x8xf32>, vector<16x8xf32>, vector<16x8xf32> -> vector<16x32xf32>
    %c0_47 = arith.constant 0 : index
    %c0_48 = arith.constant 0 : index
    %c0_49 = arith.constant 0 : index
    %94 = vector.load %arg3[%c0_47, %c0_48, %c0_49] : memref<1x16x32xf32, #tpu.memory_space<vmem>>, vector<1x16x32xf32>
    %95 = vector.shape_cast %94 : vector<1x16x32xf32> to vector<16x32xf32>
    %96 = vector.shape_cast %93 : vector<16x32xf32> to vector<1x16x32xf32>
    tpu.vector_store %arg3[%c0_47, %c0_48, %c0_49], %96 {strides = array<i32>} : memref<1x16x32xf32, #tpu.memory_space<vmem>>, vector<1x16x32xf32>,
    return
  }
  func.func @transform_0(%arg0: i32) -> (i32, i32, i32) {
    %c0_i32 = arith.constant 0 : i32
    %c0_i32_0 = arith.constant 0 : i32
    %c0_i32_1 = arith.constant 0 : i32
    return %arg0, %c0_i32, %c0_i32_0 : i32, i32, i32
  }
  func.func @transform_1(%arg0: i32) -> (i32, i32, i32) {
    %c0_i32 = arith.constant 0 : i32
    %c0_i32_0 = arith.constant 0 : i32
    %c0_i32_1 = arith.constant 0 : i32
    return %arg0, %c0_i32, %c0_i32_0 : i32, i32, i32
  }
  func.func @transform_2(%arg0: i32) -> (i32, i32, i32) {
    %c0_i32 = arith.constant 0 : i32
    %c0_i32_0 = arith.constant 0 : i32
    %c0_i32_1 = arith.constant 0 : i32
    return %arg0, %c0_i32, %c0_i32_0 : i32, i32, i32
  }
}

module attributes {stable_mosaic.version = 11 : i64} {
  func.func @_ln_linear_kernel(%arg0: i32, %arg1: i32, %arg2: memref<32x32xf32, #tpu.memory_space<vmem>>, %arg3: memref<1x32xf32, #tpu.memory_space<vmem>>, %arg4: memref<1x32xf32, #tpu.memory_space<vmem>>, %arg5: memref<32x128xf32, #tpu.memory_space<vmem>>, %arg6: memref<1x128xf32, #tpu.memory_space<vmem>>, %arg7: memref<32x128xf32, #tpu.memory_space<vmem>>) attributes {dimension_semantics = [#tpu.dimension_semantics<parallel>, #tpu.dimension_semantics<parallel>], iteration_bounds = array<i64: 1, 1>, scalar_prefetch = 0 : i64, scratch_operands = 0 : i64, tpu.core_type = #tpu.core_type<tc>, window_params = [{transform_indices = @transform_0, window_bounds = array<i64: 32, 32>}, {pipeline_mode = #tpu.pipeline_mode<synchronous>, transform_indices = @transform_1, window_bounds = array<i64: 1, 32>}, {pipeline_mode = #tpu.pipeline_mode<synchronous>, transform_indices = @transform_2, window_bounds = array<i64: 1, 32>}, {transform_indices = @transform_3, window_bounds = array<i64: 32, 128>}, {transform_indices = @transform_4, window_bounds = array<i64: 1, 128>}, {transform_indices = @transform_5, window_bounds = array<i64: 32, 128>}]} {
    %c0 = arith.constant 0 : index
    %c0_0 = arith.constant 0 : index
    %0 = vector.load %arg2[%c0, %c0_0] : memref<32x32xf32, #tpu.memory_space<vmem>>, vector<32x32xf32>
    %cst = arith.constant dense<0.000000e+00> : vector<32xf32>
    %1 = vector.multi_reduction <add>, %0, %cst [1] : vector<32x32xf32> to vector<32xf32>
    %2 = vector.shape_cast %1 : vector<32xf32> to vector<32x1xf32>
    %cst_1 = arith.constant 3.200000e+01 : f32
    %3 = vector.broadcast %cst_1 : f32 to vector<32x1xf32>
    %4 = arith.divf %2, %3 : vector<32x1xf32>
    %5 = vector.broadcast %4 : vector<32x1xf32> to vector<32x32xf32>
    %6 = arith.subf %0, %5 : vector<32x32xf32>
    %7 = arith.mulf %6, %6 : vector<32x32xf32>
    %cst_2 = arith.constant dense<0.000000e+00> : vector<32xf32>
    %8 = vector.multi_reduction <add>, %7, %cst_2 [1] : vector<32x32xf32> to vector<32xf32>
    %9 = vector.shape_cast %8 : vector<32xf32> to vector<32x1xf32>
    %cst_3 = arith.constant 3.200000e+01 : f32
    %10 = vector.broadcast %cst_3 : f32 to vector<32x1xf32>
    %11 = arith.divf %9, %10 : vector<32x1xf32>
    %12 = vector.broadcast %4 : vector<32x1xf32> to vector<32x32xf32>
    %13 = arith.subf %0, %12 : vector<32x32xf32>
    %cst_4 = arith.constant 9.99999974E-6 : f32
    %14 = vector.broadcast %cst_4 : f32 to vector<32x1xf32>
    %15 = arith.addf %11, %14 : vector<32x1xf32>
    %16 = math.rsqrt %15 : vector<32x1xf32>
    %17 = vector.broadcast %16 : vector<32x1xf32> to vector<32x32xf32>
    %18 = arith.mulf %13, %17 : vector<32x32xf32>
    %c0_5 = arith.constant 0 : index
    %c0_6 = arith.constant 0 : index
    %19 = vector.load %arg3[%c0_5, %c0_6] : memref<1x32xf32, #tpu.memory_space<vmem>>, vector<1x32xf32>
    %20 = vector.broadcast %19 : vector<1x32xf32> to vector<32x32xf32>
    %21 = arith.mulf %18, %20 : vector<32x32xf32>
    %c0_7 = arith.constant 0 : index
    %c0_8 = arith.constant 0 : index
    %22 = vector.load %arg4[%c0_7, %c0_8] : memref<1x32xf32, #tpu.memory_space<vmem>>, vector<1x32xf32>
    %23 = vector.broadcast %22 : vector<1x32xf32> to vector<32x32xf32>
    %24 = arith.addf %21, %23 : vector<32x32xf32>
    %c0_9 = arith.constant 0 : index
    %c0_10 = arith.constant 0 : index
    %25 = vector.load %arg5[%c0_9, %c0_10] : memref<32x128xf32, #tpu.memory_space<vmem>>, vector<32x128xf32>
    %cst_11 = arith.constant dense<0.000000e+00> : vector<32x128xf32>
    %26 = tpu.matmul %24, %25, %cst_11 {dimension_numbers = #tpu.dot_dimension_numbers<[1], [0], [0], [1], [0, 0, 1, 1], [], []>} : vector<32x32xf32>, vector<32x128xf32>, vector<32x128xf32> -> vector<32x128xf32>
    %c0_12 = arith.constant 0 : index
    %c0_13 = arith.constant 0 : index
    %27 = vector.load %arg6[%c0_12, %c0_13] : memref<1x128xf32, #tpu.memory_space<vmem>>, vector<1x128xf32>
    %28 = vector.broadcast %27 : vector<1x128xf32> to vector<32x128xf32>
    %29 = arith.addf %26, %28 : vector<32x128xf32>
    %cst_14 = arith.constant 5.000000e-01 : f32
    %30 = vector.broadcast %cst_14 : f32 to vector<32x128xf32>
    %31 = arith.mulf %30, %29 : vector<32x128xf32>
    %cst_15 = arith.constant 4.471500e-02 : f32
    %32 = vector.broadcast %cst_15 : f32 to vector<32x128xf32>
    %33 = arith.mulf %32, %29 : vector<32x128xf32>
    %34 = arith.mulf %33, %29 : vector<32x128xf32>
    %35 = arith.mulf %34, %29 : vector<32x128xf32>
    %36 = arith.addf %29, %35 : vector<32x128xf32>
    %cst_16 = arith.constant 0.797884583 : f32
    %37 = vector.broadcast %cst_16 : f32 to vector<32x128xf32>
    %38 = arith.mulf %37, %36 : vector<32x128xf32>
    %39 = math.tanh %38 : vector<32x128xf32>
    %cst_17 = arith.constant 1.000000e+00 : f32
    %40 = vector.broadcast %cst_17 : f32 to vector<32x128xf32>
    %41 = arith.addf %40, %39 : vector<32x128xf32>
    %42 = arith.mulf %31, %41 : vector<32x128xf32>
    %c0_18 = arith.constant 0 : index
    %c0_19 = arith.constant 0 : index
    %43 = vector.load %arg7[%c0_18, %c0_19] : memref<32x128xf32, #tpu.memory_space<vmem>>, vector<32x128xf32>
    tpu.vector_store %arg7[%c0_18, %c0_19], %42 {strides = array<i32>} : memref<32x128xf32, #tpu.memory_space<vmem>>, vector<32x128xf32>,
    return
  }
  func.func @transform_0(%arg0: i32, %arg1: i32) -> (i32, i32) {
    %c0_i32 = arith.constant 0 : i32
    %c0_i32_0 = arith.constant 0 : i32
    return %arg0, %c0_i32 : i32, i32
  }
  func.func @transform_1(%arg0: i32, %arg1: i32) -> (i32, i32) {
    %c0_i32 = arith.constant 0 : i32
    %c0_i32_0 = arith.constant 0 : i32
    %c0_i32_1 = arith.constant 0 : i32
    return %c0_i32, %c0_i32_0 : i32, i32
  }
  func.func @transform_2(%arg0: i32, %arg1: i32) -> (i32, i32) {
    %c0_i32 = arith.constant 0 : i32
    %c0_i32_0 = arith.constant 0 : i32
    %c0_i32_1 = arith.constant 0 : i32
    return %c0_i32, %c0_i32_0 : i32, i32
  }
  func.func @transform_3(%arg0: i32, %arg1: i32) -> (i32, i32) {
    %c0_i32 = arith.constant 0 : i32
    %c0_i32_0 = arith.constant 0 : i32
    return %c0_i32, %arg1 : i32, i32
  }
  func.func @transform_4(%arg0: i32, %arg1: i32) -> (i32, i32) {
    %c0_i32 = arith.constant 0 : i32
    %c0_i32_0 = arith.constant 0 : i32
    return %c0_i32, %arg1 : i32, i32
  }
  func.func @transform_5(%arg0: i32, %arg1: i32) -> (i32, i32) {
    %c0_i32 = arith.constant 0 : i32
    return %arg0, %arg1 : i32, i32
  }
}

module attributes {stable_mosaic.version = 11 : i64} {
  func.func @_linear_kernel(%arg0: i32, %arg1: i32, %arg2: i32, %arg3: memref<32x32xf32, #tpu.memory_space<vmem>>, %arg4: memref<32x32xf32, #tpu.memory_space<vmem>>, %arg5: memref<1x32xf32, #tpu.memory_space<vmem>>, %arg6: memref<32x32xf32, #tpu.memory_space<vmem>>, %arg7: memref<32x32xf32, #tpu.memory_space<vmem>>, %arg8: memref<32x32xf32, #tpu.memory_space<vmem>>) attributes {dimension_semantics = [#tpu.dimension_semantics<parallel>, #tpu.dimension_semantics<parallel>, #tpu.dimension_semantics<arbitrary>], iteration_bounds = array<i64: 1, 1, 1>, scalar_prefetch = 0 : i64, scratch_operands = 1 : i64, tpu.core_type = #tpu.core_type<tc>, window_params = [{transform_indices = @transform_0, window_bounds = array<i64: 32, 32>}, {transform_indices = @transform_1, window_bounds = array<i64: 32, 32>}, {transform_indices = @transform_2, window_bounds = array<i64: 1, 32>}, {transform_indices = @transform_3, window_bounds = array<i64: 32, 32>}, {transform_indices = @transform_4, window_bounds = array<i64: 32, 32>}]} {
    %c0_i32 = arith.constant 0 : i32
    %0 = arith.cmpi eq, %arg2, %c0_i32 : i32
    %1 = arith.extui %0 : i1 to i32
    %c0_i32_0 = arith.constant 0 : i32
    %2 = arith.cmpi ne, %1, %c0_i32_0 : i32
    scf.if %2 {
      %cst_10 = arith.constant 0.000000e+00 : f32
      %12 = vector.broadcast %cst_10 : f32 to vector<32x32xf32>
      %c0_11 = arith.constant 0 : index
      %c0_12 = arith.constant 0 : index
      %13 = vector.load %arg8[%c0_11, %c0_12] : memref<32x32xf32, #tpu.memory_space<vmem>>, vector<32x32xf32>
      tpu.vector_store %arg8[%c0_11, %c0_12], %12 {strides = array<i32>} : memref<32x32xf32, #tpu.memory_space<vmem>>, vector<32x32xf32>,
    } else {
    }
    %c0 = arith.constant 0 : index
    %c0_1 = arith.constant 0 : index
    %3 = vector.load %arg8[%c0, %c0_1] : memref<32x32xf32, #tpu.memory_space<vmem>>, vector<32x32xf32>
    %c0_2 = arith.constant 0 : index
    %c0_3 = arith.constant 0 : index
    %4 = vector.load %arg3[%c0_2, %c0_3] : memref<32x32xf32, #tpu.memory_space<vmem>>, vector<32x32xf32>
    %c0_4 = arith.constant 0 : index
    %c0_5 = arith.constant 0 : index
    %5 = vector.load %arg4[%c0_4, %c0_5] : memref<32x32xf32, #tpu.memory_space<vmem>>, vector<32x32xf32>
    %cst = arith.constant dense<0.000000e+00> : vector<32x32xf32>
    %6 = tpu.matmul %4, %5, %cst {dimension_numbers = #tpu.dot_dimension_numbers<[1], [0], [0], [1], [0, 0, 1, 1], [], []>} : vector<32x32xf32>, vector<32x32xf32>, vector<32x32xf32> -> vector<32x32xf32>
    %7 = arith.addf %3, %6 : vector<32x32xf32>
    %c0_6 = arith.constant 0 : index
    %c0_7 = arith.constant 0 : index
    %8 = vector.load %arg8[%c0_6, %c0_7] : memref<32x32xf32, #tpu.memory_space<vmem>>, vector<32x32xf32>
    tpu.vector_store %arg8[%c0_6, %c0_7], %7 {strides = array<i32>} : memref<32x32xf32, #tpu.memory_space<vmem>>, vector<32x32xf32>,
    %c0_i32_8 = arith.constant 0 : i32
    %9 = arith.cmpi eq, %arg2, %c0_i32_8 : i32
    %10 = arith.extui %9 : i1 to i32
    %c0_i32_9 = arith.constant 0 : i32
    %11 = arith.cmpi ne, %10, %c0_i32_9 : i32
    scf.if %11 {
      %c0_10 = arith.constant 0 : index
      %c0_11 = arith.constant 0 : index
      %12 = vector.load %arg8[%c0_10, %c0_11] : memref<32x32xf32, #tpu.memory_space<vmem>>, vector<32x32xf32>
      %c0_12 = arith.constant 0 : index
      %c0_13 = arith.constant 0 : index
      %13 = vector.load %arg5[%c0_12, %c0_13] : memref<1x32xf32, #tpu.memory_space<vmem>>, vector<1x32xf32>
      %14 = vector.broadcast %13 : vector<1x32xf32> to vector<32x32xf32>
      %15 = arith.addf %12, %14 : vector<32x32xf32>
      %c0_14 = arith.constant 0 : index
      %c0_15 = arith.constant 0 : index
      %16 = vector.load %arg6[%c0_14, %c0_15] : memref<32x32xf32, #tpu.memory_space<vmem>>, vector<32x32xf32>
      %17 = arith.addf %15, %16 : vector<32x32xf32>
      %c0_16 = arith.constant 0 : index
      %c0_17 = arith.constant 0 : index
      %18 = vector.load %arg7[%c0_16, %c0_17] : memref<32x32xf32, #tpu.memory_space<vmem>>, vector<32x32xf32>
      tpu.vector_store %arg7[%c0_16, %c0_17], %17 {strides = array<i32>} : memref<32x32xf32, #tpu.memory_space<vmem>>, vector<32x32xf32>,
    } else {
    }
    return
  }
  func.func @transform_0(%arg0: i32, %arg1: i32, %arg2: i32) -> (i32, i32) {
    %c0_i32 = arith.constant 0 : i32
    return %arg0, %arg2 : i32, i32
  }
  func.func @transform_1(%arg0: i32, %arg1: i32, %arg2: i32) -> (i32, i32) {
    %c0_i32 = arith.constant 0 : i32
    return %arg2, %arg1 : i32, i32
  }
  func.func @transform_2(%arg0: i32, %arg1: i32, %arg2: i32) -> (i32, i32) {
    %c0_i32 = arith.constant 0 : i32
    %c0_i32_0 = arith.constant 0 : i32
    return %c0_i32, %arg1 : i32, i32
  }
  func.func @transform_3(%arg0: i32, %arg1: i32, %arg2: i32) -> (i32, i32) {
    %c0_i32 = arith.constant 0 : i32
    return %arg0, %arg1 : i32, i32
  }
  func.func @transform_4(%arg0: i32, %arg1: i32, %arg2: i32) -> (i32, i32) {
    %c0_i32 = arith.constant 0 : i32
    return %arg0, %arg1 : i32, i32
  }
}

module attributes {stable_mosaic.version = 11 : i64} {
  func.func @_layernorm_kernel(%arg0: i32, %arg1: memref<32x32xf32, #tpu.memory_space<vmem>>, %arg2: memref<1x32xf32, #tpu.memory_space<vmem>>, %arg3: memref<1x32xf32, #tpu.memory_space<vmem>>, %arg4: memref<32x32xf32, #tpu.memory_space<vmem>>) attributes {dimension_semantics = [#tpu.dimension_semantics<parallel>], iteration_bounds = array<i64: 1>, scalar_prefetch = 0 : i64, scratch_operands = 0 : i64, tpu.core_type = #tpu.core_type<tc>, window_params = [{transform_indices = @transform_0, window_bounds = array<i64: 32, 32>}, {pipeline_mode = #tpu.pipeline_mode<synchronous>, transform_indices = @transform_1, window_bounds = array<i64: 1, 32>}, {pipeline_mode = #tpu.pipeline_mode<synchronous>, transform_indices = @transform_2, window_bounds = array<i64: 1, 32>}, {transform_indices = @transform_3, window_bounds = array<i64: 32, 32>}]} {
    %c0 = arith.constant 0 : index
    %c0_0 = arith.constant 0 : index
    %0 = vector.load %arg1[%c0, %c0_0] : memref<32x32xf32, #tpu.memory_space<vmem>>, vector<32x32xf32>
    %cst = arith.constant dense<0.000000e+00> : vector<32xf32>
    %1 = vector.multi_reduction <add>, %0, %cst [1] : vector<32x32xf32> to vector<32xf32>
    %2 = vector.shape_cast %1 : vector<32xf32> to vector<32x1xf32>
    %cst_1 = arith.constant 3.200000e+01 : f32
    %3 = vector.broadcast %cst_1 : f32 to vector<32x1xf32>
    %4 = arith.divf %2, %3 : vector<32x1xf32>
    %5 = vector.broadcast %4 : vector<32x1xf32> to vector<32x32xf32>
    %6 = arith.subf %0, %5 : vector<32x32xf32>
    %7 = arith.mulf %6, %6 : vector<32x32xf32>
    %cst_2 = arith.constant dense<0.000000e+00> : vector<32xf32>
    %8 = vector.multi_reduction <add>, %7, %cst_2 [1] : vector<32x32xf32> to vector<32xf32>
    %9 = vector.shape_cast %8 : vector<32xf32> to vector<32x1xf32>
    %cst_3 = arith.constant 3.200000e+01 : f32
    %10 = vector.broadcast %cst_3 : f32 to vector<32x1xf32>
    %11 = arith.divf %9, %10 : vector<32x1xf32>
    %12 = vector.broadcast %4 : vector<32x1xf32> to vector<32x32xf32>
    %13 = arith.subf %0, %12 : vector<32x32xf32>
    %cst_4 = arith.constant 9.99999974E-6 : f32
    %14 = vector.broadcast %cst_4 : f32 to vector<32x1xf32>
    %15 = arith.addf %11, %14 : vector<32x1xf32>
    %16 = math.rsqrt %15 : vector<32x1xf32>
    %17 = vector.broadcast %16 : vector<32x1xf32> to vector<32x32xf32>
    %18 = arith.mulf %13, %17 : vector<32x32xf32>
    %c0_5 = arith.constant 0 : index
    %c0_6 = arith.constant 0 : index
    %19 = vector.load %arg2[%c0_5, %c0_6] : memref<1x32xf32, #tpu.memory_space<vmem>>, vector<1x32xf32>
    %20 = vector.broadcast %19 : vector<1x32xf32> to vector<32x32xf32>
    %21 = arith.mulf %18, %20 : vector<32x32xf32>
    %c0_7 = arith.constant 0 : index
    %c0_8 = arith.constant 0 : index
    %22 = vector.load %arg3[%c0_7, %c0_8] : memref<1x32xf32, #tpu.memory_space<vmem>>, vector<1x32xf32>
    %23 = vector.broadcast %22 : vector<1x32xf32> to vector<32x32xf32>
    %24 = arith.addf %21, %23 : vector<32x32xf32>
    %c0_9 = arith.constant 0 : index
    %c0_10 = arith.constant 0 : index
    %25 = vector.load %arg4[%c0_9, %c0_10] : memref<32x32xf32, #tpu.memory_space<vmem>>, vector<32x32xf32>
    tpu.vector_store %arg4[%c0_9, %c0_10], %24 {strides = array<i32>} : memref<32x32xf32, #tpu.memory_space<vmem>>, vector<32x32xf32>,
    return
  }
  func.func @transform_0(%arg0: i32) -> (i32, i32) {
    %c0_i32 = arith.constant 0 : i32
    %c0_i32_0 = arith.constant 0 : i32
    return %arg0, %c0_i32 : i32, i32
  }
  func.func @transform_1(%arg0: i32) -> (i32, i32) {
    %c0_i32 = arith.constant 0 : i32
    %c0_i32_0 = arith.constant 0 : i32
    %c0_i32_1 = arith.constant 0 : i32
    return %c0_i32, %c0_i32_0 : i32, i32
  }
  func.func @transform_2(%arg0: i32) -> (i32, i32) {
    %c0_i32 = arith.constant 0 : i32
    %c0_i32_0 = arith.constant 0 : i32
    %c0_i32_1 = arith.constant 0 : i32
    return %c0_i32, %c0_i32_0 : i32, i32
  }
  func.func @transform_3(%arg0: i32) -> (i32, i32) {
    %c0_i32 = arith.constant 0 : i32
    %c0_i32_0 = arith.constant 0 : i32
    return %arg0, %c0_i32 : i32, i32
  }
}

module attributes {stable_mosaic.version = 11 : i64} {
  func.func @_linear_kernel(%arg0: i32, %arg1: i32, %arg2: i32, %arg3: memref<32x128xf32, #tpu.memory_space<vmem>>, %arg4: memref<128x32xf32, #tpu.memory_space<vmem>>, %arg5: memref<1x32xf32, #tpu.memory_space<vmem>>, %arg6: memref<32x32xf32, #tpu.memory_space<vmem>>, %arg7: memref<32x32xf32, #tpu.memory_space<vmem>>, %arg8: memref<32x32xf32, #tpu.memory_space<vmem>>) attributes {dimension_semantics = [#tpu.dimension_semantics<parallel>, #tpu.dimension_semantics<parallel>, #tpu.dimension_semantics<arbitrary>], iteration_bounds = array<i64: 1, 1, 1>, scalar_prefetch = 0 : i64, scratch_operands = 1 : i64, tpu.core_type = #tpu.core_type<tc>, window_params = [{transform_indices = @transform_0, window_bounds = array<i64: 32, 128>}, {transform_indices = @transform_1, window_bounds = array<i64: 128, 32>}, {transform_indices = @transform_2, window_bounds = array<i64: 1, 32>}, {transform_indices = @transform_3, window_bounds = array<i64: 32, 32>}, {transform_indices = @transform_4, window_bounds = array<i64: 32, 32>}]} {
    %c0_i32 = arith.constant 0 : i32
    %0 = arith.cmpi eq, %arg2, %c0_i32 : i32
    %1 = arith.extui %0 : i1 to i32
    %c0_i32_0 = arith.constant 0 : i32
    %2 = arith.cmpi ne, %1, %c0_i32_0 : i32
    scf.if %2 {
      %cst_10 = arith.constant 0.000000e+00 : f32
      %12 = vector.broadcast %cst_10 : f32 to vector<32x32xf32>
      %c0_11 = arith.constant 0 : index
      %c0_12 = arith.constant 0 : index
      %13 = vector.load %arg8[%c0_11, %c0_12] : memref<32x32xf32, #tpu.memory_space<vmem>>, vector<32x32xf32>
      tpu.vector_store %arg8[%c0_11, %c0_12], %12 {strides = array<i32>} : memref<32x32xf32, #tpu.memory_space<vmem>>, vector<32x32xf32>,
    } else {
    }
    %c0 = arith.constant 0 : index
    %c0_1 = arith.constant 0 : index
    %3 = vector.load %arg8[%c0, %c0_1] : memref<32x32xf32, #tpu.memory_space<vmem>>, vector<32x32xf32>
    %c0_2 = arith.constant 0 : index
    %c0_3 = arith.constant 0 : index
    %4 = vector.load %arg3[%c0_2, %c0_3] : memref<32x128xf32, #tpu.memory_space<vmem>>, vector<32x128xf32>
    %c0_4 = arith.constant 0 : index
    %c0_5 = arith.constant 0 : index
    %5 = vector.load %arg4[%c0_4, %c0_5] : memref<128x32xf32, #tpu.memory_space<vmem>>, vector<128x32xf32>
    %cst = arith.constant dense<0.000000e+00> : vector<32x32xf32>
    %6 = tpu.matmul %4, %5, %cst {dimension_numbers = #tpu.dot_dimension_numbers<[1], [0], [0], [1], [0, 0, 1, 1], [], []>} : vector<32x128xf32>, vector<128x32xf32>, vector<32x32xf32> -> vector<32x32xf32>
    %7 = arith.addf %3, %6 : vector<32x32xf32>
    %c0_6 = arith.constant 0 : index
    %c0_7 = arith.constant 0 : index
    %8 = vector.load %arg8[%c0_6, %c0_7] : memref<32x32xf32, #tpu.memory_space<vmem>>, vector<32x32xf32>
    tpu.vector_store %arg8[%c0_6, %c0_7], %7 {strides = array<i32>} : memref<32x32xf32, #tpu.memory_space<vmem>>, vector<32x32xf32>,
    %c0_i32_8 = arith.constant 0 : i32
    %9 = arith.cmpi eq, %arg2, %c0_i32_8 : i32
    %10 = arith.extui %9 : i1 to i32
    %c0_i32_9 = arith.constant 0 : i32
    %11 = arith.cmpi ne, %10, %c0_i32_9 : i32
    scf.if %11 {
      %c0_10 = arith.constant 0 : index
      %c0_11 = arith.constant 0 : index
      %12 = vector.load %arg8[%c0_10, %c0_11] : memref<32x32xf32, #tpu.memory_space<vmem>>, vector<32x32xf32>
      %c0_12 = arith.constant 0 : index
      %c0_13 = arith.constant 0 : index
      %13 = vector.load %arg5[%c0_12, %c0_13] : memref<1x32xf32, #tpu.memory_space<vmem>>, vector<1x32xf32>
      %14 = vector.broadcast %13 : vector<1x32xf32> to vector<32x32xf32>
      %15 = arith.addf %12, %14 : vector<32x32xf32>
      %c0_14 = arith.constant 0 : index
      %c0_15 = arith.constant 0 : index
      %16 = vector.load %arg6[%c0_14, %c0_15] : memref<32x32xf32, #tpu.memory_space<vmem>>, vector<32x32xf32>
      %17 = arith.addf %15, %16 : vector<32x32xf32>
      %c0_16 = arith.constant 0 : index
      %c0_17 = arith.constant 0 : index
      %18 = vector.load %arg7[%c0_16, %c0_17] : memref<32x32xf32, #tpu.memory_space<vmem>>, vector<32x32xf32>
      tpu.vector_store %arg7[%c0_16, %c0_17], %17 {strides = array<i32>} : memref<32x32xf32, #tpu.memory_space<vmem>>, vector<32x32xf32>,
    } else {
    }
    return
  }
  func.func @transform_0(%arg0: i32, %arg1: i32, %arg2: i32) -> (i32, i32) {
    %c0_i32 = arith.constant 0 : i32
    return %arg0, %arg2 : i32, i32
  }
  func.func @transform_1(%arg0: i32, %arg1: i32, %arg2: i32) -> (i32, i32) {
    %c0_i32 = arith.constant 0 : i32
    return %arg2, %arg1 : i32, i32
  }
  func.func @transform_2(%arg0: i32, %arg1: i32, %arg2: i32) -> (i32, i32) {
    %c0_i32 = arith.constant 0 : i32
    %c0_i32_0 = arith.constant 0 : i32
    return %c0_i32, %arg1 : i32, i32
  }
  func.func @transform_3(%arg0: i32, %arg1: i32, %arg2: i32) -> (i32, i32) {
    %c0_i32 = arith.constant 0 : i32
    return %arg0, %arg1 : i32, i32
  }
  func.func @transform_4(%arg0: i32, %arg1: i32, %arg2: i32) -> (i32, i32) {
    %c0_i32 = arith.constant 0 : i32
    return %arg0, %arg1 : i32, i32
  }
}

module attributes {stable_mosaic.version = 11 : i64} {
  func.func @_linear_kernel(%arg0: i32, %arg1: i32, %arg2: i32, %arg3: memref<32x32xf32, #tpu.memory_space<vmem>>, %arg4: memref<64x32xf32, #tpu.memory_space<vmem>>, %arg5: memref<32x64xf32, #tpu.memory_space<vmem>>, %arg6: memref<32x64xf32, #tpu.memory_space<vmem>>) attributes {dimension_semantics = [#tpu.dimension_semantics<parallel>, #tpu.dimension_semantics<parallel>, #tpu.dimension_semantics<arbitrary>], iteration_bounds = array<i64: 1, 1, 1>, scalar_prefetch = 0 : i64, scratch_operands = 1 : i64, tpu.core_type = #tpu.core_type<tc>, window_params = [{transform_indices = @transform_0, window_bounds = array<i64: 32, 32>}, {transform_indices = @transform_1, window_bounds = array<i64: 64, 32>}, {transform_indices = @transform_2, window_bounds = array<i64: 32, 64>}]} {
    %c0_i32 = arith.constant 0 : i32
    %0 = arith.cmpi eq, %arg2, %c0_i32 : i32
    %1 = arith.extui %0 : i1 to i32
    %c0_i32_0 = arith.constant 0 : i32
    %2 = arith.cmpi ne, %1, %c0_i32_0 : i32
    scf.if %2 {
      %cst_10 = arith.constant 0.000000e+00 : f32
      %12 = vector.broadcast %cst_10 : f32 to vector<32x64xf32>
      %c0_11 = arith.constant 0 : index
      %c0_12 = arith.constant 0 : index
      %13 = vector.load %arg6[%c0_11, %c0_12] : memref<32x64xf32, #tpu.memory_space<vmem>>, vector<32x64xf32>
      tpu.vector_store %arg6[%c0_11, %c0_12], %12 {strides = array<i32>} : memref<32x64xf32, #tpu.memory_space<vmem>>, vector<32x64xf32>,
    } else {
    }
    %c0 = arith.constant 0 : index
    %c0_1 = arith.constant 0 : index
    %3 = vector.load %arg6[%c0, %c0_1] : memref<32x64xf32, #tpu.memory_space<vmem>>, vector<32x64xf32>
    %c0_2 = arith.constant 0 : index
    %c0_3 = arith.constant 0 : index
    %4 = vector.load %arg3[%c0_2, %c0_3] : memref<32x32xf32, #tpu.memory_space<vmem>>, vector<32x32xf32>
    %c0_4 = arith.constant 0 : index
    %c0_5 = arith.constant 0 : index
    %5 = vector.load %arg4[%c0_4, %c0_5] : memref<64x32xf32, #tpu.memory_space<vmem>>, vector<64x32xf32>
    %cst = arith.constant dense<0.000000e+00> : vector<32x64xf32>
    %6 = tpu.matmul %4, %5, %cst {dimension_numbers = #tpu.dot_dimension_numbers<[1], [1], [0], [0], [0, 0, 1, 0], [], []>} : vector<32x32xf32>, vector<64x32xf32>, vector<32x64xf32> -> vector<32x64xf32>
    %7 = arith.addf %3, %6 : vector<32x64xf32>
    %c0_6 = arith.constant 0 : index
    %c0_7 = arith.constant 0 : index
    %8 = vector.load %arg6[%c0_6, %c0_7] : memref<32x64xf32, #tpu.memory_space<vmem>>, vector<32x64xf32>
    tpu.vector_store %arg6[%c0_6, %c0_7], %7 {strides = array<i32>} : memref<32x64xf32, #tpu.memory_space<vmem>>, vector<32x64xf32>,
    %c0_i32_8 = arith.constant 0 : i32
    %9 = arith.cmpi eq, %arg2, %c0_i32_8 : i32
    %10 = arith.extui %9 : i1 to i32
    %c0_i32_9 = arith.constant 0 : i32
    %11 = arith.cmpi ne, %10, %c0_i32_9 : i32
    scf.if %11 {
      %c0_10 = arith.constant 0 : index
      %c0_11 = arith.constant 0 : index
      %12 = vector.load %arg6[%c0_10, %c0_11] : memref<32x64xf32, #tpu.memory_space<vmem>>, vector<32x64xf32>
      %c0_12 = arith.constant 0 : index
      %c0_13 = arith.constant 0 : index
      %13 = vector.load %arg5[%c0_12, %c0_13] : memref<32x64xf32, #tpu.memory_space<vmem>>, vector<32x64xf32>
      tpu.vector_store %arg5[%c0_12, %c0_13], %12 {strides = array<i32>} : memref<32x64xf32, #tpu.memory_space<vmem>>, vector<32x64xf32>,
    } else {
    }
    return
  }
  func.func @transform_0(%arg0: i32, %arg1: i32, %arg2: i32) -> (i32, i32) {
    %c0_i32 = arith.constant 0 : i32
    return %arg0, %arg2 : i32, i32
  }
  func.func @transform_1(%arg0: i32, %arg1: i32, %arg2: i32) -> (i32, i32) {
    %c0_i32 = arith.constant 0 : i32
    return %arg1, %arg2 : i32, i32
  }
  func.func @transform_2(%arg0: i32, %arg1: i32, %arg2: i32) -> (i32, i32) {
    %c0_i32 = arith.constant 0 : i32
    return %arg0, %arg1 : i32, i32
  }
}

</mosaic_0001>

<bundles_post_ra>
// kernel: clip_caption_forward.15
= control target key start
LH: loop header
LB: loop body
LE: loop exit
PB: predicated region body
PF: predicated region fallthrough
CT: control target
= control target key end

     0   :  { %8 = vsyncpa [#allocation4], 0  ;;  %s394_s0 = inlined_call_operand.hbm [shape: f32[2,64], index: 0, kind: input, shape index: {}]   ;;  %s395_s1 = inlined_call_operand.hbm [shape: f32[64,128], index: 1, kind: input, shape index: {}]   ;;  %s396_s2 = inlined_call_operand.hbm [shape: f32[1,128], index: 2, kind: input, shape index: {}]   ;;  %s397_s3 = inlined_call_operand.hbm [shape: f32[2,128], index: 3, kind: output, shape index: {}]  }
   0x1   :  { %9 = vsyncpa [#allocation7], 0 }
   0x2   :  { %10 = vsyncpa [#allocation5], 0  ;;  %s317_s12 = smov [#allocation6]   ;;  %s223_s16 = scalar_lea.hbm %s395_s1, 1024 }
   0x3   :  { %s26_s13 = sshll.u32 %s317_s12, 4  ;;  %p224_p0 = scmp.ne.s32.totalorder %s395_s1, %s223_s16  ;;  %s27_s13 = int_to_ptr.vmem [resolvable:$true] %s26_s13 }
   0x4   :  { %p227_p1 = scmp.lt.u32.totalorder %s223_s16, %s395_s1 }
   0x6   :  { %p229_p2 = pnand %p227_p1, %p224_p0 }
   0x8   :  { %232 = shalt.err (!%p229_p2)
}
   0x9   :  { %s233_s21 = scalar_lea.vmem %s27_s13, 1024  ;;  %p238_p4 = scmp.lt.s32.totalorder %s27_s13, %s27_s13 }
   0xa   :  { %p234_p3 = scmp.ne.s32.totalorder %s27_s13, %s233_s21  ;;  %p239_p5 = scmp.lt.s32.totalorder %s233_s21, %s233_s21 }
   0xc   :  { %p240_p6 = por %p239_p5, %p238_p4 }
   0xe   :  { %p241_p7 = pnand %p240_p6, %p234_p3 }
  0x10   :  { %244 = shalt.err (!%p241_p7)
}
  0x11   :  { %s318_s22 = smov 128   ;;  %s319_s23 = smov 8  }
  0x12   :  { %32 = dma.hbm_to_vmem [thread:$0]  %s395_s1, 1024, %s27_s13, [#allocation7], %s318_s22, %s318_s22, %s319_s23  }
  0x13   :  { %s320_s26 = smov [#allocation3]   ;;  %s321_s28 = smov [#allocation8]  }
  0x14   :  { %s17_s27 = sshll.u32 %s320_s26, 4  ;;  %s39_s29 = sshll.u32 %s321_s28, 4  ;;  %s18_s27 = int_to_ptr.vmem [resolvable:$true] %s17_s27  ;;  %s40_s29 = int_to_ptr.vmem [resolvable:$true] %s39_s29 }
  0x15   :  { %s245_s5 = scalar_lea.hbm %s394_s0, 32 }
  0x16   :  { %p246_p8 = scmp.ne.s32.totalorder %s394_s0, %s245_s5  ;;  %p249_p9 = scmp.lt.u32.totalorder %s245_s5, %s394_s0 }
  0x18   :  { %p251_p10 = pnand %p249_p9, %p246_p8 }
  0x1a   :  { %254 = shalt.err (!%p251_p10)
}
  0x1b   :  { %s255_s1 = scalar_lea.vmem %s18_s27, 32  ;;  %p260_p12 = scmp.lt.s32.totalorder %s18_s27, %s18_s27 }
  0x1c   :  { %p256_p11 = scmp.ne.s32.totalorder %s18_s27, %s255_s1  ;;  %p261_p13 = scmp.lt.s32.totalorder %s255_s1, %s255_s1 }
  0x1e   :  { %p262_p0 = por %p261_p13, %p260_p12 }
  0x20   :  { %p263_p1 = pnand %p262_p0, %p256_p11 }
  0x22   :  { %266 = shalt.err (!%p263_p1)
}
  0x23   :  { %20 = dma.hbm_to_vmem [thread:$0]  %s394_s0, 32, %s18_s27, [#allocation4]  }
  0x24   :  { %s267_s14 = scalar_lea.hbm %s396_s2, 16 }
  0x25   :  { %p268_p2 = scmp.ne.s32.totalorder %s396_s2, %s267_s14  ;;  %p271_p3 = scmp.lt.u32.totalorder %s267_s14, %s396_s2 }
  0x27   :  { %p273_p4 = pnand %p271_p3, %p268_p2 }
  0x29   :  { %276 = shalt.err (!%p273_p4)
}
  0x2a   :  { %s277_s19 = scalar_lea.vmem %s40_s29, 16  ;;  %s281_s20 = scalar_lea.vmem %s40_s29, 32 }
  0x2b   :  { %p278_p5 = scmp.ne.s32.totalorder %s40_s29, %s277_s19  ;;  %p282_p6 = scmp.lt.s32.totalorder %s40_s29, %s40_s29 }
  0x2c   :  { %p283_p7 = scmp.lt.s32.totalorder %s281_s20, %s277_s19 }
  0x2e   :  { %p284_p8 = por %p283_p7, %p282_p6 }
  0x30   :  { %p285_p9 = pnand %p284_p8, %p278_p5 }
  0x32   :  { %288 = shalt.err (!%p285_p9)
}
  0x33   :  { %42 = dma.hbm_to_vmem [thread:$0]  %s396_s2, 16, %s40_s29, [#allocation7]  }
  0x34   :  { %311 = dma.done.wait [#allocation4], 32  }
  0x35   :  { %312 = vsyncadd [#allocation4], 4294967264 }
  0x36   :  { %313 = dma.done.wait [#allocation7], 1040  }
  0x37   :  { %314 = vsyncadd [#allocation7], 4294966256  ;;  %v322_v0 = vmov 0.0|0.0   ;;  %v323_v1 = vmov 0.0   ;;  %vm324_vm0 = vmmov 0   ;;  %v59_v2 = vld [vmem:[#allocation6] sm:$0xff] }
  0x38   :  { %202 = vmatprep.subr.bf16.mxu0 %v322_v0  ;;  %56 = vst [vmem:[#allocation2] sm:$0x3] %v323_v1  ;;  %199 = vmatprep.mubr.msk.f32.mxu0 %vm324_vm0, %v323_v1  ;;  %v60_v3 = vld [vmem:[#allocation6 + $0x8] sm:$0xff]  ;;  %v61_v4 = vld [vmem:[#allocation6 + $0x10] sm:$0xff]  ;;  %v62_v6 = vld [vmem:[#allocation6 + $0x18] sm:$0xff]  ;;  %vm67_vm1 = vcmask 523264  }
  0x39   :  { %v203_v5 = vpack.c.bf16 %v60_v3, %v59_v2  ;;  %v206_v7 = vpack.c.bf16 %v62_v6, %v61_v4  ;;  %v63_v8 = vld [vmem:[#allocation6 + $0x20] sm:$0xff]  ;;  %v64_v9 = vld [vmem:[#allocation6 + $0x28] sm:$0xff]  ;;  %v65_v11 = vld [vmem:[#allocation6 + $0x30] sm:$0xff]  ;;  %s325_s2 = smov [#allocation9]  }
  0x3a   :  { %v209_v10 = vpack.c.bf16 %v64_v9, %v63_v8  ;;  %v66_v12 = vld [vmem:[#allocation6 + $0x38] sm:$0xff]  ;;  %v173_v19 = vld [vmem:[#allocation8] ss:$0 sm:$0xff]  ;;  %s162_s22 = sshll.u32 %s325_s2, 4  ;;  %s163_s22 = int_to_ptr.vmem [resolvable:$true] %s162_s22 }
  0x3b   :  { %204 = vmatpush3.bf16.msra.mxu0 %v203_v5  ;;  %v212_v13 = vpack.c.bf16 %v66_v12, %v65_v11  ;;  %v58_v14 = vld [vmem:[#allocation3] sm:$0x3]  ;;  %s289_s23 = scalar_lea.vmem %s163_s22, 32  ;;  %p294_p11 = scmp.lt.s32.totalorder %s163_s22, %s163_s22 }
  0x3c   :  { %205 = vmatprep.subr.bf16.mxu0 %v322_v0  ;;  %p290_p10 = scmp.ne.s32.totalorder %s163_s22, %s289_s23  ;;  %p295_p12 = scmp.lt.s32.totalorder %s289_s23, %s289_s23 }
  0x3e   :  { %p296_p13 = por %p295_p12, %p294_p11 }
  0x3f   :  { %207 = vmatpush3.bf16.msra.mxu0 %v206_v7  ;;  %v57_v15 = vld [vmem:[#allocation2] sm:$0x3] }
  0x40   :  { %208 = vmatprep.subr.bf16.mxu0 %v322_v0  ;;  %p297_p0 = pnand %p296_p13, %p290_p10 }
  0x43   :  { %210 = vmatpush3.bf16.msra.mxu0 %v209_v10 }
  0x44   :  { %211 = vmatprep.subr.bf16.mxu0 %v322_v0 }
  0x47   :  { %213 = vmatpush3.bf16.msra.mxu0 %v212_v13 }
  0x4a   :  { %200 = vmatmul.mubr.msk.f32.vlgmr.msra.gmra.mrb[0].mxu0 %vm67_vm1, %v58_v14 }
 0x11d   :  { %v137_v16 = vpop.f32.mrb[0].mxu0 }
 0x11e   :  { %v141_v17 = vadd.f32 %v137_v16, %v57_v15  ;;  %v201_v18 = vpop.f32.mrb[1].mxu0 }
 0x120   :  { %142 = vst [vmem:[#allocation2] sm:$0x3] %v141_v17 }
 0x127   :  { %v146_v20 = vld [vmem:[#allocation2] sm:$0x3] }
 0x128   :  { %v154_v21 = vadd.f32 %v173_v19, %v146_v20 }
 0x12a   :  { %155 = vst [vmem:[#allocation9] sm:$0x3] %v154_v21 }
 0x12b   :  { %300 = shalt.err (!%p297_p0)
}
 0x12c   :  { %s301_s26 = scalar_lea.hbm %s397_s3, 32 }
 0x12d   :  { %p302_p1 = scmp.ne.s32.totalorder %s397_s3, %s301_s26  ;;  %p305_p2 = scmp.lt.u32.totalorder %s301_s26, %s397_s3 }
 0x12f   :  { %p307_p3 = pnand %p305_p2, %p302_p1 }
 0x131   :  { %310 = shalt.err (!%p307_p3)
}
 0x132   :  { %165 = dma.vmem_to_hbm [thread:$0]  %s163_s22, 32, %s397_s3, [#allocation5]  }
 0x133   :  { %315 = dma.done.wait [#allocation5], 32  }
 0x134   :  { %316 = vsyncadd [#allocation5], 4294967264 }
 0x135   :  { %169 = vsyncpa [#allocation4], 1 }
 0x136   :  { %170 = vsyncpa [#allocation7], 1 }
 0x137   :  { %171 = vsyncpa [#allocation5], 1 }

// kernel: clip_caption_forward.14
= control target key start
LH: loop header
LB: loop body
LE: loop exit
PB: predicated region body
PF: predicated region fallthrough
CT: control target
= control target key end

     0   :  { %8 = vsyncpa [#allocation4], 0  ;;  %s369_s0 = inlined_call_operand.hbm [shape: f32[2,16], index: 0, kind: input, shape index: {}]   ;;  %s370_s1 = inlined_call_operand.hbm [shape: f32[16,64], index: 1, kind: input, shape index: {}]   ;;  %s371_s2 = inlined_call_operand.hbm [shape: f32[1,64], index: 2, kind: input, shape index: {}]   ;;  %s372_s3 = inlined_call_operand.hbm [shape: f32[2,64], index: 3, kind: output, shape index: {}]  }
   0x1   :  { %9 = vsyncpa [#allocation7], 0 }
   0x2   :  { %10 = vsyncpa [#allocation5], 0  ;;  %s289_s12 = smov [#allocation6]   ;;  %s195_s16 = scalar_lea.hbm %s370_s1, 256 }
   0x3   :  { %s26_s13 = sshll.u32 %s289_s12, 4  ;;  %p196_p0 = scmp.ne.s32.totalorder %s370_s1, %s195_s16  ;;  %s27_s13 = int_to_ptr.vmem [resolvable:$true] %s26_s13 }
   0x4   :  { %p199_p1 = scmp.lt.u32.totalorder %s195_s16, %s370_s1 }
   0x6   :  { %p201_p2 = pnand %p199_p1, %p196_p0 }
   0x8   :  { %204 = shalt.err (!%p201_p2)
}
   0x9   :  { %s205_s21 = scalar_lea.vmem %s27_s13, 256  ;;  %p210_p4 = scmp.lt.s32.totalorder %s27_s13, %s27_s13 }
   0xa   :  { %p206_p3 = scmp.ne.s32.totalorder %s27_s13, %s205_s21  ;;  %p211_p5 = scmp.lt.s32.totalorder %s205_s21, %s205_s21 }
   0xc   :  { %p212_p6 = por %p211_p5, %p210_p4 }
   0xe   :  { %p213_p7 = pnand %p212_p6, %p206_p3 }
  0x10   :  { %216 = shalt.err (!%p213_p7)
}
  0x11   :  { %s290_s22 = smov 128   ;;  %s291_s23 = smov 8  }
  0x12   :  { %32 = dma.hbm_to_vmem [thread:$0]  %s370_s1, 256, %s27_s13, [#allocation7], %s290_s22, %s290_s22, %s291_s23  }
  0x13   :  { %s292_s26 = smov [#allocation3]   ;;  %s293_s28 = smov [#allocation8]  }
  0x14   :  { %s17_s27 = sshll.u32 %s292_s26, 4  ;;  %s39_s29 = sshll.u32 %s293_s28, 4  ;;  %s18_s27 = int_to_ptr.vmem [resolvable:$true] %s17_s27  ;;  %s40_s29 = int_to_ptr.vmem [resolvable:$true] %s39_s29 }
  0x15   :  { %s217_s5 = scalar_lea.hbm %s369_s0, 32 }
  0x16   :  { %p218_p8 = scmp.ne.s32.totalorder %s369_s0, %s217_s5  ;;  %p221_p9 = scmp.lt.u32.totalorder %s217_s5, %s369_s0 }
  0x18   :  { %p223_p10 = pnand %p221_p9, %p218_p8 }
  0x1a   :  { %226 = shalt.err (!%p223_p10)
}
  0x1b   :  { %s227_s1 = scalar_lea.vmem %s18_s27, 32  ;;  %p232_p12 = scmp.lt.s32.totalorder %s18_s27, %s18_s27 }
  0x1c   :  { %p228_p11 = scmp.ne.s32.totalorder %s18_s27, %s227_s1  ;;  %p233_p13 = scmp.lt.s32.totalorder %s227_s1, %s227_s1 }
  0x1e   :  { %p234_p0 = por %p233_p13, %p232_p12 }
  0x20   :  { %p235_p1 = pnand %p234_p0, %p228_p11 }
  0x22   :  { %238 = shalt.err (!%p235_p1)
}
  0x23   :  { %20 = dma.hbm_to_vmem [thread:$0]  %s369_s0, 32, %s18_s27, [#allocation4]  }
  0x24   :  { %s239_s14 = scalar_lea.hbm %s371_s2, 16 }
  0x25   :  { %p240_p2 = scmp.ne.s32.totalorder %s371_s2, %s239_s14  ;;  %p243_p3 = scmp.lt.u32.totalorder %s239_s14, %s371_s2 }
  0x27   :  { %p245_p4 = pnand %p243_p3, %p240_p2 }
  0x29   :  { %248 = shalt.err (!%p245_p4)
}
  0x2a   :  { %s249_s19 = scalar_lea.vmem %s40_s29, 16  ;;  %s253_s20 = scalar_lea.vmem %s40_s29, 32 }
  0x2b   :  { %p250_p5 = scmp.ne.s32.totalorder %s40_s29, %s249_s19  ;;  %p254_p6 = scmp.lt.s32.totalorder %s40_s29, %s40_s29 }
  0x2c   :  { %p255_p7 = scmp.lt.s32.totalorder %s253_s20, %s249_s19 }
  0x2e   :  { %p256_p8 = por %p255_p7, %p254_p6 }
  0x30   :  { %p257_p9 = pnand %p256_p8, %p250_p5 }
  0x32   :  { %260 = shalt.err (!%p257_p9)
}
  0x33   :  { %42 = dma.hbm_to_vmem [thread:$0]  %s371_s2, 16, %s40_s29, [#allocation7]  }
  0x34   :  { %283 = dma.done.wait [#allocation4], 32  }
  0x35   :  { %284 = vsyncadd [#allocation4], 4294967264 }
  0x36   :  { %285 = dma.done.wait [#allocation7], 272  }
  0x37   :  { %286 = vsyncadd [#allocation7], 4294967024  ;;  %vm56_vm0 = vcmask 517120   ;;  %v294_v0 = vmov 0.0|0.0   ;;  %v295_v1 = vmov 0.0   ;;  %vm296_vm1 = vmmov 0  }
  0x38   :  { %181 = vmatprep.subr.bf16.mxu0 %v294_v0  ;;  %57 = vst.msk [vmem:[#allocation2] sm:$0x3] %vm56_vm0, %v295_v1  ;;  %178 = vmatprep.mubr.msk.f32.mxu0 %vm296_vm1, %v295_v1  ;;  %v60_v2 = vld [vmem:[#allocation6] sm:$0xff]  ;;  %v61_v3 = vld [vmem:[#allocation6 + $0x8] sm:$0xff]  ;;  %v59_v5 = vld [vmem:[#allocation3] sm:$0x3] }
  0x39   :  { %v182_v4 = vpack.c.bf16 %v61_v3, %v60_v2  ;;  %vm62_vm2 = vcmask 130048   ;;  %v170_v10 = vld [vmem:[#allocation8] ss:$0 sm:$0xff]  ;;  %s297_s2 = smov [#allocation9]  }
  0x3a   :  { %s159_s22 = sshll.u32 %s297_s2, 4  ;;  %s160_s22 = int_to_ptr.vmem [resolvable:$true] %s159_s22 }
  0x3b   :  { %183 = vmatpush3.bf16.msra.mxu0 %v182_v4  ;;  %s261_s23 = scalar_lea.vmem %s160_s22, 32  ;;  %p266_p11 = scmp.lt.s32.totalorder %s160_s22, %s160_s22 }
  0x3c   :  { %p262_p10 = scmp.ne.s32.totalorder %s160_s22, %s261_s23  ;;  %p267_p12 = scmp.lt.s32.totalorder %s261_s23, %s261_s23 }
  0x3e   :  { %179 = vmatmul.mubr.msk.f32.vlgmr.msra.gmra.mrb[0].mxu0 %vm62_vm2, %v59_v5  ;;  %p268_p13 = por %p267_p12, %p266_p11 }
  0x3f   :  { %v58_v6 = vld [vmem:[#allocation2] sm:$0x3] }
  0x40   :  { %p269_p0 = pnand %p268_p13, %p262_p10 }
 0x111   :  { %v132_v7 = vpop.f32.mrb[0].mxu0 }
 0x112   :  { %v136_v8 = vadd.f32 %v132_v7, %v58_v6  ;;  %v180_v9 = vpop.f32.mrb[1].mxu0 }
 0x114   :  { %138 = vst.msk [vmem:[#allocation2] sm:$0x3] %vm56_vm0, %v136_v8 }
 0x11b   :  { %v142_v11 = vld [vmem:[#allocation2] sm:$0x3] }
 0x11c   :  { %v150_v12 = vadd.f32 %v170_v10, %v142_v11 }
 0x11e   :  { %193 = vtanh.f32 %v150_v12 }
 0x128   :  { %v194_v13 = vpop.eup %193 }
 0x129   :  { %152 = vst.msk [vmem:[#allocation9] sm:$0x3] %vm56_vm0, %v194_v13 }
 0x12a   :  { %272 = shalt.err (!%p269_p0)
}
 0x12b   :  { %s273_s26 = scalar_lea.hbm %s372_s3, 32 }
 0x12c   :  { %p274_p1 = scmp.ne.s32.totalorder %s372_s3, %s273_s26  ;;  %p277_p2 = scmp.lt.u32.totalorder %s273_s26, %s372_s3 }
 0x12e   :  { %p279_p3 = pnand %p277_p2, %p274_p1 }
 0x130   :  { %282 = shalt.err (!%p279_p3)
}
 0x131   :  { %162 = dma.vmem_to_hbm [thread:$0]  %s160_s22, 32, %s372_s3, [#allocation5]  }
 0x132   :  { %287 = dma.done.wait [#allocation5], 32  }
 0x133   :  { %288 = vsyncadd [#allocation5], 4294967264 }
 0x134   :  { %166 = vsyncpa [#allocation4], 1 }
 0x135   :  { %167 = vsyncpa [#allocation7], 1 }
 0x136   :  { %168 = vsyncpa [#allocation5], 1 }

// kernel: clip_caption_forward.16
= control target key start
LH: loop header
LB: loop body
LE: loop exit
PB: predicated region body
PF: predicated region fallthrough
CT: control target
= control target key end

     0   :  { %10 = vsyncpa [#allocation3], 0  ;;  %s623_s0 = inlined_call_operand.hbm [shape: f32[32,32], index: 0, kind: input, shape index: {}]   ;;  %s624_s1 = inlined_call_operand.hbm [shape: f32[1,32], index: 1, kind: input, shape index: {}]   ;;  %s625_s2 = inlined_call_operand.hbm [shape: f32[1,32], index: 2, kind: input, shape index: {}]   ;;  %s626_s3 = inlined_call_operand.hbm [shape: f32[32,96], index: 3, kind: input, shape index: {}]   ;;  %s627_s4 = inlined_call_operand.hbm [shape: f32[1,96], index: 4, kind: input, shape index: {}]   ;;  %s628_s5 = inlined_call_operand.hbm [shape: f32[32,96], index: 5, kind: output, shape index: {}]  }
   0x1   :  { %11 = vsyncpa [#allocation6], 0 }
   0x2   :  { %12 = vsyncpa [#allocation9], 0 }
   0x3   :  { %13 = vsyncpa [#allocation4], 0  ;;  %s492_s18 = smov [#allocation5]   ;;  %s352_s22 = scalar_lea.hbm %s624_s1, 16 }
   0x4   :  { %s32_s19 = sshll.u32 %s492_s18, 4  ;;  %p353_p0 = scmp.ne.s32.totalorder %s624_s1, %s352_s22  ;;  %s33_s19 = int_to_ptr.vmem [resolvable:$true] %s32_s19 }
   0x5   :  { %p356_p1 = scmp.lt.u32.totalorder %s352_s22, %s624_s1 }
   0x7   :  { %p358_p2 = pnand %p356_p1, %p353_p0 }
   0x9   :  { %361 = shalt.err (!%p358_p2)
}
   0xa   :  { %s362_s27 = scalar_lea.vmem %s33_s19, 16  ;;  %s366_s28 = scalar_lea.vmem %s33_s19, 32 }
   0xb   :  { %p363_p3 = scmp.ne.s32.totalorder %s33_s19, %s362_s27  ;;  %p367_p4 = scmp.lt.s32.totalorder %s33_s19, %s33_s19 }
   0xc   :  { %p368_p5 = scmp.lt.s32.totalorder %s366_s28, %s362_s27 }
   0xe   :  { %p369_p6 = por %p368_p5, %p367_p4 }
  0x10   :  { %p370_p7 = pnand %p369_p6, %p363_p3 }
  0x12   :  { %373 = shalt.err (!%p370_p7)
}
  0x13   :  { %35 = dma.hbm_to_vmem [thread:$0]  %s624_s1, 16, %s33_s19, [#allocation6]  }
  0x14   :  { %s493_s6 = smov [#allocation8]   ;;  %s494_s8 = smov [#allocation2]  }
  0x15   :  { %s51_s7 = sshll.u32 %s493_s6, 4  ;;  %s19_s9 = sshll.u32 %s494_s8, 4  ;;  %s52_s7 = int_to_ptr.vmem [resolvable:$true] %s51_s7  ;;  %s20_s9 = int_to_ptr.vmem [resolvable:$true] %s19_s9 }
  0x16   :  { %s374_s12 = scalar_lea.hbm %s626_s3, 512 }
  0x17   :  { %p375_p8 = scmp.ne.s32.totalorder %s626_s3, %s374_s12  ;;  %p378_p9 = scmp.lt.u32.totalorder %s374_s12, %s626_s3 }
  0x19   :  { %p380_p10 = pnand %p378_p9, %p375_p8 }
  0x1b   :  { %383 = shalt.err (!%p380_p10)
}
  0x1c   :  { %s384_s1 = scalar_lea.vmem %s52_s7, 512  ;;  %p389_p12 = scmp.lt.s32.totalorder %s52_s7, %s52_s7 }
  0x1d   :  { %p385_p11 = scmp.ne.s32.totalorder %s52_s7, %s384_s1  ;;  %p390_p13 = scmp.lt.s32.totalorder %s384_s1, %s384_s1 }
  0x1f   :  { %p391_p0 = por %p390_p13, %p389_p12 }
  0x21   :  { %p392_p1 = pnand %p391_p0, %p385_p11 }
  0x23   :  { %395 = shalt.err (!%p392_p1)
}
  0x24   :  { %s495_s17 = smov 128   ;;  %s496_s18 = smov 8  }
  0x25   :  { %57 = dma.hbm_to_vmem [thread:$0]  %s626_s3, 512, %s52_s7, [#allocation9], %s495_s17, %s495_s17, %s496_s18  }
  0x26   :  { %s396_s23 = scalar_lea.hbm %s623_s0, 512 }
  0x27   :  { %p397_p2 = scmp.ne.s32.totalorder %s623_s0, %s396_s23  ;;  %p400_p3 = scmp.lt.u32.totalorder %s396_s23, %s623_s0 }
  0x29   :  { %p402_p4 = pnand %p400_p3, %p397_p2 }
  0x2b   :  { %405 = shalt.err (!%p402_p4)
}
  0x2c   :  { %s406_s28 = scalar_lea.vmem %s20_s9, 512  ;;  %p411_p6 = scmp.lt.s32.totalorder %s20_s9, %s20_s9 }
  0x2d   :  { %p407_p5 = scmp.ne.s32.totalorder %s20_s9, %s406_s28  ;;  %p412_p7 = scmp.lt.s32.totalorder %s406_s28, %s406_s28 }
  0x2f   :  { %p413_p8 = por %p412_p7, %p411_p6 }
  0x31   :  { %p414_p9 = pnand %p413_p8, %p407_p5 }
  0x33   :  { %417 = shalt.err (!%p414_p9)
}
  0x34   :  { %25 = dma.hbm_to_vmem [thread:$0]  %s623_s0, 512, %s20_s9, [#allocation3], %s495_s17, %s495_s17, %s496_s18  }
  0x35   :  { %s497_s30 = smov [#allocation7]   ;;  %s498_s7 = smov [#allocation10]  }
  0x36   :  { %s42_s6 = sshll.u32 %s497_s30, 4  ;;  %s64_s8 = sshll.u32 %s498_s7, 4  ;;  %s43_s6 = int_to_ptr.vmem [resolvable:$true] %s42_s6  ;;  %s65_s8 = int_to_ptr.vmem [resolvable:$true] %s64_s8 }
  0x37   :  { %s418_s12 = scalar_lea.hbm %s625_s2, 16 }
  0x38   :  { %p419_p10 = scmp.ne.s32.totalorder %s625_s2, %s418_s12  ;;  %p422_p11 = scmp.lt.u32.totalorder %s418_s12, %s625_s2 }
  0x3a   :  { %p424_p12 = pnand %p422_p11, %p419_p10 }
  0x3c   :  { %427 = shalt.err (!%p424_p12)
}
  0x3d   :  { %s428_s0 = scalar_lea.vmem %s43_s6, 16  ;;  %s432_s9 = scalar_lea.vmem %s43_s6, 32 }
  0x3e   :  { %p429_p13 = scmp.ne.s32.totalorder %s43_s6, %s428_s0  ;;  %p433_p0 = scmp.lt.s32.totalorder %s43_s6, %s43_s6 }
  0x3f   :  { %p434_p1 = scmp.lt.s32.totalorder %s432_s9, %s428_s0 }
  0x41   :  { %p435_p2 = por %p434_p1, %p433_p0 }
  0x43   :  { %p436_p3 = pnand %p435_p2, %p429_p13 }
  0x45   :  { %439 = shalt.err (!%p436_p3)
}
  0x46   :  { %45 = dma.hbm_to_vmem [thread:$0]  %s625_s2, 16, %s43_s6, [#allocation6]  }
  0x47   :  { %s440_s22 = scalar_lea.hbm %s627_s4, 16 }
  0x48   :  { %p441_p4 = scmp.ne.s32.totalorder %s627_s4, %s440_s22  ;;  %p444_p5 = scmp.lt.u32.totalorder %s440_s22, %s627_s4 }
  0x4a   :  { %p446_p6 = pnand %p444_p5, %p441_p4 }
  0x4c   :  { %449 = shalt.err (!%p446_p6)
}
  0x4d   :  { %s450_s27 = scalar_lea.vmem %s65_s8, 16  ;;  %s454_s28 = scalar_lea.vmem %s65_s8, 32 }
  0x4e   :  { %p451_p7 = scmp.ne.s32.totalorder %s65_s8, %s450_s27  ;;  %p455_p8 = scmp.lt.s32.totalorder %s65_s8, %s65_s8 }
  0x4f   :  { %p456_p9 = scmp.lt.s32.totalorder %s454_s28, %s450_s27 }
  0x51   :  { %p457_p10 = por %p456_p9, %p455_p8 }
  0x53   :  { %p458_p11 = pnand %p457_p10, %p451_p7 }
  0x55   :  { %461 = shalt.err (!%p458_p11)
}
  0x56   :  { %67 = dma.hbm_to_vmem [thread:$0]  %s627_s4, 16, %s65_s8, [#allocation9]  }
  0x57   :  { %484 = dma.done.wait [#allocation3], 512  }
  0x58   :  { %485 = vsyncadd [#allocation3], 4294966784 }
  0x59   :  { %486 = dma.done.wait [#allocation6], 32  }
  0x5a   :  { %487 = vsyncadd [#allocation6], 4294967264 }
  0x5b   :  { %488 = dma.done.wait [#allocation9], 528  }
  0x5c   :  { %489 = vsyncadd [#allocation9], 4294966768  ;;  %vm87_vm0 = vcmask 261120   ;;  %v83_v0 = vld [vmem:[#allocation2] sm:$0xff]  ;;  %v84_v1 = vld [vmem:[#allocation2 + $0x8] sm:$0xff]  ;;  %vm271_vm1 = vcmask 785408  }
  0x5d   :  { %v85_v2 = vld [vmem:[#allocation2 + $0x10] sm:$0xff]  ;;  %v88_v3 = vsel %vm87_vm0, %v83_v0, 0.0  ;;  %v91_v4 = vsel %vm87_vm0, %v84_v1, 0.0  ;;  %v86_v5 = vld [vmem:[#allocation2 + $0x18] sm:$0xff]  ;;  %v163_v28 = vld [vmem:[#allocation8] sm:$0xff]  ;;  %s499_s4 = smov [#allocation11]  }
  0x5e   :  { %89 = vadd.xlane.f32.xlu0 %v88_v3  ;;  %92 = vadd.xlane.f32.xlu1 %v91_v4  ;;  %v94_v6 = vsel %vm87_vm0, %v85_v2, 0.0  ;;  %v97_v7 = vsel %vm87_vm0, %v86_v5, 0.0  ;;  %v164_v29 = vld [vmem:[#allocation8 + $0x8] sm:$0xff]  ;;  %v165_v30 = vld [vmem:[#allocation8 + $0x10] sm:$0xff]  ;;  %v166_v32 = vld [vmem:[#allocation8 + $0x18] sm:$0xff]  ;;  %s281_s29 = sshll.u32 %s499_s4, 4  ;;  %s282_s29 = int_to_ptr.vmem [resolvable:$true] %s281_s29 }
  0x5f   :  { %v324_v31 = vpack.c.bf16 %v164_v29, %v163_v28  ;;  %v328_v33 = vpack.c.bf16 %v166_v32, %v165_v30  ;;  %v295_v47 = vld [vmem:[#allocation5] ss:$0 sm:$0xff]  ;;  %v296_v49 = vld [vmem:[#allocation7] ss:$0 sm:$0xff]  ;;  %s462_s30 = scalar_lea.vmem %s282_s29, 512  ;;  %p467_p13 = scmp.lt.s32.totalorder %s282_s29, %s282_s29 }
  0x60   :  { %p463_p12 = scmp.ne.s32.totalorder %s282_s29, %s462_s30  ;;  %p468_p0 = scmp.lt.s32.totalorder %s462_s30, %s462_s30 }
  0x61   :  { %325 = vmatprep.subr.bf16.mxu0 %v324_v31  ;;  %332 = vmatprep.subr.bf16.mxu1 %v324_v31 }
  0x62   :  { %95 = vadd.xlane.f32.xlu0 %v94_v6  ;;  %98 = vadd.xlane.f32.xlu1 %v97_v7  ;;  %p469_p1 = por %p468_p0, %p467_p13 }
  0x63   :  { %327 = vmatpush3.bf16.msra.mxu0 %v324_v31  ;;  %334 = vmatpush3.bf16.msra.mxu1 %v324_v31 }
  0x64   :  { %329 = vmatprep.subr.bf16.mxu0 %v328_v33  ;;  %333 = vmatprep.subr.bf16.mxu1 %v328_v33  ;;  %p470_p2 = pnand %p469_p1, %p463_p12 }
  0x67   :  { %331 = vmatpush3.bf16.msra.mxu0 %v328_v33  ;;  %335 = vmatpush3.bf16.msra.mxu1 %v328_v33 }
  0xeb   :  { %v90_v8 = vpop.xlane.xlu0 %89  ;;  %v93_v9 = vpop.xlane.xlu1 %92 }
  0xec   :  { %v101_v10 = vmul.f32 0.03125, %v90_v8  ;;  %v102_v11 = vmul.f32 0.03125, %v93_v9 }
  0xee   :  { %v105_v12 = vsub.f32 %v83_v0, %v101_v10  ;;  %v106_v13 = vsub.f32 %v84_v1, %v102_v11  ;;  %v297_v0 = vld [vmem:[#allocation10] ss:$0 sm:$0xff] }
  0xef   :  { %v96_v14 = vpop.xlane.xlu0 %95  ;;  %v99_v15 = vpop.xlane.xlu1 %98 }
  0xf0   :  { %v103_v16 = vmul.f32 0.03125, %v96_v14  ;;  %v104_v17 = vmul.f32 0.03125, %v99_v15  ;;  %v109_v18 = vmul.f32 %v105_v12, %v105_v12  ;;  %v110_v19 = vmul.f32 %v106_v13, %v106_v13 }
  0xf2   :  { %v107_v20 = vsub.f32 %v85_v2, %v103_v16  ;;  %v108_v21 = vsub.f32 %v86_v5, %v104_v17  ;;  %v113_v22 = vsel %vm87_vm0, %v109_v18, 0.0  ;;  %v116_v23 = vsel %vm87_vm0, %v110_v19, 0.0 }
  0xf3   :  { %114 = vadd.xlane.f32.xlu0 %v113_v22 }
  0xf4   :  { %v111_v24 = vmul.f32 %v107_v20, %v107_v20  ;;  %v112_v25 = vmul.f32 %v108_v21, %v108_v21 }
  0xf6   :  { %v119_v26 = vsel %vm87_vm0, %v111_v24, 0.0  ;;  %v122_v27 = vsel %vm87_vm0, %v112_v25, 0.0 }
  0xf7   :  { %117 = vadd.xlane.f32.xlu0 %v116_v23  ;;  %120 = vadd.xlane.f32.xlu1 %v119_v26 }
  0xfb   :  { %123 = vadd.xlane.f32.xlu1 %v122_v27 }
 0x180   :  { %v115_v34 = vpop.xlane.xlu0 %114 }
 0x181   :  { %v125_v35 = vmul.f32 0.03125, %v115_v34 }
 0x183   :  { %v129_v36 = vadd.f32 1e-05, %v125_v35 }
 0x184   :  { %v121_v37 = vpop.xlane.xlu1 %120  ;;  %v118_v38 = vpop.xlane.xlu0 %117 }
 0x185   :  { %344 = vrsqrt.f32 %v129_v36  ;;  %v127_v39 = vmul.f32 0.03125, %v121_v37  ;;  %v126_v40 = vmul.f32 0.03125, %v118_v38 }
 0x187   :  { %v131_v41 = vadd.f32 1e-05, %v127_v39  ;;  %v130_v42 = vadd.f32 1e-05, %v126_v40 }
 0x188   :  { %v124_v43 = vpop.xlane.xlu1 %123 }
 0x189   :  { %346 = vrsqrt.f32 %v131_v41  ;;  %v128_v44 = vmul.f32 0.03125, %v124_v43 }
 0x18a   :  { %348 = vrsqrt.f32 %v130_v42 }
 0x18b   :  { %v132_v45 = vadd.f32 1e-05, %v128_v44 }
 0x18d   :  { %350 = vrsqrt.f32 %v132_v45 }
 0x18f   :  { %v345_v46 = vpop.eup %344 }
 0x190   :  { %v137_v48 = vmul.f32 %v345_v46, %v105_v12 }
 0x192   :  { %v148_v50 = vmul.f32 %v295_v47, %v137_v48 }
 0x193   :  { %v347_v51 = vpop.eup %346 }
 0x194   :  { %v349_v52 = vpop.eup %348  ;;  %v159_v53 = vadd.f32 %v296_v49, %v148_v50  ;;  %v139_v54 = vmul.f32 %v347_v51, %v107_v20 }
 0x195   :  { %v138_v55 = vmul.f32 %v349_v52, %v106_v13 }
 0x196   :  { %318 = vmatprep.mubr.msk.f32.mxu0 %vm87_vm0, %v159_v53  ;;  %v150_v56 = vmul.f32 %v295_v47, %v139_v54 }
 0x197   :  { %v351_v57 = vpop.eup %350  ;;  %v149_v58 = vmul.f32 %v295_v47, %v138_v55 }
 0x198   :  { %v161_v59 = vadd.f32 %v296_v49, %v150_v56  ;;  %v140_v60 = vmul.f32 %v351_v57, %v108_v21 }
 0x199   :  { %v160_v61 = vadd.f32 %v296_v49, %v149_v58 }
 0x19a   :  { %321 = vmatprep.mubr.msk.f32.mxu1 %vm87_vm0, %v161_v59  ;;  %v151_v62 = vmul.f32 %v295_v47, %v140_v60 }
 0x19b   :  { %319 = vmatmul.mubr.msk.f32.vlgmr.msra.gmra.mrb[0].mxu0 %vm87_vm0, %v160_v61 }
 0x19c   :  { %v162_v63 = vadd.f32 %v296_v49, %v151_v62 }
 0x19e   :  { %322 = vmatmul.mubr.msk.f32.vlgmr.msra.gmra.mrb[0].mxu1 %vm87_vm0, %v162_v63 }
 0x26e   :  { %v320_v1 = vpop.f32.mrb[0].mxu0 }
 0x26f   :  { %v258_v2 = vadd.f32 %v320_v1, %v297_v0  ;;  %v252_v3 = vpop.f32.mrb[1].mxu0 }
 0x270   :  { %v253_v4 = vadd.f32 %v297_v0, %v252_v3 }
 0x271   :  { %273 = vst.msk [vmem:[#allocation11 + $0x8] sm:$0xff] %vm271_vm1, %v258_v2  ;;  %v323_v5 = vpop.f32.mrb[0].mxu1 }
 0x272   :  { %272 = vst.msk [vmem:[#allocation11] sm:$0xff] %vm271_vm1, %v253_v4  ;;  %v268_v6 = vadd.f32 %v323_v5, %v297_v0  ;;  %v262_v7 = vpop.f32.mrb[1].mxu1 }
 0x273   :  { %v263_v8 = vadd.f32 %v297_v0, %v262_v7 }
 0x274   :  { %275 = vst.msk [vmem:[#allocation11 + $0x18] sm:$0xff] %vm271_vm1, %v268_v6 }
 0x275   :  { %274 = vst.msk [vmem:[#allocation11 + $0x10] sm:$0xff] %vm271_vm1, %v263_v8 }
 0x276   :  { %473 = shalt.err (!%p470_p2)
}
 0x277   :  { %s474_s8 = scalar_lea.hbm %s628_s5, 512 }
 0x278   :  { %p475_p3 = scmp.ne.s32.totalorder %s628_s5, %s474_s8  ;;  %p478_p4 = scmp.lt.u32.totalorder %s474_s8, %s628_s5 }
 0x27a   :  { %p480_p5 = pnand %p478_p4, %p475_p3 }
 0x27c   :  { %483 = shalt.err (!%p480_p5)
}
 0x27d   :  { %287 = dma.vmem_to_hbm [thread:$0]  %s282_s29, 512, %s628_s5, [#allocation4], %s495_s17, %s495_s17, %s496_s18  }
 0x27e   :  { %490 = dma.done.wait [#allocation4], 512  }
 0x27f   :  { %491 = vsyncadd [#allocation4], 4294966784 }
 0x280   :  { %291 = vsyncpa [#allocation3], 1 }
 0x281   :  { %292 = vsyncpa [#allocation6], 1 }
 0x282   :  { %293 = vsyncpa [#allocation9], 1 }
 0x283   :  { %294 = vsyncpa [#allocation4], 1 }

// kernel: clip_caption_forward.17
= control target key start
LH: loop header
LB: loop body
LE: loop exit
PB: predicated region body
PF: predicated region fallthrough
CT: control target
= control target key end

     0   :  { %7 = vsyncpa [#allocation3], 0  ;;  %s1951_s0 = inlined_call_operand.hbm [shape: f32[2,16,96], index: 0, kind: input, shape index: {}]   ;;  %s1952_s1 = inlined_call_operand.hbm [shape: f32[2,1,16], index: 1, kind: input, shape index: {}]   ;;  %s1953_s2 = inlined_call_operand.hbm [shape: f32[2,16,32], index: 2, kind: output, shape index: {}]  }
   0x1   :  { %9 = vsyncpa [#allocation3 + $0x1], 0 }
   0x2   :  { %10 = vsyncpa [#allocation6], 0 }
   0x3   :  { %12 = vsyncpa [#allocation6 + $0x1], 0 }
   0x4   :  { %13 = vsyncpa [#allocation4], 0 }
   0x5   :  { %15 = vsyncpa [#allocation4 + $0x1], 0  ;;  %s1636_s9 = smov 0   ;;  %s1638_s10 = smov 0  }
   0x6   :  { %s1640_s11 = smov 0   ;;  %s1642_s12 = smov 0  }
   0x7 LB: > { %s1657_s13 = sadd.s32 4294967295, %s1599_s12   ;;  %s1159_s14 = sadd.s32 4294967294, %s1599_s12   ;;  %s1599_s12 = sphi %s1642_s12, %s1972_s12   ;;  %s1595_s11 = sphi %s1640_s11, %s1971_s11   ;;  %s1591_s10 = sphi %s1638_s10, %s1970_s10   ;;  %s1587_s9 = sphi %s1636_s9, %s1969_s9  }
   0x8   : > { %s1661_s15 = sadd.s32 1, %s1599_s12   ;;  %s28_s16 = sadd.s32 1, %s1595_s11 }
   0x9   : > { %s25_s17 = ssub.s32 %s1599_s12, %s1661_s15  ;;  %p35_p0 = scmp.ne.s32.totalorder %s1595_s11, %s1591_s10 }
   0xa   : > { %p26_p1 = scmp.eq.s32.totalorder %s25_s17, 0  ;;  %p36_p2 = scmp.eq.s32.totalorder %s1599_s12, 0 }
   0xb   : > { %p41_p3 = scmp.ne.s32.totalorder %s1591_s10, %s1587_s9  ;;  %p42_p4 = scmp.eq.s32.totalorder %s1657_s13, 0 }
   0xc   : > { %s1673_s18 = scalar_select %p26_p1, %s1595_s11, %s28_s16  }
   0xd   : > { %p1675_p5 = por %p36_p2, %p35_p0  ;;  %p1679_p6 = por %p42_p4, %p41_p3 }
   0xe   : > { %p91_p7 = scmp.eq.s32.totalorder %s1657_s13, 1  ;;  %p97_p8 = scmp.eq.s32.totalorder %s1159_s14, 1 }
   0xf   : > { %s1957_s20 = scalar_select %p1679_p6, 1, 0 }
  0x10   : > { %p1346_p10 = scmp.lt.s32.totalorder %s1599_s12, 2  ;;  %p1686_p11 = por %p91_p7, %p35_p0 }
  0x11   : > { %p1690_p12 = por %p97_p8, %p41_p3  ;;  %s1695_s23 = sand.u32 1, %s1595_s11  }
  0x12   : > { %s1958_s21 = scalar_select %p1686_p11, 1, 0 }
  0x13   : > { %s1959_s22 = scalar_select %p1690_p12, 1, 0 }
  0x14   : > { %s1199_s24 = sshll.u32 %s1599_s12, 8  ;;  %s1162_s25 = sshll.u32 %s1695_s23, 4 }
  0x15   : > { %s1702_s28 = scalar_lea.hbm %s1951_s0, %s1199_s24  ;;  %s121_s29 = scalar_lea.vmem [#allocation2], %s1162_s25 }
  0x16   : > { %s128_s30 = sshll.u32 %s121_s29, 4  ;;  %p1706_p13 = pnand %p1346_p10, %p1675_p5  ;;  %s1710_s30 = int_to_ptr.vmem [resolvable:$true] %s128_s30 }
  0x17   : > { %s118_s4 = scalar_lea.sflag [#allocation3], %s1695_s23  ;;  %s1469_s5 = scalar_lea.hbm %s1702_s28, 256 }
  0x18   : > { %p1470_p0 = scmp.ne.s32.totalorder %s1702_s28, %s1469_s5  ;;  %p1471_p1 = pneg %p1706_p13 }
  0x19   : > { %s1474_s8 = scalar_lea.hbm %s1951_s0, 512  ;;  %p1475_p4 = scmp.lt.u32.totalorder %s1702_s28, %s1951_s0 }
  0x1a   : > { %p1472_p2 = pnand %p1471_p1, %p1470_p0  ;;  %p1476_p5 = scmp.lt.u32.totalorder %s1474_s8, %s1469_s5 }
  0x1b   : > { %p1478_p8 = scmp.lt.u32.totalorder %s1469_s5, %s1702_s28 }
  0x1c   : > { %p1473_p3 = pneg %p1472_p2  ;;  %p1477_p7 = por %p1476_p5, %p1475_p4 }
  0x1e   : > { %p1479_p10 = por %p1478_p8, %p1477_p7 }
  0x20   : > { %p1480_p9 = pnand %p1479_p10, %p1473_p3 }
  0x22   : > { %1483 = shalt.err (!%p1480_p9)
}
  0x23   : > { %s1484_s17 = scalar_lea.vmem %s1710_s30, 256  ;;  %s1601_s19 = smov [#allocation2]  }
  0x24   : > { %p1485_p0 = scmp.ne.s32.totalorder %s1710_s30, %s1484_s17  ;;  %s1489_s24 = sshll.u32 %s1601_s19, 4  ;;  %s1490_s24 = int_to_ptr.vmem [resolvable:$false] %s1489_s24 }
  0x25   : > { %s1491_s25 = scalar_lea.vmem %s1490_s24, 512  ;;  %p1492_p11 = scmp.lt.s32.totalorder %s1710_s30, %s1490_s24 }
  0x26   : > { %p1487_p2 = pnand %p1485_p0, %p1471_p1  ;;  %p1493_p4 = scmp.lt.s32.totalorder %s1491_s25, %s1484_s17 }
  0x28   : > { %p1488_p12 = pneg %p1487_p2  ;;  %p1494_p5 = por %p1493_p4, %p1492_p11 }
  0x2a   : > { %p1495_p7 = pnand %p1494_p5, %p1488_p12 }
  0x2c   : > { %1498 = shalt.err (!%p1495_p7)
}
  0x2d   : > { %s1602_s26 = smov 128   ;;  %s1603_s27 = smov 8  }
  0x2e   : > { %1338 = dma.hbm_to_vmem [thread:$0]  (!%p1706_p13), %s1702_s28, 256, %s1710_s30, %s118_s4, %s1602_s26, %s1602_s26, %s1603_s27  }
  0x2f   : > { %p1166_p9 = scmp.ge.s32.totalorder %s1599_s12, 1  ;;  %p153_p3 = scmp.lt.s32.totalorder %s1599_s12, 3 }
  0x30   : > { %s1165_s5 = sshll.u32 %s1599_s12, 4  ;;  %s141_s14 = scalar_lea.vmem [#allocation5], %s1695_s23 }
  0x31   : > { %p1742_p11 = pnand %p1166_p9, %p153_p3  ;;  %s1750_s8 = scalar_lea.hbm %s1952_s1, %s1165_s5 }
  0x32   : > { %s148_s16 = sshll.u32 %s141_s14, 4  ;;  %s139_s28 = scalar_lea.sflag [#allocation6], %s1695_s23  ;;  %s149_s16 = int_to_ptr.vmem [resolvable:$true] %s148_s16 }
  0x33   : > { %s1961_s29 = scalar_select %p1742_p11, 1, 0 }
  0x34   : > { %s1499_s30 = scalar_lea.hbm %s1750_s8, 16  ;;  %s1504_s19 = scalar_lea.hbm %s1952_s1, 32 }
  0x35   : > { %p1500_p12 = scmp.ne.s32.totalorder %s1750_s8, %s1499_s30  ;;  %p1505_p0 = scmp.lt.u32.totalorder %s1750_s8, %s1952_s1 }
  0x36   : > { %p1506_p2 = scmp.lt.u32.totalorder %s1504_s19, %s1499_s30  ;;  %p1508_p5 = scmp.lt.u32.totalorder %s1499_s30, %s1750_s8 }
  0x37   : > { %p1502_p8 = pnand %p1500_p12, %p1471_p1 }
  0x38   : > { %p1507_p4 = por %p1506_p2, %p1505_p0 }
  0x39   : > { %p1503_p10 = pneg %p1502_p8 }
  0x3a   : > { %p1509_p7 = por %p1508_p5, %p1507_p4 }
  0x3c   : > { %p1510_p9 = pnand %p1509_p7, %p1503_p10 }
  0x3e   : > { %1513 = shalt.err (!%p1510_p9)
}
  0x3f   : > { %s1514_s23 = scalar_lea.vmem %s149_s16, 16  ;;  %s1604_s26 = smov [#allocation5]  }
  0x40   : > { %p1515_p3 = scmp.ne.s32.totalorder %s149_s16, %s1514_s23  ;;  %s1519_s27 = sshll.u32 %s1604_s26, 4  ;;  %s1520_s27 = int_to_ptr.vmem [resolvable:$false] %s1519_s27 }
  0x41   : > { %s1521_s5 = scalar_lea.vmem %s1520_s27, 32  ;;  %p1522_p6 = scmp.lt.s32.totalorder %s149_s16, %s1520_s27 }
  0x42   : > { %p1517_p12 = pnand %p1515_p3, %p1471_p1  ;;  %p1523_p11 = scmp.lt.s32.totalorder %s1521_s5, %s1514_s23 }
  0x44   : > { %p1518_p8 = pneg %p1517_p12  ;;  %p1524_p0 = por %p1523_p11, %p1522_p6 }
  0x46   : > { %p1525_p2 = pnand %p1524_p0, %p1518_p8 }
  0x48   : > { %1528 = shalt.err (!%p1525_p2)
}
  0x49   : > { %1341 = dma.hbm_to_vmem [thread:$0]  (!%p1706_p13), %s1750_s8, 16, %s149_s16, %s139_s28  }
  0x4a   : > { %p1962_p10 = scmp.ne.s32.totalorder %s1961_s29, 0 }
  0x4b   : > { %s1776_s6 = sand.u32 (!%p1962_p10), 1, %s1591_s10   ;;  %p1963_p6 = scmp.ne.s32.totalorder (!%p1962_p10), %s1957_s20, 0 }
  0x4c   : > { %157 = sbr.rel (%p1962_p10) target bundleno = 2713 (0xa99), region = 28  ;;  %s1167_s7 = sshll.u32 (!%p1962_p10), %s1776_s6, 4 }
  0x4d   : > { %s160_s14 = scalar_lea.sflag (!%p1962_p10), [#allocation3], %s1776_s6  ;;  %s163_s30 = scalar_lea.vmem (!%p1962_p10), [#allocation2], %s1167_s7 }
  0x53   : > { %1574 = dma.done.wait (%p1963_p6), %s160_s14, 256  }
  0x54   : > { %1576 = vsyncadd (%p1963_p6), %s160_s14, 4294967040  ;;  %s169_s3 = scalar_lea.sflag [#allocation6], %s1776_s6  ;;  %s171_s29 = scalar_lea.vmem [#allocation5], %s1776_s6 }
  0x55   : > { %1578 = dma.done.wait (%p1963_p6), %s169_s3, 16  }
  0x56   : > { %1580 = vsyncadd (%p1963_p6), %s169_s3, 4294967280  ;;  %v212_v0 = vld [vmem:[%s163_s30] sm:$0xff]  ;;  %v213_v1 = vld [vmem:[%s163_s30 + $0x8] sm:$0xff]  ;;  %vm222_vm0 = vcmask 64512   ;;  %s1605_s8 = smov 96   ;;  %v196_v10 = vlaneseq  ;;  %vm308_vm4 = vcmask 130048  }
  0x57   : > { %v1792_v2 = vpack.i.bf16 %v213_v1, %v212_v0  ;;  %v1794_v3 = vmul.f32 0.35355338, %v212_v0  ;;  %vm1801_vm1 = vmpackc.low %vm222_vm0, %vm222_vm0  ;;  %v1809_v9 = vmul.f32 0.35355338, %v213_v1  ;;  %v1169_v14 = vld [vmem:[%s171_s29] ss:$0 sm:$0xff] }
  0x58   : > { %v197_v11 = vshrl.u32 %v196_v10, 7  ;;  %v200_v13 = vand.u32 127, %v196_v10  ;;  %s1606_s20 = smov 64   ;;  %s1607_s16 = smov 88   ;;  %vm1046_vm5 = vcmask 195584   ;;  %vm1049_vm6 = vcmask 261120  }
  0x59   : > { %1398 = vrot.lane.b32.xlu0 %v1792_v2, %s1605_s8  ;;  %1237 = vmatprep.mubr.msk.f32.mxu0 %vm222_vm0, %v1794_v3  ;;  %s1608_s28 = smov 120   ;;  %s1609_s4 = smov 56  }
  0x5a   : > { %v198_v12 = vadd.s32 8, %v197_v11  ;;  %vm201_vm3 = vcmp.le.s32.totalorder %v200_v13, %v197_v11  ;;  %s1610_s17 = smov 112   ;;  %s1611_s19 = smov 80  }
  0x5b   : > { %v1815_v16 = vsel %vm201_vm3, %v1169_v14, -1e+30  ;;  %s1612_s24 = smov 72   ;;  %s1613_s25 = smov 104  }
  0x5c   : > { %vm202_vm2 = vcmp.le.s32.totalorder %v200_v13, %v198_v12  ;;  %s1614_s23 = smov 48   ;;  %s1615_s26 = smov 8  }
  0x5d   : > { %v1813_v15 = vsel %vm202_vm2, %v1169_v14, -1e+30  ;;  %s1616_s27 = smov 40   ;;  %s1617_s5 = smov 16  }
  0x5e   : > { %s1618_s14 = smov 24   ;;  %s195_s30 = scalar_lea.vmem [#allocation7], %s1167_s7 }
  0x5f   : > { %s1066_s3 = sshll.u32 %s195_s30, 4  ;;  %s1200_s29 = sshll.u32 %s1657_s13, 8  ;;  %s1900_s3 = int_to_ptr.vmem [resolvable:$true] %s1066_s3 }
  0x60   : > { %s1906_s8 = scalar_lea.hbm %s1953_s2, %s1200_s29  ;;  %p1966_p1 = scmp.ne.s32.totalorder %s1958_s21, 0 }
  0xcb   : > { %v1399_v4 = vpop.permute.xlu0 %1398 }
  0xcc   : > { %v1401_v5 = vunpack.i.h.bf16 %v1399_v4  ;;  %v1400_v6 = vunpack.i.l.bf16 %v1399_v4 }
  0xce   : > { %v1289_v8 = vpack.c.bf16 %v1401_v5, %v1400_v6 }
  0xd0   : > { %1291 = vmatprep.subr.msk.bf16.mxu0 %vm1801_vm1, %v1289_v8 }
  0xd1   : > { %1294 = vmatpush3.bf16.xpose.msk.msra.mxu0 %vm1801_vm1, %v1289_v8 }
  0xd8   : > { %1238 = vmatmul.mubr.msk.f32.vlgmr.msra.gmra.mrb[0].mxu0 %vm222_vm0, %v1809_v9 }
 0x1ab   : > { %v1239_v17 = vpop.f32.mrb[0].mxu0 }
 0x1ac   : > { %v305_v18 = vadd.f32 %v1239_v17, %v1813_v15  ;;  %v299_v19 = vpop.f32.mrb[1].mxu0 }
 0x1ad   : > { %v300_v20 = vadd.f32 %v299_v19, %v1815_v16 }
 0x1ae   : > { %v312_v21 = vsel %vm308_vm4, %v305_v18, -inf }
 0x1af   : > { %313 = vmax.xlane.f32.xlu1 %v312_v21  ;;  %v309_v22 = vsel %vm308_vm4, %v300_v20, -inf }
 0x1b0   : > { %310 = vmax.xlane.f32.xlu0 %v309_v22 }
 0x1c0   : > { %1403 = vrot.lane.b32.xlu1 %v1792_v2, %s1606_s20  ;;  %s1053_s20 = scalar_lea.sflag [#allocation4], %s1776_s6 }
 0x1c4   : > { %1408 = vrot.lane.b32.xlu1 %v1792_v2, %s1607_s16  ;;  %s1529_s16 = scalar_lea.vmem %s1900_s3, 256 }
 0x1c5   : > { %p1530_p13 = scmp.ne.s32.totalorder %s1900_s3, %s1529_s16 }
 0x1c6   : > { %420 = vrot.lane.b32.xlu0 %v1809_v9, %s1608_s28 }
 0x1c7   : > { %p1531_p11 = pnand %p1530_p13, %p1966_p1 }
 0x1c9   : > { %p1532_p4 = pneg %p1531_p11 }
 0x23c   : > { %v314_v23 = vpop.xlane.xlu1 %313 }
 0x23d   : > { %v316_v24 = vsub.f32 %v305_v18, %v314_v23  ;;  %v311_v25 = vpop.xlane.xlu0 %310 }
 0x23e   : > { %v315_v26 = vsub.f32 %v300_v20, %v311_v25 }
 0x23f   : > { %v319_v27 = vmul.f32 1.442695, %v316_v24 }
 0x240   : > { %v317_v28 = vmul.f32 1.442695, %v315_v26  ;;  %v1404_v29 = vpop.permute.xlu1 %1403 }
 0x241   : > { %1437 = vpow2.f32 %v319_v27  ;;  %v1406_v30 = vunpack.i.h.bf16 %v1404_v29  ;;  %v1405_v31 = vunpack.i.l.bf16 %v1404_v29  ;;  %v421_v48 = vpop.permute.xlu0 %420 }
 0x242   : > { %1439 = vpow2.f32 %v317_v28 }
 0x243   : > { %v1295_v32 = vpack.c.bf16 %v1406_v30, %v1405_v31 }
 0x244   : > { %v1409_v33 = vpop.permute.xlu1 %1408 }
 0x245   : > { %v1411_v34 = vunpack.i.h.bf16 %v1409_v33  ;;  %v1410_v35 = vunpack.i.l.bf16 %v1409_v33  ;;  %1296 = vmatprep.subr.bf16.mxu1 %v1295_v32 }
 0x246   : > { %1298 = vmatpush3.bf16.msra.mxu1 %v1295_v32 }
 0x247   : > { %v1299_v36 = vpack.c.bf16 %v1411_v34, %v1410_v35 }
 0x249   : > { %1301 = vmatprep.subr.msk.bf16.mxu1 %vm1801_vm1, %v1299_v36 }
 0x24b   : > { %v1438_v37 = vpop.eup %1437 }
 0x24c   : > { %v324_v38 = vsel %vm308_vm4, %v1438_v37, 0.0  ;;  %v1440_v39 = vpop.eup %1439 }
 0x24d   : > { %325 = vadd.xlane.f32.xlu1 %v324_v38  ;;  %v321_v40 = vsel %vm308_vm4, %v1440_v39, 0.0 }
 0x251   : > { %322 = vadd.xlane.f32.xlu1 %v321_v40 }
 0x262   : > { %418 = vrot.lane.b32.xlu1 %v1794_v3, %s1608_s28  ;;  %s1619_s28 = smov [#allocation7]  }
 0x2da   : > { %v326_v41 = vpop.xlane.xlu1 %325 }
 0x2db   : > { %1441 = vrcp.f32 %v326_v41 }
 0x2de   : > { %v323_v42 = vpop.xlane.xlu1 %322 }
 0x2df   : > { %1443 = vrcp.f32 %v323_v42 }
 0x2e2   : > { %v419_v47 = vpop.permute.xlu1 %418 }
 0x2e5   : > { %v1442_v43 = vpop.eup %1441 }
 0x2e6   : > { %v330_v46 = vmul.f32 %v1442_v43, %v1438_v37 }
 0x2e9   : > { %v1444_v44 = vpop.eup %1443 }
 0x2ea   : > { %v329_v45 = vmul.f32 %v1444_v44, %v1440_v39 }
 0x2ec   : > { %1244 = vmatprep.mubr.msk.f32.mxu1 %vm308_vm4, %v329_v45 }
 0x2ed   : > { %1245 = vmatmul.mubr.msk.f32.vlgmr.msra.gmra.mrb[0].mxu1 %vm308_vm4, %v330_v46 }
 0x2ee   : > { %1304 = vmatpush3.bf16.xpose.msk.msra.mxu1 %vm1801_vm1, %v1299_v36  ;;  %1251 = vmatprep.mubr.msk.f32.mxu1 %vm222_vm0, %v419_v47 }
 0x2f5   : > { %1252 = vmatmul.mubr.msk.f32.vlgmr.msra.gmra.mrb[2].mxu1 %vm222_vm0, %v421_v48 }
 0x3c0   : > { %v1835_v49 = vpop.f32.mrb[0].mxu1 }
 0x3c1   : > { %v1837_v50 = vpop.f32.mrb[1].mxu1 }
 0x3c8   : > { %v1253_v51 = vpop.f32.mrb[2].mxu1 }
 0x3c9   : > { %v506_v52 = vadd.f32 %v1253_v51, %v1813_v15  ;;  %v500_v53 = vpop.f32.mrb[3].mxu1 }
 0x3ca   : > { %v501_v54 = vadd.f32 %v500_v53, %v1815_v16 }
 0x3cb   : > { %v512_v55 = vsel %vm308_vm4, %v506_v52, -inf }
 0x3cc   : > { %513 = vmax.xlane.f32.xlu0 %v512_v55  ;;  %v509_v56 = vsel %vm308_vm4, %v501_v54, -inf }
 0x3cd   : > { %510 = vmax.xlane.f32.xlu1 %v509_v56 }
 0x3de   : > { %1413 = vrot.lane.b32.xlu1 %v1792_v2, %s1609_s4  ;;  %s1533_s4 = sshll.u32 %s1619_s28, 4  ;;  %s1534_s4 = int_to_ptr.vmem [resolvable:$false] %s1533_s4 }
 0x3df   : > { %p1536_p5 = scmp.lt.s32.totalorder %s1900_s3, %s1534_s4 }
 0x3e2   : > { %618 = vrot.lane.b32.xlu1 %v1794_v3, %s1610_s17  ;;  %1418 = vrot.lane.b32.xlu0 %v1792_v2, %s1611_s19 }
 0x459   : > { %v514_v57 = vpop.xlane.xlu0 %513 }
 0x45a   : > { %v516_v58 = vsub.f32 %v506_v52, %v514_v57  ;;  %v511_v59 = vpop.xlane.xlu1 %510 }
 0x45b   : > { %v515_v60 = vsub.f32 %v501_v54, %v511_v59 }
 0x45c   : > { %v519_v61 = vmul.f32 1.442695, %v516_v58 }
 0x45d   : > { %v517_v62 = vmul.f32 1.442695, %v515_v60  ;;  %v1419_v11 = vpop.permute.xlu0 %1418 }
 0x45e   : > { %1445 = vpow2.f32 %v519_v61  ;;  %v1414_v63 = vpop.permute.xlu1 %1413  ;;  %v1421_v12 = vunpack.i.h.bf16 %v1419_v11  ;;  %v1420_v13 = vunpack.i.l.bf16 %v1419_v11 }
 0x45f   : > { %v1416_v0 = vunpack.i.h.bf16 %v1414_v63  ;;  %v1415_v1 = vunpack.i.l.bf16 %v1414_v63  ;;  %1447 = vpow2.f32 %v517_v62 }
 0x460   : > { %v1309_v14 = vpack.c.bf16 %v1421_v12, %v1420_v13 }
 0x461   : > { %v1305_v4 = vpack.c.bf16 %v1416_v0, %v1415_v1 }
 0x462   : > { %v619_v17 = vpop.permute.xlu1 %618 }
 0x463   : > { %1306 = vmatprep.subr.bf16.mxu0 %v1305_v4 }
 0x464   : > { %1308 = vmatpush3.bf16.msra.mxu0 %v1305_v4 }
 0x465   : > { %1311 = vmatprep.subr.msk.bf16.mxu0 %vm1801_vm1, %v1309_v14 }
 0x468   : > { %v1446_v5 = vpop.eup %1445 }
 0x469   : > { %v524_v6 = vsel %vm308_vm4, %v1446_v5, 0.0  ;;  %v1448_v8 = vpop.eup %1447 }
 0x46a   : > { %525 = vadd.xlane.f32.xlu1 %v524_v6  ;;  %v521_v10 = vsel %vm308_vm4, %v1448_v8, 0.0 }
 0x46e   : > { %522 = vadd.xlane.f32.xlu1 %v521_v10 }
 0x47f   : > { %620 = vrot.lane.b32.xlu1 %v1809_v9, %s1610_s17  ;;  %s1535_s17 = scalar_lea.vmem %s1534_s4, 512 }
 0x480   : > { %p1537_p7 = scmp.lt.s32.totalorder %s1535_s17, %s1529_s16 }
 0x482   : > { %p1538_p9 = por %p1537_p7, %p1536_p5 }
 0x484   : > { %p1539_p3 = pnand %p1538_p9, %p1532_p4 }
 0x4f7   : > { %v526_v18 = vpop.xlane.xlu1 %525 }
 0x4f8   : > { %1449 = vrcp.f32 %v526_v18 }
 0x4fb   : > { %v523_v19 = vpop.xlane.xlu1 %522 }
 0x4fc   : > { %1451 = vrcp.f32 %v523_v19 }
 0x4ff   : > { %v621_v24 = vpop.permute.xlu1 %620 }
 0x502   : > { %v1450_v20 = vpop.eup %1449 }
 0x503   : > { %v530_v23 = vmul.f32 %v1450_v20, %v1446_v5 }
 0x506   : > { %v1452_v21 = vpop.eup %1451 }
 0x507   : > { %v529_v22 = vmul.f32 %v1452_v21, %v1448_v8 }
 0x509   : > { %1258 = vmatprep.mubr.msk.f32.mxu0 %vm308_vm4, %v529_v22 }
 0x50a   : > { %1259 = vmatmul.mubr.msk.f32.vlgmr.msra.gmra.mrb[2].mxu0 %vm308_vm4, %v530_v23 }
 0x50b   : > { %1314 = vmatpush3.bf16.xpose.msk.msra.mxu0 %vm1801_vm1, %v1309_v14  ;;  %1265 = vmatprep.mubr.msk.f32.mxu0 %vm222_vm0, %v619_v17 }
 0x512   : > { %1266 = vmatmul.mubr.msk.f32.vlgmr.msra.gmra.mrb[4].mxu0 %vm222_vm0, %v621_v24 }
 0x5dd   : > { %v1857_v25 = vpop.f32.mrb[2].mxu0 }
 0x5de   : > { %v1859_v26 = vpop.f32.mrb[3].mxu0 }
 0x5e5   : > { %v1267_v27 = vpop.f32.mrb[4].mxu0 }
 0x5e6   : > { %v706_v28 = vadd.f32 %v1267_v27, %v1813_v15  ;;  %v700_v29 = vpop.f32.mrb[5].mxu0 }
 0x5e7   : > { %v701_v30 = vadd.f32 %v700_v29, %v1815_v16 }
 0x5e8   : > { %v712_v31 = vsel %vm308_vm4, %v706_v28, -inf }
 0x5e9   : > { %713 = vmax.xlane.f32.xlu0 %v712_v31  ;;  %v709_v32 = vsel %vm308_vm4, %v701_v30, -inf }
 0x5ea   : > { %710 = vmax.xlane.f32.xlu1 %v709_v32 }
 0x676   : > { %v714_v33 = vpop.xlane.xlu0 %713 }
 0x677   : > { %v716_v34 = vsub.f32 %v706_v28, %v714_v33  ;;  %v711_v35 = vpop.xlane.xlu1 %710 }
 0x678   : > { %v715_v36 = vsub.f32 %v701_v30, %v711_v35 }
 0x679   : > { %v719_v37 = vmul.f32 1.442695, %v716_v34 }
 0x67a   : > { %v717_v38 = vmul.f32 1.442695, %v715_v36 }
 0x67b   : > { %1453 = vpow2.f32 %v719_v37 }
 0x67c   : > { %1455 = vpow2.f32 %v717_v38 }
 0x685   : > { %v1454_v39 = vpop.eup %1453 }
 0x686   : > { %v1456_v40 = vpop.eup %1455  ;;  %v724_v41 = vsel %vm308_vm4, %v1454_v39, 0.0 }
 0x687   : > { %725 = vadd.xlane.f32.xlu1 %v724_v41  ;;  %v721_v42 = vsel %vm308_vm4, %v1456_v40, 0.0 }
 0x688   : > { %722 = vadd.xlane.f32.xlu0 %v721_v42 }
 0x698   : > { %1428 = vrot.lane.b32.xlu1 %v1792_v2, %s1612_s24 }
 0x69c   : > { %818 = vrot.lane.b32.xlu1 %v1794_v3, %s1613_s25 }
 0x69e   : > { %1423 = vrot.lane.b32.xlu0 %v1792_v2, %s1614_s23 }
 0x6a2   : > { %820 = vrot.lane.b32.xlu0 %v1809_v9, %s1613_s25 }
 0x714   : > { %v726_v43 = vpop.xlane.xlu1 %725 }
 0x715   : > { %1457 = vrcp.f32 %v726_v43  ;;  %v723_v44 = vpop.xlane.xlu0 %722 }
 0x716   : > { %1459 = vrcp.f32 %v723_v44 }
 0x718   : > { %v1429_v45 = vpop.permute.xlu1 %1428 }
 0x719   : > { %v1424_v46 = vpop.permute.xlu0 %1423  ;;  %v1431_v47 = vunpack.i.h.bf16 %v1429_v45  ;;  %v1430_v48 = vunpack.i.l.bf16 %v1429_v45 }
 0x71a   : > { %v1426_v51 = vunpack.i.h.bf16 %v1424_v46  ;;  %v1425_v52 = vunpack.i.l.bf16 %v1424_v46 }
 0x71b   : > { %v1319_v54 = vpack.c.bf16 %v1431_v47, %v1430_v48 }
 0x71c   : > { %v1315_v53 = vpack.c.bf16 %v1426_v51, %v1425_v52  ;;  %v819_v57 = vpop.permute.xlu1 %818 }
 0x71d   : > { %v821_v58 = vpop.permute.xlu0 %820 }
 0x71e   : > { %1316 = vmatprep.subr.bf16.mxu1 %v1315_v53 }
 0x71f   : > { %v1458_v55 = vpop.eup %1457  ;;  %1318 = vmatpush3.bf16.msra.mxu1 %v1315_v53 }
 0x720   : > { %v1460_v3 = vpop.eup %1459  ;;  %1321 = vmatprep.subr.msk.bf16.mxu1 %vm1801_vm1, %v1319_v54  ;;  %v730_v56 = vmul.f32 %v1458_v55, %v1454_v39 }
 0x721   : > { %v729_v9 = vmul.f32 %v1460_v3, %v1456_v40 }
 0x723   : > { %1272 = vmatprep.mubr.msk.f32.mxu1 %vm308_vm4, %v729_v9 }
 0x724   : > { %1273 = vmatmul.mubr.msk.f32.vlgmr.msra.gmra.mrb[4].mxu1 %vm308_vm4, %v730_v56 }
 0x725   : > { %1279 = vmatprep.mubr.msk.f32.mxu1 %vm222_vm0, %v819_v57 }
 0x728   : > { %1324 = vmatpush3.bf16.xpose.msk.msra.mxu1 %vm1801_vm1, %v1319_v54 }
 0x72f   : > { %1280 = vmatmul.mubr.msk.f32.vlgmr.msra.gmra.mrb[6].mxu1 %vm222_vm0, %v821_v58 }
 0x7f7   : > { %v1274_v59 = vpop.f32.mrb[4].mxu1 }
 0x7f8   : > { %v809_v60 = vpop.f32.mrb[5].mxu1 }
 0x802   : > { %v1281_v61 = vpop.f32.mrb[6].mxu1 }
 0x803   : > { %v906_v62 = vadd.f32 %v1281_v61, %v1813_v15  ;;  %v900_v63 = vpop.f32.mrb[7].mxu1 }
 0x804   : > { %v901_v0 = vadd.f32 %v900_v63, %v1815_v16 }
 0x805   : > { %v912_v1 = vsel %vm308_vm4, %v906_v62, -inf }
 0x806   : > { %913 = vmax.xlane.f32.xlu0 %v912_v1  ;;  %v909_v4 = vsel %vm308_vm4, %v901_v0, -inf }
 0x807   : > { %910 = vmax.xlane.f32.xlu1 %v909_v4 }
 0x893   : > { %v914_v5 = vpop.xlane.xlu0 %913 }
 0x894   : > { %v916_v7 = vsub.f32 %v906_v62, %v914_v5  ;;  %v911_v6 = vpop.xlane.xlu1 %910 }
 0x895   : > { %v915_v8 = vsub.f32 %v901_v0, %v911_v6 }
 0x896   : > { %v919_v10 = vmul.f32 1.442695, %v916_v7 }
 0x897   : > { %v917_v11 = vmul.f32 1.442695, %v915_v8 }
 0x898   : > { %1461 = vpow2.f32 %v919_v10 }
 0x899   : > { %1463 = vpow2.f32 %v917_v11 }
 0x8a2   : > { %v1462_v12 = vpop.eup %1461 }
 0x8a3   : > { %v1464_v13 = vpop.eup %1463  ;;  %v924_v15 = vsel %vm308_vm4, %v1462_v12, 0.0 }
 0x8a4   : > { %925 = vadd.xlane.f32.xlu1 %v924_v15  ;;  %v921_v16 = vsel %vm308_vm4, %v1464_v13, 0.0 }
 0x8a5   : > { %922 = vadd.xlane.f32.xlu0 %v921_v16 }
 0x8b5   : > { %1020 = vrot.lane.b32.xlu1 %v1859_v26, %s1615_s26 }
 0x8b9   : > { %1022 = vrot.lane.b32.xlu1 %v1857_v25, %s1615_s26 }
 0x8bb   : > { %1433 = vrot.lane.b32.xlu0 %v1792_v2, %s1616_s27 }
 0x8bd   : > { %1030 = vrot.lane.b32.xlu1 %v1274_v59, %s1617_s5 }
 0x8bf   : > { %1028 = vrot.lane.b32.xlu0 %v809_v60, %s1617_s5 }
 0x931   : > { %v926_v14 = vpop.xlane.xlu1 %925 }
 0x932   : > { %1465 = vrcp.f32 %v926_v14  ;;  %v923_v17 = vpop.xlane.xlu0 %922 }
 0x933   : > { %1467 = vrcp.f32 %v923_v17 }
 0x935   : > { %v1021_v27 = vpop.permute.xlu1 %1020 }
 0x936   : > { %v1434_v18 = vpop.permute.xlu0 %1433  ;;  %v1042_v32 = vsel %vm222_vm0, %v1837_v50, %v1021_v27 }
 0x937   : > { %v1436_v19 = vunpack.i.h.bf16 %v1434_v18  ;;  %v1435_v20 = vunpack.i.l.bf16 %v1434_v18 }
 0x939   : > { %v1325_v21 = vpack.c.bf16 %v1436_v19, %v1435_v20  ;;  %v1023_v28 = vpop.permute.xlu1 %1022 }
 0x93a   : > { %v1029_v30 = vpop.permute.xlu0 %1028  ;;  %v1043_v31 = vsel %vm222_vm0, %v1835_v49, %v1023_v28 }
 0x93b   : > { %1326 = vmatprep.subr.bf16.mxu0 %v1325_v21  ;;  %v1044_v35 = vsel %vm308_vm4, %v1042_v32, %v1029_v30 }
 0x93c   : > { %v1466_v22 = vpop.eup %1465  ;;  %1328 = vmatpush3.bf16.msra.mxu0 %v1325_v21 }
 0x93d   : > { %v1468_v23 = vpop.eup %1467  ;;  %v930_v25 = vmul.f32 %v1466_v22, %v1462_v12  ;;  %v1031_v29 = vpop.permute.xlu1 %1030 }
 0x93e   : > { %v929_v24 = vmul.f32 %v1468_v23, %v1464_v13  ;;  %v1045_v33 = vsel %vm308_vm4, %v1043_v31, %v1031_v29 }
 0x940   : > { %1286 = vmatprep.mubr.msk.f32.mxu0 %vm308_vm4, %v929_v24 }
 0x941   : > { %1287 = vmatmul.mubr.msk.f32.vlgmr.msra.gmra.mrb[6].mxu0 %vm308_vm4, %v930_v25 }
 0xa14   : > { %v1288_v2 = vpop.f32.mrb[6].mxu0 }
 0xa15   : > { %1038 = vrot.lane.b32.xlu1 %v1288_v2, %s1618_s14  ;;  %v1009_v26 = vpop.f32.mrb[7].mxu0 }
 0xa16   : > { %1036 = vrot.lane.b32.xlu0 %v1009_v26, %s1618_s14 }
 0xa87   : > { %v1039_v34 = vpop.permute.xlu1 %1038 }
 0xa88   : > { %v1048_v36 = vsel %vm1046_vm5, %v1045_v33, %v1039_v34  ;;  %v1037_v37 = vpop.permute.xlu0 %1036 }
 0xa89   : > { %1051 = vst.msk [vmem:[%s195_s30 + $0x8] sm:$0xff] %vm1049_vm6, %v1048_v36  ;;  %v1047_v49 = vsel %vm1046_vm5, %v1044_v35, %v1037_v37 }
 0xa8a   : > { %1050 = vst.msk [vmem:[%s195_s30] sm:$0xff] %vm1049_vm6, %v1047_v49 }
 0xa8b   : > { %1542 = shalt.err (!%p1539_p3)
}
 0xa8c   : > { %s1543_s19 = scalar_lea.hbm %s1906_s8, 256  ;;  %s1547_s23 = scalar_lea.hbm %s1953_s2, 512 }
 0xa8d   : > { %p1544_p12 = scmp.ne.s32.totalorder %s1906_s8, %s1543_s19  ;;  %p1548_p2 = scmp.lt.u32.totalorder %s1906_s8, %s1953_s2 }
 0xa8e   : > { %p1549_p10 = scmp.lt.u32.totalorder %s1547_s23, %s1543_s19  ;;  %p1551_p13 = scmp.lt.u32.totalorder %s1543_s19, %s1906_s8 }
 0xa8f   : > { %p1545_p8 = pnand %p1544_p12, %p1966_p1 }
 0xa90   : > { %p1550_p6 = por %p1549_p10, %p1548_p2 }
 0xa91   : > { %p1546_p0 = pneg %p1545_p8 }
 0xa92   : > { %p1552_p11 = por %p1551_p13, %p1550_p6 }
 0xa94   : > { %p1553_p4 = pnand %p1552_p11, %p1546_p0 }
 0xa96   : > { %1556 = shalt.err (!%p1553_p4)
}
 0xa97   : > { %s1620_s14 = smov 128  }
 0xa98   : > { %1333 = dma.vmem_to_hbm [thread:$0]  (%p1966_p1), %s1900_s3, 256, %s1906_s8, %s1053_s20, %s1620_s14, %s1620_s14, %s1615_s26  }
 0xa99 PF: > { %s1081_s30 = sand.u32 1, %s1587_s9   ;;  %p1967_p5 = scmp.ne.s32.totalorder %s1959_s22, 0 }
 0xa9a   : > { %p1968_p7 = scmp.ge.s32.totalorder %s1599_s12, 2  ;;  %s1082_s29 = scalar_lea.sflag [#allocation4], %s1081_s30 }
 0xa9c   : > { %p1343_p9 = pnand %p1968_p7, %p1967_p5 }
 0xa9e   : > { %1582 = dma.done.wait (!%p1343_p9), %s1082_s29, 256  }
 0xa9f   : > { %1584 = vsyncadd (!%p1343_p9), %s1082_s29, 4294967040  ;;  %p18_p3 = scmp.ge.s32.totalorder %s1661_s15, 4   ;;  %s1969_s9 = smov %s1591_s10 }
 0xaa0   : > { %s1970_s10 = smov %s1595_s11  ;;  %s1971_s11 = smov %s1673_s18 }
 0xaa1   : > { %s1972_s12 = smov %s1661_s15  ;;  %20 = sbr.rel (!%p18_p3) target bundleno = 7 (0x7), region = 86 }
 0xaa8   :  { %1087 = vsyncpa [#allocation3], 1 }
 0xaa9   :  { %1089 = vsyncpa [#allocation3 + $0x1], 1 }
 0xaaa   :  { %1090 = vsyncpa [#allocation6], 1 }
 0xaab   :  { %1092 = vsyncpa [#allocation6 + $0x1], 1 }
 0xaac   :  { %1093 = vsyncpa [#allocation4], 1 }
 0xaad   :  { %1095 = vsyncpa [#allocation4 + $0x1], 1 }

// kernel: clip_caption_forward.18
= control target key start
LH: loop header
LB: loop body
LE: loop exit
PB: predicated region body
PF: predicated region fallthrough
CT: control target
= control target key end

     0   :  { %9 = vsyncpa [#allocation4], 0  ;;  %s547_s0 = inlined_call_operand.hbm [shape: f32[32,32], index: 0, kind: input, shape index: {}]   ;;  %s548_s1 = inlined_call_operand.hbm [shape: f32[32,32], index: 1, kind: input, shape index: {}]   ;;  %s549_s2 = inlined_call_operand.hbm [shape: f32[1,32], index: 2, kind: input, shape index: {}]   ;;  %s550_s3 = inlined_call_operand.hbm [shape: f32[32,32], index: 3, kind: input, shape index: {}]   ;;  %s551_s4 = inlined_call_operand.hbm [shape: f32[32,32], index: 4, kind: output, shape index: {}]  }
   0x1   :  { %10 = vsyncpa [#allocation7], 0 }
   0x2   :  { %11 = vsyncpa [#allocation10], 0 }
   0x3   :  { %12 = vsyncpa [#allocation5], 0  ;;  %s412_s15 = smov [#allocation6]   ;;  %s413_s17 = smov [#allocation3]  }
   0x4   :  { %s30_s16 = sshll.u32 %s412_s15, 4  ;;  %s18_s18 = sshll.u32 %s413_s17, 4  ;;  %s31_s16 = int_to_ptr.vmem [resolvable:$true] %s30_s16  ;;  %s445_s18 = int_to_ptr.vmem [resolvable:$true] %s18_s18 }
   0x5   :  { %s294_s21 = scalar_lea.hbm %s548_s1, 512 }
   0x6   :  { %p295_p0 = scmp.ne.s32.totalorder %s548_s1, %s294_s21  ;;  %p298_p1 = scmp.lt.u32.totalorder %s294_s21, %s548_s1 }
   0x8   :  { %p300_p2 = pnand %p298_p1, %p295_p0 }
   0xa   :  { %303 = shalt.err (!%p300_p2)
}
   0xb   :  { %s304_s26 = scalar_lea.vmem %s31_s16, 512  ;;  %p309_p4 = scmp.lt.s32.totalorder %s31_s16, %s31_s16 }
   0xc   :  { %p305_p3 = scmp.ne.s32.totalorder %s31_s16, %s304_s26  ;;  %p310_p5 = scmp.lt.s32.totalorder %s304_s26, %s304_s26 }
   0xe   :  { %p311_p6 = por %p310_p5, %p309_p4 }
  0x10   :  { %p312_p7 = pnand %p311_p6, %p305_p3 }
  0x12   :  { %315 = shalt.err (!%p312_p7)
}
  0x13   :  { %s414_s27 = smov 128   ;;  %s415_s28 = smov 8  }
  0x14   :  { %36 = dma.hbm_to_vmem [thread:$0]  %s548_s1, 512, %s31_s16, [#allocation7], %s414_s27, %s414_s27, %s415_s28  }
  0x15   :  { %s316_s7 = scalar_lea.hbm %s547_s0, 512 }
  0x16   :  { %p317_p8 = scmp.ne.s32.totalorder %s547_s0, %s316_s7  ;;  %p320_p9 = scmp.lt.u32.totalorder %s316_s7, %s547_s0 }
  0x18   :  { %p322_p10 = pnand %p320_p9, %p317_p8 }
  0x1a   :  { %325 = shalt.err (!%p322_p10)
}
  0x1b   :  { %s326_s12 = scalar_lea.vmem %s445_s18, 512  ;;  %p331_p12 = scmp.lt.s32.totalorder %s445_s18, %s445_s18 }
  0x1c   :  { %p327_p11 = scmp.ne.s32.totalorder %s445_s18, %s326_s12  ;;  %p332_p13 = scmp.lt.s32.totalorder %s326_s12, %s326_s12 }
  0x1e   :  { %p333_p0 = por %p332_p13, %p331_p12 }
  0x20   :  { %p334_p1 = pnand %p333_p0, %p327_p11 }
  0x22   :  { %337 = shalt.err (!%p334_p1)
}
  0x23   :  { %24 = dma.hbm_to_vmem [thread:$0]  %s547_s0, 512, %s445_s18, [#allocation4], %s414_s27, %s414_s27, %s415_s28  }
  0x24   :  { %s416_s14 = smov [#allocation8]   ;;  %s417_s16 = smov [#allocation9]  }
  0x25   :  { %s43_s15 = sshll.u32 %s416_s14, 4  ;;  %s52_s17 = sshll.u32 %s417_s16, 4  ;;  %s44_s15 = int_to_ptr.vmem [resolvable:$true] %s43_s15  ;;  %s482_s17 = int_to_ptr.vmem [resolvable:$true] %s52_s17 }
  0x26   :  { %s338_s21 = scalar_lea.hbm %s549_s2, 16 }
  0x27   :  { %p339_p2 = scmp.ne.s32.totalorder %s549_s2, %s338_s21  ;;  %p342_p3 = scmp.lt.u32.totalorder %s338_s21, %s549_s2 }
  0x29   :  { %p344_p4 = pnand %p342_p3, %p339_p2 }
  0x2b   :  { %347 = shalt.err (!%p344_p4)
}
  0x2c   :  { %s348_s0 = scalar_lea.vmem %s44_s15, 16  ;;  %s352_s18 = scalar_lea.vmem %s44_s15, 32 }
  0x2d   :  { %p349_p5 = scmp.ne.s32.totalorder %s44_s15, %s348_s0  ;;  %p353_p6 = scmp.lt.s32.totalorder %s44_s15, %s44_s15 }
  0x2e   :  { %p354_p7 = scmp.lt.s32.totalorder %s352_s18, %s348_s0 }
  0x30   :  { %p355_p8 = por %p354_p7, %p353_p6 }
  0x32   :  { %p356_p9 = pnand %p355_p8, %p349_p5 }
  0x34   :  { %359 = shalt.err (!%p356_p9)
}
  0x35   :  { %46 = dma.hbm_to_vmem [thread:$0]  %s549_s2, 16, %s44_s15, [#allocation7]  }
  0x36   :  { %s360_s6 = scalar_lea.hbm %s550_s3, 512 }
  0x37   :  { %p361_p10 = scmp.ne.s32.totalorder %s550_s3, %s360_s6  ;;  %p364_p11 = scmp.lt.u32.totalorder %s360_s6, %s550_s3 }
  0x39   :  { %p366_p12 = pnand %p364_p11, %p361_p10 }
  0x3b   :  { %369 = shalt.err (!%p366_p12)
}
  0x3c   :  { %s370_s11 = scalar_lea.vmem %s482_s17, 512  ;;  %p375_p0 = scmp.lt.s32.totalorder %s482_s17, %s482_s17 }
  0x3d   :  { %p371_p13 = scmp.ne.s32.totalorder %s482_s17, %s370_s11  ;;  %p376_p1 = scmp.lt.s32.totalorder %s370_s11, %s370_s11 }
  0x3f   :  { %p377_p2 = por %p376_p1, %p375_p0 }
  0x41   :  { %p378_p3 = pnand %p377_p2, %p371_p13 }
  0x43   :  { %381 = shalt.err (!%p378_p3)
}
  0x44   :  { %58 = dma.hbm_to_vmem [thread:$0]  %s550_s3, 512, %s482_s17, [#allocation10], %s414_s27, %s414_s27, %s415_s28  }
  0x45   :  { %404 = dma.done.wait [#allocation4], 512  }
  0x46   :  { %405 = vsyncadd [#allocation4], 4294966784 }
  0x47   :  { %406 = dma.done.wait [#allocation7], 528  }
  0x48   :  { %407 = vsyncadd [#allocation7], 4294966768 }
  0x49   :  { %408 = dma.done.wait [#allocation10], 512  }
  0x4a   :  { %409 = vsyncadd [#allocation10], 4294966784  ;;  %vm75_vm0 = vcmask 261120   ;;  %v418_v0 = vmov 0.0   ;;  %v88_v1 = vld [vmem:[#allocation6] sm:$0xff]  ;;  %v89_v2 = vld [vmem:[#allocation6 + $0x8] sm:$0xff] }
  0x4b   :  { %77 = vst.msk [vmem:[#allocation2 + $0x8] sm:$0xff] %vm75_vm0, %v418_v0  ;;  %76 = vst.msk [vmem:[#allocation2] sm:$0xff] %vm75_vm0, %v418_v0  ;;  %v90_v3 = vld [vmem:[#allocation6 + $0x10] sm:$0xff]  ;;  %v274_v4 = vpack.c.bf16 %v89_v2, %v88_v1  ;;  %v91_v5 = vld [vmem:[#allocation6 + $0x18] sm:$0xff]  ;;  %s419_s3 = smov [#allocation11]  }
  0x4c   :  { %78 = vst.msk [vmem:[#allocation2 + $0x10] sm:$0xff] %vm75_vm0, %v418_v0  ;;  %79 = vst.msk [vmem:[#allocation2 + $0x18] sm:$0xff] %vm75_vm0, %v418_v0  ;;  %v84_v6 = vld [vmem:[#allocation3] sm:$0xff]  ;;  %v86_v7 = vld [vmem:[#allocation3 + $0x10] sm:$0xff]  ;;  %v278_v8 = vpack.c.bf16 %v91_v5, %v90_v3  ;;  %s233_s1 = sshll.u32 %s419_s3, 4  ;;  %s234_s1 = int_to_ptr.vmem [resolvable:$true] %s233_s1 }
  0x4d   :  { %268 = vmatprep.mubr.msk.f32.mxu0 %vm75_vm0, %v84_v6  ;;  %271 = vmatprep.mubr.msk.f32.mxu1 %vm75_vm0, %v86_v7  ;;  %v85_v9 = vld [vmem:[#allocation3 + $0x8] sm:$0xff]  ;;  %v87_v10 = vld [vmem:[#allocation3 + $0x18] sm:$0xff]  ;;  %v251_v23 = vld [vmem:[#allocation8] ss:$0 sm:$0xff]  ;;  %s382_s13 = scalar_lea.vmem %s234_s1, 512  ;;  %p387_p5 = scmp.lt.s32.totalorder %s234_s1, %s234_s1 }
  0x4e   :  { %275 = vmatprep.subr.bf16.mxu0 %v274_v4  ;;  %282 = vmatprep.subr.bf16.mxu1 %v274_v4  ;;  %v216_v24 = vld [vmem:[#allocation9] sm:$0xff]  ;;  %v217_v25 = vld [vmem:[#allocation9 + $0x8] sm:$0xff]  ;;  %v219_v28 = vld [vmem:[#allocation9 + $0x18] sm:$0xff]  ;;  %p383_p4 = scmp.ne.s32.totalorder %s234_s1, %s382_s13  ;;  %p388_p6 = scmp.lt.s32.totalorder %s382_s13, %s382_s13 }
  0x4f   :  { %277 = vmatpush3.bf16.msra.mxu0 %v274_v4  ;;  %284 = vmatpush3.bf16.msra.mxu1 %v274_v4  ;;  %v218_v33 = vld [vmem:[#allocation9 + $0x10] sm:$0xff] }
  0x50   :  { %279 = vmatprep.subr.bf16.mxu0 %v278_v8  ;;  %283 = vmatprep.subr.bf16.mxu1 %v278_v8  ;;  %p389_p7 = por %p388_p6, %p387_p5 }
  0x52   :  { %v81_v11 = vld [vmem:[#allocation2 + $0x8] sm:$0xff]  ;;  %v80_v13 = vld [vmem:[#allocation2] sm:$0xff]  ;;  %p390_p8 = pnand %p389_p7, %p383_p4 }
  0x53   :  { %281 = vmatpush3.bf16.msra.mxu0 %v278_v8  ;;  %285 = vmatpush3.bf16.msra.mxu1 %v278_v8  ;;  %v83_v12 = vld [vmem:[#allocation2 + $0x18] sm:$0xff]  ;;  %v82_v14 = vld [vmem:[#allocation2 + $0x10] sm:$0xff] }
  0x56   :  { %269 = vmatmul.mubr.msk.f32.vlgmr.msra.gmra.mrb[0].mxu0 %vm75_vm0, %v85_v9  ;;  %272 = vmatmul.mubr.msk.f32.vlgmr.msra.gmra.mrb[0].mxu1 %vm75_vm0, %v87_v10 }
 0x129   :  { %v270_v15 = vpop.f32.mrb[0].mxu0  ;;  %v273_v16 = vpop.f32.mrb[0].mxu1 }
 0x12a   :  { %v191_v17 = vadd.f32 %v270_v15, %v81_v11  ;;  %v193_v18 = vadd.f32 %v273_v16, %v83_v12  ;;  %v171_v19 = vpop.f32.mrb[1].mxu0  ;;  %v181_v20 = vpop.f32.mrb[1].mxu1 }
 0x12b   :  { %v190_v21 = vadd.f32 %v171_v19, %v80_v13  ;;  %v192_v22 = vadd.f32 %v181_v20, %v82_v14 }
 0x12c   :  { %195 = vst.msk [vmem:[#allocation2 + $0x8] sm:$0xff] %vm75_vm0, %v191_v17  ;;  %197 = vst.msk [vmem:[#allocation2 + $0x18] sm:$0xff] %vm75_vm0, %v193_v18 }
 0x12d   :  { %194 = vst.msk [vmem:[#allocation2] sm:$0xff] %vm75_vm0, %v190_v21  ;;  %196 = vst.msk [vmem:[#allocation2 + $0x10] sm:$0xff] %vm75_vm0, %v192_v22 }
 0x133   :  { %v202_v26 = vld [vmem:[#allocation2 + $0x8] sm:$0xff]  ;;  %v204_v27 = vld [vmem:[#allocation2 + $0x18] sm:$0xff] }
 0x134   :  { %v201_v29 = vld [vmem:[#allocation2] sm:$0xff]  ;;  %v203_v30 = vld [vmem:[#allocation2 + $0x10] sm:$0xff]  ;;  %v213_v31 = vadd.f32 %v251_v23, %v202_v26  ;;  %v215_v32 = vadd.f32 %v251_v23, %v204_v27 }
 0x135   :  { %v212_v34 = vadd.f32 %v251_v23, %v201_v29  ;;  %v214_v35 = vadd.f32 %v251_v23, %v203_v30 }
 0x136   :  { %v221_v36 = vadd.f32 %v217_v25, %v213_v31  ;;  %v223_v37 = vadd.f32 %v219_v28, %v215_v32 }
 0x137   :  { %v220_v38 = vadd.f32 %v216_v24, %v212_v34  ;;  %v222_v39 = vadd.f32 %v218_v33, %v214_v35 }
 0x138   :  { %225 = vst.msk [vmem:[#allocation11 + $0x8] sm:$0xff] %vm75_vm0, %v221_v36  ;;  %227 = vst.msk [vmem:[#allocation11 + $0x18] sm:$0xff] %vm75_vm0, %v223_v37 }
 0x139   :  { %224 = vst.msk [vmem:[#allocation11] sm:$0xff] %vm75_vm0, %v220_v38  ;;  %226 = vst.msk [vmem:[#allocation11 + $0x10] sm:$0xff] %vm75_vm0, %v222_v39 }
 0x13a   :  { %393 = shalt.err (!%p390_p8)
}
 0x13b   :  { %s394_s16 = scalar_lea.hbm %s551_s4, 512 }
 0x13c   :  { %p395_p9 = scmp.ne.s32.totalorder %s551_s4, %s394_s16  ;;  %p398_p10 = scmp.lt.u32.totalorder %s394_s16, %s551_s4 }
 0x13e   :  { %p400_p11 = pnand %p398_p10, %p395_p9 }
 0x140   :  { %403 = shalt.err (!%p400_p11)
}
 0x141   :  { %239 = dma.vmem_to_hbm [thread:$0]  %s234_s1, 512, %s551_s4, [#allocation5], %s414_s27, %s414_s27, %s415_s28  }
 0x142   :  { %410 = dma.done.wait [#allocation5], 512  }
 0x143   :  { %411 = vsyncadd [#allocation5], 4294966784 }
 0x144   :  { %243 = vsyncpa [#allocation4], 1 }
 0x145   :  { %244 = vsyncpa [#allocation7], 1 }
 0x146   :  { %245 = vsyncpa [#allocation10], 1 }
 0x147   :  { %246 = vsyncpa [#allocation5], 1 }

// kernel: clip_caption_forward.19
= control target key start
LH: loop header
LB: loop body
LE: loop exit
PB: predicated region body
PF: predicated region fallthrough
CT: control target
= control target key end

     0   :  { %10 = vsyncpa [#allocation3], 0  ;;  %s666_s0 = inlined_call_operand.hbm [shape: f32[32,32], index: 0, kind: input, shape index: {}]   ;;  %s667_s1 = inlined_call_operand.hbm [shape: f32[1,32], index: 1, kind: input, shape index: {}]   ;;  %s668_s2 = inlined_call_operand.hbm [shape: f32[1,32], index: 2, kind: input, shape index: {}]   ;;  %s669_s3 = inlined_call_operand.hbm [shape: f32[32,128], index: 3, kind: input, shape index: {}]   ;;  %s670_s4 = inlined_call_operand.hbm [shape: f32[1,128], index: 4, kind: input, shape index: {}]   ;;  %s671_s5 = inlined_call_operand.hbm [shape: f32[32,128], index: 5, kind: output, shape index: {}]  }
   0x1   :  { %11 = vsyncpa [#allocation6], 0 }
   0x2   :  { %12 = vsyncpa [#allocation9], 0 }
   0x3   :  { %13 = vsyncpa [#allocation4], 0  ;;  %s535_s18 = smov [#allocation5]   ;;  %s395_s22 = scalar_lea.hbm %s667_s1, 16 }
   0x4   :  { %s32_s19 = sshll.u32 %s535_s18, 4  ;;  %p396_p0 = scmp.ne.s32.totalorder %s667_s1, %s395_s22  ;;  %s33_s19 = int_to_ptr.vmem [resolvable:$true] %s32_s19 }
   0x5   :  { %p399_p1 = scmp.lt.u32.totalorder %s395_s22, %s667_s1 }
   0x7   :  { %p401_p2 = pnand %p399_p1, %p396_p0 }
   0x9   :  { %404 = shalt.err (!%p401_p2)
}
   0xa   :  { %s405_s27 = scalar_lea.vmem %s33_s19, 16  ;;  %s409_s28 = scalar_lea.vmem %s33_s19, 32 }
   0xb   :  { %p406_p3 = scmp.ne.s32.totalorder %s33_s19, %s405_s27  ;;  %p410_p4 = scmp.lt.s32.totalorder %s33_s19, %s33_s19 }
   0xc   :  { %p411_p5 = scmp.lt.s32.totalorder %s409_s28, %s405_s27 }
   0xe   :  { %p412_p6 = por %p411_p5, %p410_p4 }
  0x10   :  { %p413_p7 = pnand %p412_p6, %p406_p3 }
  0x12   :  { %416 = shalt.err (!%p413_p7)
}
  0x13   :  { %35 = dma.hbm_to_vmem [thread:$0]  %s667_s1, 16, %s33_s19, [#allocation6]  }
  0x14   :  { %s536_s6 = smov [#allocation8]   ;;  %s537_s8 = smov [#allocation2]  }
  0x15   :  { %s51_s7 = sshll.u32 %s536_s6, 4  ;;  %s19_s9 = sshll.u32 %s537_s8, 4  ;;  %s52_s7 = int_to_ptr.vmem [resolvable:$true] %s51_s7  ;;  %s20_s9 = int_to_ptr.vmem [resolvable:$true] %s19_s9 }
  0x16   :  { %s417_s12 = scalar_lea.hbm %s669_s3, 512 }
  0x17   :  { %p418_p8 = scmp.ne.s32.totalorder %s669_s3, %s417_s12  ;;  %p421_p9 = scmp.lt.u32.totalorder %s417_s12, %s669_s3 }
  0x19   :  { %p423_p10 = pnand %p421_p9, %p418_p8 }
  0x1b   :  { %426 = shalt.err (!%p423_p10)
}
  0x1c   :  { %s427_s1 = scalar_lea.vmem %s52_s7, 512  ;;  %p432_p12 = scmp.lt.s32.totalorder %s52_s7, %s52_s7 }
  0x1d   :  { %p428_p11 = scmp.ne.s32.totalorder %s52_s7, %s427_s1  ;;  %p433_p13 = scmp.lt.s32.totalorder %s427_s1, %s427_s1 }
  0x1f   :  { %p434_p0 = por %p433_p13, %p432_p12 }
  0x21   :  { %p435_p1 = pnand %p434_p0, %p428_p11 }
  0x23   :  { %438 = shalt.err (!%p435_p1)
}
  0x24   :  { %s538_s17 = smov 128   ;;  %s539_s18 = smov 8  }
  0x25   :  { %57 = dma.hbm_to_vmem [thread:$0]  %s669_s3, 512, %s52_s7, [#allocation9], %s538_s17, %s538_s17, %s539_s18  }
  0x26   :  { %s439_s23 = scalar_lea.hbm %s666_s0, 512 }
  0x27   :  { %p440_p2 = scmp.ne.s32.totalorder %s666_s0, %s439_s23  ;;  %p443_p3 = scmp.lt.u32.totalorder %s439_s23, %s666_s0 }
  0x29   :  { %p445_p4 = pnand %p443_p3, %p440_p2 }
  0x2b   :  { %448 = shalt.err (!%p445_p4)
}
  0x2c   :  { %s449_s28 = scalar_lea.vmem %s20_s9, 512  ;;  %p454_p6 = scmp.lt.s32.totalorder %s20_s9, %s20_s9 }
  0x2d   :  { %p450_p5 = scmp.ne.s32.totalorder %s20_s9, %s449_s28  ;;  %p455_p7 = scmp.lt.s32.totalorder %s449_s28, %s449_s28 }
  0x2f   :  { %p456_p8 = por %p455_p7, %p454_p6 }
  0x31   :  { %p457_p9 = pnand %p456_p8, %p450_p5 }
  0x33   :  { %460 = shalt.err (!%p457_p9)
}
  0x34   :  { %25 = dma.hbm_to_vmem [thread:$0]  %s666_s0, 512, %s20_s9, [#allocation3], %s538_s17, %s538_s17, %s539_s18  }
  0x35   :  { %s540_s30 = smov [#allocation7]   ;;  %s541_s7 = smov [#allocation10]  }
  0x36   :  { %s42_s6 = sshll.u32 %s540_s30, 4  ;;  %s64_s8 = sshll.u32 %s541_s7, 4  ;;  %s43_s6 = int_to_ptr.vmem [resolvable:$true] %s42_s6  ;;  %s65_s8 = int_to_ptr.vmem [resolvable:$true] %s64_s8 }
  0x37   :  { %s461_s12 = scalar_lea.hbm %s668_s2, 16 }
  0x38   :  { %p462_p10 = scmp.ne.s32.totalorder %s668_s2, %s461_s12  ;;  %p465_p11 = scmp.lt.u32.totalorder %s461_s12, %s668_s2 }
  0x3a   :  { %p467_p12 = pnand %p465_p11, %p462_p10 }
  0x3c   :  { %470 = shalt.err (!%p467_p12)
}
  0x3d   :  { %s471_s0 = scalar_lea.vmem %s43_s6, 16  ;;  %s475_s9 = scalar_lea.vmem %s43_s6, 32 }
  0x3e   :  { %p472_p13 = scmp.ne.s32.totalorder %s43_s6, %s471_s0  ;;  %p476_p0 = scmp.lt.s32.totalorder %s43_s6, %s43_s6 }
  0x3f   :  { %p477_p1 = scmp.lt.s32.totalorder %s475_s9, %s471_s0 }
  0x41   :  { %p478_p2 = por %p477_p1, %p476_p0 }
  0x43   :  { %p479_p3 = pnand %p478_p2, %p472_p13 }
  0x45   :  { %482 = shalt.err (!%p479_p3)
}
  0x46   :  { %45 = dma.hbm_to_vmem [thread:$0]  %s668_s2, 16, %s43_s6, [#allocation6]  }
  0x47   :  { %s483_s22 = scalar_lea.hbm %s670_s4, 16 }
  0x48   :  { %p484_p4 = scmp.ne.s32.totalorder %s670_s4, %s483_s22  ;;  %p487_p5 = scmp.lt.u32.totalorder %s483_s22, %s670_s4 }
  0x4a   :  { %p489_p6 = pnand %p487_p5, %p484_p4 }
  0x4c   :  { %492 = shalt.err (!%p489_p6)
}
  0x4d   :  { %s493_s27 = scalar_lea.vmem %s65_s8, 16  ;;  %s497_s28 = scalar_lea.vmem %s65_s8, 32 }
  0x4e   :  { %p494_p7 = scmp.ne.s32.totalorder %s65_s8, %s493_s27  ;;  %p498_p8 = scmp.lt.s32.totalorder %s65_s8, %s65_s8 }
  0x4f   :  { %p499_p9 = scmp.lt.s32.totalorder %s497_s28, %s493_s27 }
  0x51   :  { %p500_p10 = por %p499_p9, %p498_p8 }
  0x53   :  { %p501_p11 = pnand %p500_p10, %p494_p7 }
  0x55   :  { %504 = shalt.err (!%p501_p11)
}
  0x56   :  { %67 = dma.hbm_to_vmem [thread:$0]  %s670_s4, 16, %s65_s8, [#allocation9]  }
  0x57   :  { %527 = dma.done.wait [#allocation3], 512  }
  0x58   :  { %528 = vsyncadd [#allocation3], 4294966784 }
  0x59   :  { %529 = dma.done.wait [#allocation6], 32  }
  0x5a   :  { %530 = vsyncadd [#allocation6], 4294967264 }
  0x5b   :  { %531 = dma.done.wait [#allocation9], 528  }
  0x5c   :  { %532 = vsyncadd [#allocation9], 4294966768  ;;  %vm87_vm0 = vcmask 261120   ;;  %v83_v0 = vld [vmem:[#allocation2] sm:$0xff]  ;;  %v84_v1 = vld [vmem:[#allocation2 + $0x8] sm:$0xff]  ;;  %s542_s4 = smov [#allocation11]  }
  0x5d   :  { %v85_v2 = vld [vmem:[#allocation2 + $0x10] sm:$0xff]  ;;  %v88_v3 = vsel %vm87_vm0, %v83_v0, 0.0  ;;  %v91_v4 = vsel %vm87_vm0, %v84_v1, 0.0  ;;  %v86_v5 = vld [vmem:[#allocation2 + $0x18] sm:$0xff]  ;;  %v163_v28 = vld [vmem:[#allocation8] sm:$0xff]  ;;  %s316_s29 = sshll.u32 %s542_s4, 4  ;;  %s317_s29 = int_to_ptr.vmem [resolvable:$true] %s316_s29 }
  0x5e   :  { %89 = vadd.xlane.f32.xlu0 %v88_v3  ;;  %92 = vadd.xlane.f32.xlu1 %v91_v4  ;;  %v94_v6 = vsel %vm87_vm0, %v85_v2, 0.0  ;;  %v97_v7 = vsel %vm87_vm0, %v86_v5, 0.0  ;;  %v164_v29 = vld [vmem:[#allocation8 + $0x8] sm:$0xff]  ;;  %v165_v30 = vld [vmem:[#allocation8 + $0x10] sm:$0xff]  ;;  %v166_v32 = vld [vmem:[#allocation8 + $0x18] sm:$0xff]  ;;  %s505_s30 = scalar_lea.vmem %s317_s29, 512  ;;  %p510_p13 = scmp.lt.s32.totalorder %s317_s29, %s317_s29 }
  0x5f   :  { %v359_v31 = vpack.c.bf16 %v164_v29, %v163_v28  ;;  %v363_v33 = vpack.c.bf16 %v166_v32, %v165_v30  ;;  %v330_v47 = vld [vmem:[#allocation5] ss:$0 sm:$0xff]  ;;  %v331_v49 = vld [vmem:[#allocation7] ss:$0 sm:$0xff]  ;;  %p506_p12 = scmp.ne.s32.totalorder %s317_s29, %s505_s30  ;;  %p511_p0 = scmp.lt.s32.totalorder %s505_s30, %s505_s30 }
  0x61   :  { %360 = vmatprep.subr.bf16.mxu0 %v359_v31  ;;  %367 = vmatprep.subr.bf16.mxu1 %v359_v31  ;;  %p512_p1 = por %p511_p0, %p510_p13 }
  0x62   :  { %95 = vadd.xlane.f32.xlu0 %v94_v6  ;;  %98 = vadd.xlane.f32.xlu1 %v97_v7 }
  0x63   :  { %362 = vmatpush3.bf16.msra.mxu0 %v359_v31  ;;  %369 = vmatpush3.bf16.msra.mxu1 %v359_v31  ;;  %p513_p2 = pnand %p512_p1, %p506_p12 }
  0x64   :  { %364 = vmatprep.subr.bf16.mxu0 %v363_v33  ;;  %368 = vmatprep.subr.bf16.mxu1 %v363_v33 }
  0x67   :  { %366 = vmatpush3.bf16.msra.mxu0 %v363_v33  ;;  %370 = vmatpush3.bf16.msra.mxu1 %v363_v33 }
  0xeb   :  { %v90_v8 = vpop.xlane.xlu0 %89  ;;  %v93_v9 = vpop.xlane.xlu1 %92 }
  0xec   :  { %v101_v10 = vmul.f32 0.03125, %v90_v8  ;;  %v102_v11 = vmul.f32 0.03125, %v93_v9 }
  0xee   :  { %v105_v12 = vsub.f32 %v83_v0, %v101_v10  ;;  %v106_v13 = vsub.f32 %v84_v1, %v102_v11  ;;  %v332_v0 = vld [vmem:[#allocation10] ss:$0 sm:$0xff] }
  0xef   :  { %v96_v14 = vpop.xlane.xlu0 %95  ;;  %v99_v15 = vpop.xlane.xlu1 %98 }
  0xf0   :  { %v103_v16 = vmul.f32 0.03125, %v96_v14  ;;  %v104_v17 = vmul.f32 0.03125, %v99_v15  ;;  %v109_v18 = vmul.f32 %v105_v12, %v105_v12  ;;  %v110_v19 = vmul.f32 %v106_v13, %v106_v13 }
  0xf2   :  { %v107_v20 = vsub.f32 %v85_v2, %v103_v16  ;;  %v108_v21 = vsub.f32 %v86_v5, %v104_v17  ;;  %v113_v22 = vsel %vm87_vm0, %v109_v18, 0.0  ;;  %v116_v23 = vsel %vm87_vm0, %v110_v19, 0.0 }
  0xf3   :  { %114 = vadd.xlane.f32.xlu0 %v113_v22 }
  0xf4   :  { %v111_v24 = vmul.f32 %v107_v20, %v107_v20  ;;  %v112_v25 = vmul.f32 %v108_v21, %v108_v21 }
  0xf6   :  { %v119_v26 = vsel %vm87_vm0, %v111_v24, 0.0  ;;  %v122_v27 = vsel %vm87_vm0, %v112_v25, 0.0 }
  0xf7   :  { %117 = vadd.xlane.f32.xlu0 %v116_v23  ;;  %120 = vadd.xlane.f32.xlu1 %v119_v26 }
  0xfb   :  { %123 = vadd.xlane.f32.xlu1 %v122_v27 }
 0x180   :  { %v115_v34 = vpop.xlane.xlu0 %114 }
 0x181   :  { %v125_v35 = vmul.f32 0.03125, %v115_v34 }
 0x183   :  { %v129_v36 = vadd.f32 1e-05, %v125_v35 }
 0x184   :  { %v121_v37 = vpop.xlane.xlu1 %120  ;;  %v118_v38 = vpop.xlane.xlu0 %117 }
 0x185   :  { %379 = vrsqrt.f32 %v129_v36  ;;  %v127_v39 = vmul.f32 0.03125, %v121_v37  ;;  %v126_v40 = vmul.f32 0.03125, %v118_v38 }
 0x187   :  { %v131_v41 = vadd.f32 1e-05, %v127_v39  ;;  %v130_v42 = vadd.f32 1e-05, %v126_v40 }
 0x188   :  { %v124_v43 = vpop.xlane.xlu1 %123 }
 0x189   :  { %381 = vrsqrt.f32 %v131_v41  ;;  %v128_v44 = vmul.f32 0.03125, %v124_v43 }
 0x18a   :  { %383 = vrsqrt.f32 %v130_v42 }
 0x18b   :  { %v132_v45 = vadd.f32 1e-05, %v128_v44 }
 0x18d   :  { %385 = vrsqrt.f32 %v132_v45 }
 0x18f   :  { %v380_v46 = vpop.eup %379 }
 0x190   :  { %v137_v48 = vmul.f32 %v380_v46, %v105_v12 }
 0x192   :  { %v148_v50 = vmul.f32 %v330_v47, %v137_v48 }
 0x193   :  { %v382_v51 = vpop.eup %381 }
 0x194   :  { %v384_v52 = vpop.eup %383  ;;  %v159_v53 = vadd.f32 %v331_v49, %v148_v50  ;;  %v139_v54 = vmul.f32 %v382_v51, %v107_v20 }
 0x195   :  { %v138_v55 = vmul.f32 %v384_v52, %v106_v13 }
 0x196   :  { %353 = vmatprep.mubr.msk.f32.mxu0 %vm87_vm0, %v159_v53  ;;  %v150_v56 = vmul.f32 %v330_v47, %v139_v54 }
 0x197   :  { %v386_v57 = vpop.eup %385  ;;  %v149_v58 = vmul.f32 %v330_v47, %v138_v55 }
 0x198   :  { %v161_v59 = vadd.f32 %v331_v49, %v150_v56  ;;  %v140_v60 = vmul.f32 %v386_v57, %v108_v21 }
 0x199   :  { %v160_v61 = vadd.f32 %v331_v49, %v149_v58 }
 0x19a   :  { %356 = vmatprep.mubr.msk.f32.mxu1 %vm87_vm0, %v161_v59  ;;  %v151_v62 = vmul.f32 %v330_v47, %v140_v60 }
 0x19b   :  { %354 = vmatmul.mubr.msk.f32.vlgmr.msra.gmra.mrb[0].mxu0 %vm87_vm0, %v160_v61 }
 0x19c   :  { %v162_v63 = vadd.f32 %v331_v49, %v151_v62 }
 0x19e   :  { %357 = vmatmul.mubr.msk.f32.vlgmr.msra.gmra.mrb[0].mxu1 %vm87_vm0, %v162_v63 }
 0x26e   :  { %v355_v1 = vpop.f32.mrb[0].mxu0 }
 0x26f   :  { %v258_v2 = vadd.f32 %v355_v1, %v332_v0  ;;  %v252_v3 = vpop.f32.mrb[1].mxu0 }
 0x270   :  { %v253_v4 = vadd.f32 %v332_v0, %v252_v3 }
 0x271   :  { %v276_v5 = vmul.f32 0.044715, %v258_v2  ;;  %v358_v6 = vpop.f32.mrb[0].mxu1  ;;  %v272_v31 = vmul.f32 0.5, %v258_v2 }
 0x272   :  { %v275_v7 = vmul.f32 0.044715, %v253_v4  ;;  %v268_v8 = vadd.f32 %v358_v6, %v332_v0  ;;  %v262_v9 = vpop.f32.mrb[1].mxu1  ;;  %v271_v33 = vmul.f32 0.5, %v253_v4 }
 0x273   :  { %v280_v10 = vmul.f32 %v276_v5, %v258_v2  ;;  %v263_v11 = vadd.f32 %v332_v0, %v262_v9 }
 0x274   :  { %v279_v12 = vmul.f32 %v275_v7, %v253_v4  ;;  %v278_v13 = vmul.f32 0.044715, %v268_v8  ;;  %v274_v38 = vmul.f32 0.5, %v268_v8 }
 0x275   :  { %v284_v14 = vmul.f32 %v280_v10, %v258_v2  ;;  %v277_v15 = vmul.f32 0.044715, %v263_v11  ;;  %v273_v41 = vmul.f32 0.5, %v263_v11 }
 0x276   :  { %v283_v16 = vmul.f32 %v279_v12, %v253_v4  ;;  %v282_v17 = vmul.f32 %v278_v13, %v268_v8 }
 0x277   :  { %v288_v18 = vadd.f32 %v284_v14, %v258_v2  ;;  %v281_v19 = vmul.f32 %v277_v15, %v263_v11 }
 0x278   :  { %v287_v20 = vadd.f32 %v283_v16, %v253_v4  ;;  %v286_v21 = vmul.f32 %v282_v17, %v268_v8 }
 0x279   :  { %v292_v22 = vmul.f32 0.7978846, %v288_v18  ;;  %v285_v23 = vmul.f32 %v281_v19, %v263_v11 }
 0x27a   :  { %v291_v24 = vmul.f32 0.7978846, %v287_v20  ;;  %v290_v25 = vadd.f32 %v286_v21, %v268_v8 }
 0x27b   :  { %387 = vtanh.f32 %v292_v22  ;;  %v289_v26 = vadd.f32 %v285_v23, %v263_v11 }
 0x27c   :  { %389 = vtanh.f32 %v291_v24  ;;  %v294_v27 = vmul.f32 0.7978846, %v290_v25 }
 0x27d   :  { %v293_v28 = vmul.f32 0.7978846, %v289_v26 }
 0x27e   :  { %391 = vtanh.f32 %v294_v27 }
 0x27f   :  { %393 = vtanh.f32 %v293_v28 }
 0x285   :  { %v388_v29 = vpop.eup %387 }
 0x286   :  { %v390_v30 = vpop.eup %389  ;;  %v300_v32 = vadd.f32 1.0, %v388_v29 }
 0x287   :  { %v299_v34 = vadd.f32 1.0, %v390_v30 }
 0x288   :  { %v392_v35 = vpop.eup %391  ;;  %v304_v36 = vmul.f32 %v300_v32, %v272_v31 }
 0x289   :  { %v394_v37 = vpop.eup %393  ;;  %v302_v39 = vadd.f32 1.0, %v392_v35  ;;  %v303_v40 = vmul.f32 %v299_v34, %v271_v33 }
 0x28a   :  { %v301_v42 = vadd.f32 1.0, %v394_v37  ;;  %308 = vst [vmem:[#allocation11 + $0x8] sm:$0xff] %v304_v36 }
 0x28b   :  { %v306_v43 = vmul.f32 %v302_v39, %v274_v38  ;;  %307 = vst [vmem:[#allocation11] sm:$0xff] %v303_v40 }
 0x28c   :  { %v305_v44 = vmul.f32 %v301_v42, %v273_v41 }
 0x28d   :  { %310 = vst [vmem:[#allocation11 + $0x18] sm:$0xff] %v306_v43 }
 0x28e   :  { %309 = vst [vmem:[#allocation11 + $0x10] sm:$0xff] %v305_v44 }
 0x28f   :  { %516 = shalt.err (!%p513_p2)
}
 0x290   :  { %s517_s8 = scalar_lea.hbm %s671_s5, 512 }
 0x291   :  { %p518_p3 = scmp.ne.s32.totalorder %s671_s5, %s517_s8  ;;  %p521_p4 = scmp.lt.u32.totalorder %s517_s8, %s671_s5 }
 0x293   :  { %p523_p5 = pnand %p521_p4, %p518_p3 }
 0x295   :  { %526 = shalt.err (!%p523_p5)
}
 0x296   :  { %322 = dma.vmem_to_hbm [thread:$0]  %s317_s29, 512, %s671_s5, [#allocation4], %s538_s17, %s538_s17, %s539_s18  }
 0x297   :  { %533 = dma.done.wait [#allocation4], 512  }
 0x298   :  { %534 = vsyncadd [#allocation4], 4294966784 }
 0x299   :  { %326 = vsyncpa [#allocation3], 1 }
 0x29a   :  { %327 = vsyncpa [#allocation6], 1 }
 0x29b   :  { %328 = vsyncpa [#allocation9], 1 }
 0x29c   :  { %329 = vsyncpa [#allocation4], 1 }

// kernel: clip_caption_forward.26
= control target key start
LH: loop header
LB: loop body
LE: loop exit
PB: predicated region body
PF: predicated region fallthrough
CT: control target
= control target key end

     0   :  { %8 = vsyncpa [#allocation3], 0  ;;  %s363_s0 = inlined_call_operand.hbm [shape: f32[32,32], index: 0, kind: input, shape index: {}]   ;;  %s364_s1 = inlined_call_operand.hbm [shape: f32[1,32], index: 1, kind: input, shape index: {}]   ;;  %s365_s2 = inlined_call_operand.hbm [shape: f32[1,32], index: 2, kind: input, shape index: {}]   ;;  %s366_s3 = inlined_call_operand.hbm [shape: f32[32,32], index: 3, kind: output, shape index: {}]  }
   0x1   :  { %9 = vsyncpa [#allocation6], 0 }
   0x2   :  { %10 = vsyncpa [#allocation4], 0  ;;  %s264_s12 = smov [#allocation5]   ;;  %s265_s14 = smov [#allocation2]  }
   0x3   :  { %s29_s13 = sshll.u32 %s264_s12, 4  ;;  %s16_s15 = sshll.u32 %s265_s14, 4  ;;  %s30_s13 = int_to_ptr.vmem [resolvable:$true] %s29_s13  ;;  %s290_s15 = int_to_ptr.vmem [resolvable:$true] %s16_s15 }
   0x4   :  { %s170_s18 = scalar_lea.hbm %s364_s1, 16 }
   0x5   :  { %p171_p0 = scmp.ne.s32.totalorder %s364_s1, %s170_s18  ;;  %p174_p1 = scmp.lt.u32.totalorder %s170_s18, %s364_s1 }
   0x7   :  { %p176_p2 = pnand %p174_p1, %p171_p0 }
   0x9   :  { %179 = shalt.err (!%p176_p2)
}
   0xa   :  { %s180_s23 = scalar_lea.vmem %s30_s13, 16  ;;  %s184_s24 = scalar_lea.vmem %s30_s13, 32 }
   0xb   :  { %p181_p3 = scmp.ne.s32.totalorder %s30_s13, %s180_s23  ;;  %p185_p4 = scmp.lt.s32.totalorder %s30_s13, %s30_s13 }
   0xc   :  { %p186_p5 = scmp.lt.s32.totalorder %s184_s24, %s180_s23 }
   0xe   :  { %p187_p6 = por %p186_p5, %p185_p4 }
  0x10   :  { %p188_p7 = pnand %p187_p6, %p181_p3 }
  0x12   :  { %191 = shalt.err (!%p188_p7)
}
  0x13   :  { %32 = dma.hbm_to_vmem [thread:$0]  %s364_s1, 16, %s30_s13, [#allocation6]  }
  0x14   :  { %s192_s29 = scalar_lea.hbm %s363_s0, 512 }
  0x15   :  { %p193_p8 = scmp.ne.s32.totalorder %s363_s0, %s192_s29  ;;  %p196_p9 = scmp.lt.u32.totalorder %s192_s29, %s363_s0 }
  0x17   :  { %p198_p10 = pnand %p196_p9, %p193_p8 }
  0x19   :  { %201 = shalt.err (!%p198_p10)
}
  0x1a   :  { %s202_s7 = scalar_lea.vmem %s290_s15, 512  ;;  %p207_p12 = scmp.lt.s32.totalorder %s290_s15, %s290_s15 }
  0x1b   :  { %p203_p11 = scmp.ne.s32.totalorder %s290_s15, %s202_s7  ;;  %p208_p13 = scmp.lt.s32.totalorder %s202_s7, %s202_s7 }
  0x1d   :  { %p209_p0 = por %p208_p13, %p207_p12 }
  0x1f   :  { %p210_p1 = pnand %p209_p0, %p203_p11 }
  0x21   :  { %213 = shalt.err (!%p210_p1)
}
  0x22   :  { %s266_s1 = smov 128   ;;  %s267_s8 = smov 8  }
  0x23   :  { %22 = dma.hbm_to_vmem [thread:$0]  %s363_s0, 512, %s290_s15, [#allocation3], %s266_s1, %s266_s1, %s267_s8  }
  0x24   :  { %s268_s11 = smov [#allocation7]   ;;  %s214_s16 = scalar_lea.hbm %s365_s2, 16 }
  0x25   :  { %s39_s12 = sshll.u32 %s268_s11, 4  ;;  %p215_p2 = scmp.ne.s32.totalorder %s365_s2, %s214_s16  ;;  %s40_s12 = int_to_ptr.vmem [resolvable:$true] %s39_s12 }
  0x26   :  { %p218_p3 = scmp.lt.u32.totalorder %s214_s16, %s365_s2 }
  0x28   :  { %p220_p4 = pnand %p218_p3, %p215_p2 }
  0x2a   :  { %223 = shalt.err (!%p220_p4)
}
  0x2b   :  { %s224_s21 = scalar_lea.vmem %s40_s12, 16  ;;  %s228_s0 = scalar_lea.vmem %s40_s12, 32 }
  0x2c   :  { %p225_p5 = scmp.ne.s32.totalorder %s40_s12, %s224_s21  ;;  %p229_p6 = scmp.lt.s32.totalorder %s40_s12, %s40_s12 }
  0x2d   :  { %p230_p7 = scmp.lt.s32.totalorder %s228_s0, %s224_s21 }
  0x2f   :  { %p231_p8 = por %p230_p7, %p229_p6 }
  0x31   :  { %p232_p9 = pnand %p231_p8, %p225_p5 }
  0x33   :  { %235 = shalt.err (!%p232_p9)
}
  0x34   :  { %42 = dma.hbm_to_vmem [thread:$0]  %s365_s2, 16, %s40_s12, [#allocation6]  }
  0x35   :  { %258 = dma.done.wait [#allocation3], 512  }
  0x36   :  { %259 = vsyncadd [#allocation3], 4294966784 }
  0x37   :  { %260 = dma.done.wait [#allocation6], 32  }
  0x38   :  { %261 = vsyncadd [#allocation6], 4294967264  ;;  %vm56_vm0 = vcmask 261120   ;;  %v52_v0 = vld [vmem:[#allocation2] sm:$0xff]  ;;  %v54_v1 = vld [vmem:[#allocation2 + $0x10] sm:$0xff]  ;;  %s269_s2 = smov [#allocation8]  }
  0x39   :  { %v53_v2 = vld [vmem:[#allocation2 + $0x8] sm:$0xff]  ;;  %v57_v3 = vsel %vm56_vm0, %v52_v0, 0.0  ;;  %v63_v4 = vsel %vm56_vm0, %v54_v1, 0.0  ;;  %v55_v5 = vld [vmem:[#allocation2 + $0x18] sm:$0xff]  ;;  %v154_v41 = vld [vmem:[#allocation5] ss:$0 sm:$0xff] }
  0x3a   :  { %58 = vadd.xlane.f32.xlu0 %v57_v3  ;;  %64 = vadd.xlane.f32.xlu1 %v63_v4  ;;  %v60_v6 = vsel %vm56_vm0, %v53_v2, 0.0  ;;  %v66_v7 = vsel %vm56_vm0, %v55_v5, 0.0  ;;  %v155_v43 = vld [vmem:[#allocation7] ss:$0 sm:$0xff]  ;;  %s141_s23 = sshll.u32 %s269_s2, 4  ;;  %s142_s23 = int_to_ptr.vmem [resolvable:$true] %s141_s23 }
  0x3b   :  { %s236_s24 = scalar_lea.vmem %s142_s23, 512  ;;  %p241_p11 = scmp.lt.s32.totalorder %s142_s23, %s142_s23 }
  0x3c   :  { %p237_p10 = scmp.ne.s32.totalorder %s142_s23, %s236_s24  ;;  %p242_p12 = scmp.lt.s32.totalorder %s236_s24, %s236_s24 }
  0x3e   :  { %61 = vadd.xlane.f32.xlu0 %v60_v6  ;;  %67 = vadd.xlane.f32.xlu1 %v66_v7  ;;  %p243_p13 = por %p242_p12, %p241_p11 }
  0x40   :  { %p244_p0 = pnand %p243_p13, %p237_p10 }
  0xc7   :  { %v59_v8 = vpop.xlane.xlu0 %58  ;;  %v65_v9 = vpop.xlane.xlu1 %64 }
  0xc8   :  { %v70_v10 = vmul.f32 0.03125, %v59_v8  ;;  %v72_v11 = vmul.f32 0.03125, %v65_v9 }
  0xca   :  { %v74_v12 = vsub.f32 %v52_v0, %v70_v10  ;;  %v76_v13 = vsub.f32 %v54_v1, %v72_v11 }
  0xcb   :  { %v62_v14 = vpop.xlane.xlu0 %61  ;;  %v68_v15 = vpop.xlane.xlu1 %67 }
  0xcc   :  { %v71_v16 = vmul.f32 0.03125, %v62_v14  ;;  %v73_v17 = vmul.f32 0.03125, %v68_v15  ;;  %v78_v18 = vmul.f32 %v74_v12, %v74_v12  ;;  %v80_v19 = vmul.f32 %v76_v13, %v76_v13 }
  0xce   :  { %v75_v20 = vsub.f32 %v53_v2, %v71_v16  ;;  %v77_v21 = vsub.f32 %v55_v5, %v73_v17  ;;  %v82_v22 = vsel %vm56_vm0, %v78_v18, 0.0  ;;  %v88_v23 = vsel %vm56_vm0, %v80_v19, 0.0 }
  0xcf   :  { %83 = vadd.xlane.f32.xlu0 %v82_v22 }
  0xd0   :  { %v79_v24 = vmul.f32 %v75_v20, %v75_v20  ;;  %v81_v25 = vmul.f32 %v77_v21, %v77_v21 }
  0xd2   :  { %v85_v26 = vsel %vm56_vm0, %v79_v24, 0.0  ;;  %v91_v27 = vsel %vm56_vm0, %v81_v25, 0.0 }
  0xd3   :  { %89 = vadd.xlane.f32.xlu0 %v88_v23  ;;  %86 = vadd.xlane.f32.xlu1 %v85_v26 }
  0xd7   :  { %92 = vadd.xlane.f32.xlu1 %v91_v27 }
 0x15c   :  { %v84_v28 = vpop.xlane.xlu0 %83 }
 0x15d   :  { %v94_v29 = vmul.f32 0.03125, %v84_v28 }
 0x15f   :  { %v98_v30 = vadd.f32 1e-05, %v94_v29 }
 0x160   :  { %v87_v31 = vpop.xlane.xlu1 %86  ;;  %v90_v32 = vpop.xlane.xlu0 %89 }
 0x161   :  { %162 = vrsqrt.f32 %v98_v30  ;;  %v95_v33 = vmul.f32 0.03125, %v87_v31  ;;  %v96_v34 = vmul.f32 0.03125, %v90_v32 }
 0x163   :  { %v99_v35 = vadd.f32 1e-05, %v95_v33  ;;  %v100_v36 = vadd.f32 1e-05, %v96_v34 }
 0x164   :  { %v93_v37 = vpop.xlane.xlu1 %92 }
 0x165   :  { %164 = vrsqrt.f32 %v99_v35  ;;  %v97_v38 = vmul.f32 0.03125, %v93_v37 }
 0x166   :  { %166 = vrsqrt.f32 %v100_v36 }
 0x167   :  { %v101_v39 = vadd.f32 1e-05, %v97_v38 }
 0x169   :  { %168 = vrsqrt.f32 %v101_v39 }
 0x16b   :  { %v163_v40 = vpop.eup %162 }
 0x16c   :  { %v106_v42 = vmul.f32 %v163_v40, %v74_v12 }
 0x16e   :  { %v117_v44 = vmul.f32 %v154_v41, %v106_v42 }
 0x16f   :  { %v165_v45 = vpop.eup %164 }
 0x170   :  { %v167_v46 = vpop.eup %166  ;;  %v107_v47 = vmul.f32 %v165_v45, %v75_v20  ;;  %v128_v48 = vadd.f32 %v155_v43, %v117_v44 }
 0x171   :  { %v108_v49 = vmul.f32 %v167_v46, %v76_v13 }
 0x172   :  { %v118_v50 = vmul.f32 %v154_v41, %v107_v47  ;;  %132 = vst.msk [vmem:[#allocation8] sm:$0xff] %vm56_vm0, %v128_v48 }
 0x173   :  { %v169_v51 = vpop.eup %168  ;;  %v119_v52 = vmul.f32 %v154_v41, %v108_v49 }
 0x174   :  { %v109_v53 = vmul.f32 %v169_v51, %v77_v21  ;;  %v129_v54 = vadd.f32 %v155_v43, %v118_v50 }
 0x175   :  { %v130_v55 = vadd.f32 %v155_v43, %v119_v52 }
 0x176   :  { %v120_v56 = vmul.f32 %v154_v41, %v109_v53  ;;  %133 = vst.msk [vmem:[#allocation8 + $0x8] sm:$0xff] %vm56_vm0, %v129_v54 }
 0x177   :  { %134 = vst.msk [vmem:[#allocation8 + $0x10] sm:$0xff] %vm56_vm0, %v130_v55 }
 0x178   :  { %v131_v57 = vadd.f32 %v155_v43, %v120_v56 }
 0x17a   :  { %135 = vst.msk [vmem:[#allocation8 + $0x18] sm:$0xff] %vm56_vm0, %v131_v57 }
 0x17b   :  { %247 = shalt.err (!%p244_p0)
}
 0x17c   :  { %s248_s27 = scalar_lea.hbm %s366_s3, 512 }
 0x17d   :  { %p249_p1 = scmp.ne.s32.totalorder %s366_s3, %s248_s27  ;;  %p252_p2 = scmp.lt.u32.totalorder %s248_s27, %s366_s3 }
 0x17f   :  { %p254_p3 = pnand %p252_p2, %p249_p1 }
 0x181   :  { %257 = shalt.err (!%p254_p3)
}
 0x182   :  { %147 = dma.vmem_to_hbm [thread:$0]  %s142_s23, 512, %s366_s3, [#allocation4], %s266_s1, %s266_s1, %s267_s8  }
 0x183   :  { %262 = dma.done.wait [#allocation4], 512  }
 0x184   :  { %263 = vsyncadd [#allocation4], 4294966784 }
 0x185   :  { %151 = vsyncpa [#allocation3], 1 }
 0x186   :  { %152 = vsyncpa [#allocation6], 1 }
 0x187   :  { %153 = vsyncpa [#allocation4], 1 }

// kernel: clip_caption_forward.20
= control target key start
LH: loop header
LB: loop body
LE: loop exit
PB: predicated region body
PF: predicated region fallthrough
CT: control target
= control target key end

     0   :  { %9 = vsyncpa [#allocation4], 0  ;;  %s611_s0 = inlined_call_operand.hbm [shape: f32[32,128], index: 0, kind: input, shape index: {}]   ;;  %s612_s1 = inlined_call_operand.hbm [shape: f32[128,32], index: 1, kind: input, shape index: {}]   ;;  %s613_s2 = inlined_call_operand.hbm [shape: f32[1,32], index: 2, kind: input, shape index: {}]   ;;  %s614_s3 = inlined_call_operand.hbm [shape: f32[32,32], index: 3, kind: input, shape index: {}]   ;;  %s615_s4 = inlined_call_operand.hbm [shape: f32[32,32], index: 4, kind: output, shape index: {}]  }
   0x1   :  { %10 = vsyncpa [#allocation7], 0 }
   0x2   :  { %11 = vsyncpa [#allocation10], 0 }
   0x3   :  { %12 = vsyncpa [#allocation5], 0  ;;  %s480_s15 = smov [#allocation6]   ;;  %s481_s17 = smov [#allocation3]  }
   0x4   :  { %s30_s16 = sshll.u32 %s480_s15, 4  ;;  %s18_s18 = sshll.u32 %s481_s17, 4  ;;  %s31_s16 = int_to_ptr.vmem [resolvable:$true] %s30_s16  ;;  %s513_s18 = int_to_ptr.vmem [resolvable:$true] %s18_s18 }
   0x5   :  { %s362_s21 = scalar_lea.hbm %s612_s1, 2048 }
   0x6   :  { %p363_p0 = scmp.ne.s32.totalorder %s612_s1, %s362_s21  ;;  %p366_p1 = scmp.lt.u32.totalorder %s362_s21, %s612_s1 }
   0x8   :  { %p368_p2 = pnand %p366_p1, %p363_p0 }
   0xa   :  { %371 = shalt.err (!%p368_p2)
}
   0xb   :  { %s372_s26 = scalar_lea.vmem %s31_s16, 2048  ;;  %p377_p4 = scmp.lt.s32.totalorder %s31_s16, %s31_s16 }
   0xc   :  { %p373_p3 = scmp.ne.s32.totalorder %s31_s16, %s372_s26  ;;  %p378_p5 = scmp.lt.s32.totalorder %s372_s26, %s372_s26 }
   0xe   :  { %p379_p6 = por %p378_p5, %p377_p4 }
  0x10   :  { %p380_p7 = pnand %p379_p6, %p373_p3 }
  0x12   :  { %383 = shalt.err (!%p380_p7)
}
  0x13   :  { %s482_s27 = smov 128   ;;  %s483_s28 = smov 8  }
  0x14   :  { %36 = dma.hbm_to_vmem [thread:$0]  %s612_s1, 2048, %s31_s16, [#allocation7], %s482_s27, %s482_s27, %s483_s28  }
  0x15   :  { %s384_s7 = scalar_lea.hbm %s611_s0, 512 }
  0x16   :  { %p385_p8 = scmp.ne.s32.totalorder %s611_s0, %s384_s7  ;;  %p388_p9 = scmp.lt.u32.totalorder %s384_s7, %s611_s0 }
  0x18   :  { %p390_p10 = pnand %p388_p9, %p385_p8 }
  0x1a   :  { %393 = shalt.err (!%p390_p10)
}
  0x1b   :  { %s394_s12 = scalar_lea.vmem %s513_s18, 512  ;;  %p399_p12 = scmp.lt.s32.totalorder %s513_s18, %s513_s18 }
  0x1c   :  { %p395_p11 = scmp.ne.s32.totalorder %s513_s18, %s394_s12  ;;  %p400_p13 = scmp.lt.s32.totalorder %s394_s12, %s394_s12 }
  0x1e   :  { %p401_p0 = por %p400_p13, %p399_p12 }
  0x20   :  { %p402_p1 = pnand %p401_p0, %p395_p11 }
  0x22   :  { %405 = shalt.err (!%p402_p1)
}
  0x23   :  { %24 = dma.hbm_to_vmem [thread:$0]  %s611_s0, 512, %s513_s18, [#allocation4], %s482_s27, %s482_s27, %s483_s28  }
  0x24   :  { %s484_s14 = smov [#allocation8]   ;;  %s485_s16 = smov [#allocation9]  }
  0x25   :  { %s43_s15 = sshll.u32 %s484_s14, 4  ;;  %s52_s17 = sshll.u32 %s485_s16, 4  ;;  %s44_s15 = int_to_ptr.vmem [resolvable:$true] %s43_s15  ;;  %s550_s17 = int_to_ptr.vmem [resolvable:$true] %s52_s17 }
  0x26   :  { %s406_s21 = scalar_lea.hbm %s613_s2, 16 }
  0x27   :  { %p407_p2 = scmp.ne.s32.totalorder %s613_s2, %s406_s21  ;;  %p410_p3 = scmp.lt.u32.totalorder %s406_s21, %s613_s2 }
  0x29   :  { %p412_p4 = pnand %p410_p3, %p407_p2 }
  0x2b   :  { %415 = shalt.err (!%p412_p4)
}
  0x2c   :  { %s416_s0 = scalar_lea.vmem %s44_s15, 16  ;;  %s420_s18 = scalar_lea.vmem %s44_s15, 32 }
  0x2d   :  { %p417_p5 = scmp.ne.s32.totalorder %s44_s15, %s416_s0  ;;  %p421_p6 = scmp.lt.s32.totalorder %s44_s15, %s44_s15 }
  0x2e   :  { %p422_p7 = scmp.lt.s32.totalorder %s420_s18, %s416_s0 }
  0x30   :  { %p423_p8 = por %p422_p7, %p421_p6 }
  0x32   :  { %p424_p9 = pnand %p423_p8, %p417_p5 }
  0x34   :  { %427 = shalt.err (!%p424_p9)
}
  0x35   :  { %46 = dma.hbm_to_vmem [thread:$0]  %s613_s2, 16, %s44_s15, [#allocation7]  }
  0x36   :  { %s428_s6 = scalar_lea.hbm %s614_s3, 512 }
  0x37   :  { %p429_p10 = scmp.ne.s32.totalorder %s614_s3, %s428_s6  ;;  %p432_p11 = scmp.lt.u32.totalorder %s428_s6, %s614_s3 }
  0x39   :  { %p434_p12 = pnand %p432_p11, %p429_p10 }
  0x3b   :  { %437 = shalt.err (!%p434_p12)
}
  0x3c   :  { %s438_s11 = scalar_lea.vmem %s550_s17, 512  ;;  %p443_p0 = scmp.lt.s32.totalorder %s550_s17, %s550_s17 }
  0x3d   :  { %p439_p13 = scmp.ne.s32.totalorder %s550_s17, %s438_s11  ;;  %p444_p1 = scmp.lt.s32.totalorder %s438_s11, %s438_s11 }
  0x3f   :  { %p445_p2 = por %p444_p1, %p443_p0 }
  0x41   :  { %p446_p3 = pnand %p445_p2, %p439_p13 }
  0x43   :  { %449 = shalt.err (!%p446_p3)
}
  0x44   :  { %58 = dma.hbm_to_vmem [thread:$0]  %s614_s3, 512, %s550_s17, [#allocation10], %s482_s27, %s482_s27, %s483_s28  }
  0x45   :  { %472 = dma.done.wait [#allocation4], 512  }
  0x46   :  { %473 = vsyncadd [#allocation4], 4294966784 }
  0x47   :  { %474 = dma.done.wait [#allocation7], 2064  }
  0x48   :  { %475 = vsyncadd [#allocation7], 4294965232 }
  0x49   :  { %476 = dma.done.wait [#allocation10], 512  }
  0x4a   :  { %477 = vsyncadd [#allocation10], 4294966784  ;;  %vm75_vm0 = vcmask 261120   ;;  %v486_v0 = vmov 0.0   ;;  %v88_v1 = vld [vmem:[#allocation6] sm:$0xff]  ;;  %v89_v2 = vld [vmem:[#allocation6 + $0x8] sm:$0xff] }
  0x4b   :  { %77 = vst.msk [vmem:[#allocation2 + $0x8] sm:$0xff] %vm75_vm0, %v486_v0  ;;  %76 = vst.msk [vmem:[#allocation2] sm:$0xff] %vm75_vm0, %v486_v0  ;;  %v90_v3 = vld [vmem:[#allocation6 + $0x10] sm:$0xff]  ;;  %v306_v4 = vpack.c.bf16 %v89_v2, %v88_v1  ;;  %v91_v5 = vld [vmem:[#allocation6 + $0x18] sm:$0xff]  ;;  %s487_s3 = smov [#allocation11]  }
  0x4c   :  { %78 = vst.msk [vmem:[#allocation2 + $0x10] sm:$0xff] %vm75_vm0, %v486_v0  ;;  %79 = vst.msk [vmem:[#allocation2 + $0x18] sm:$0xff] %vm75_vm0, %v486_v0  ;;  %v310_v6 = vpack.c.bf16 %v91_v5, %v90_v3  ;;  %v92_v7 = vld [vmem:[#allocation6 + $0x20] sm:$0xff]  ;;  %v93_v8 = vld [vmem:[#allocation6 + $0x28] sm:$0xff]  ;;  %s233_s1 = sshll.u32 %s487_s3, 4  ;;  %s234_s1 = int_to_ptr.vmem [resolvable:$true] %s233_s1 }
  0x4d   :  { %307 = vmatprep.subr.bf16.mxu0 %v306_v4  ;;  %338 = vmatprep.subr.bf16.mxu1 %v306_v4  ;;  %v314_v9 = vpack.c.bf16 %v93_v8, %v92_v7  ;;  %v84_v10 = vld [vmem:[#allocation3] sm:$0xff]  ;;  %v86_v11 = vld [vmem:[#allocation3 + $0x10] sm:$0xff]  ;;  %v95_v13 = vld [vmem:[#allocation6 + $0x38] sm:$0xff]  ;;  %s450_s13 = scalar_lea.vmem %s234_s1, 512  ;;  %p455_p5 = scmp.lt.s32.totalorder %s234_s1, %s234_s1 }
  0x4e   :  { %309 = vmatpush3.bf16.msra.mxu0 %v306_v4  ;;  %346 = vmatpush3.bf16.msra.mxu1 %v306_v4  ;;  %v94_v12 = vld [vmem:[#allocation6 + $0x30] sm:$0xff]  ;;  %v96_v15 = vld [vmem:[#allocation6 + $0x40] sm:$0xff]  ;;  %v97_v16 = vld [vmem:[#allocation6 + $0x48] sm:$0xff]  ;;  %p451_p4 = scmp.ne.s32.totalorder %s234_s1, %s450_s13  ;;  %p456_p6 = scmp.lt.s32.totalorder %s450_s13, %s450_s13 }
  0x4f   :  { %311 = vmatprep.subr.bf16.mxu0 %v310_v6  ;;  %339 = vmatprep.subr.bf16.mxu1 %v310_v6  ;;  %v318_v14 = vpack.c.bf16 %v95_v13, %v94_v12  ;;  %v322_v17 = vpack.c.bf16 %v97_v16, %v96_v15  ;;  %v98_v18 = vld [vmem:[#allocation6 + $0x50] sm:$0xff]  ;;  %v99_v19 = vld [vmem:[#allocation6 + $0x58] sm:$0xff]  ;;  %v100_v21 = vld [vmem:[#allocation6 + $0x60] sm:$0xff] }
  0x50   :  { %300 = vmatprep.mubr.f32.mxu0 %v84_v10  ;;  %303 = vmatprep.mubr.f32.mxu1 %v86_v11  ;;  %v326_v20 = vpack.c.bf16 %v99_v19, %v98_v18  ;;  %v101_v22 = vld [vmem:[#allocation6 + $0x68] sm:$0xff]  ;;  %v102_v24 = vld [vmem:[#allocation6 + $0x70] sm:$0xff]  ;;  %v103_v25 = vld [vmem:[#allocation6 + $0x78] sm:$0xff]  ;;  %p457_p7 = por %p456_p6, %p455_p5 }
  0x51   :  { %v330_v23 = vpack.c.bf16 %v101_v22, %v100_v21  ;;  %v334_v26 = vpack.c.bf16 %v103_v25, %v102_v24  ;;  %v85_v27 = vld [vmem:[#allocation3 + $0x8] sm:$0xff]  ;;  %v87_v28 = vld [vmem:[#allocation3 + $0x18] sm:$0xff]  ;;  %v247_v41 = vld [vmem:[#allocation8] ss:$0 sm:$0xff] }
  0x52   :  { %313 = vmatpush3.bf16.msra.mxu0 %v310_v6  ;;  %347 = vmatpush3.bf16.msra.mxu1 %v310_v6  ;;  %v81_v29 = vld [vmem:[#allocation2 + $0x8] sm:$0xff]  ;;  %v80_v31 = vld [vmem:[#allocation2] sm:$0xff]  ;;  %v218_v51 = vld [vmem:[#allocation9 + $0x10] sm:$0xff]  ;;  %p458_p8 = pnand %p457_p7, %p451_p4 }
  0x53   :  { %315 = vmatprep.subr.bf16.mxu0 %v314_v9  ;;  %340 = vmatprep.subr.bf16.mxu1 %v314_v9  ;;  %v83_v30 = vld [vmem:[#allocation2 + $0x18] sm:$0xff]  ;;  %v82_v32 = vld [vmem:[#allocation2 + $0x10] sm:$0xff]  ;;  %v216_v42 = vld [vmem:[#allocation9] sm:$0xff] }
  0x54   :  { %v217_v43 = vld [vmem:[#allocation9 + $0x8] sm:$0xff]  ;;  %v219_v46 = vld [vmem:[#allocation9 + $0x18] sm:$0xff] }
  0x56   :  { %317 = vmatpush3.bf16.msra.mxu0 %v314_v9  ;;  %348 = vmatpush3.bf16.msra.mxu1 %v314_v9 }
  0x57   :  { %319 = vmatprep.subr.bf16.mxu0 %v318_v14  ;;  %341 = vmatprep.subr.bf16.mxu1 %v318_v14 }
  0x5a   :  { %321 = vmatpush3.bf16.msra.mxu0 %v318_v14  ;;  %349 = vmatpush3.bf16.msra.mxu1 %v318_v14 }
  0x5b   :  { %323 = vmatprep.subr.bf16.mxu0 %v322_v17  ;;  %342 = vmatprep.subr.bf16.mxu1 %v322_v17 }
  0x5e   :  { %325 = vmatpush3.bf16.msra.mxu0 %v322_v17  ;;  %350 = vmatpush3.bf16.msra.mxu1 %v322_v17 }
  0x5f   :  { %327 = vmatprep.subr.bf16.mxu0 %v326_v20  ;;  %343 = vmatprep.subr.bf16.mxu1 %v326_v20 }
  0x62   :  { %329 = vmatpush3.bf16.msra.mxu0 %v326_v20  ;;  %351 = vmatpush3.bf16.msra.mxu1 %v326_v20 }
  0x63   :  { %331 = vmatprep.subr.bf16.mxu0 %v330_v23  ;;  %344 = vmatprep.subr.bf16.mxu1 %v330_v23 }
  0x66   :  { %333 = vmatpush3.bf16.msra.mxu0 %v330_v23  ;;  %352 = vmatpush3.bf16.msra.mxu1 %v330_v23 }
  0x67   :  { %335 = vmatprep.subr.bf16.mxu0 %v334_v26  ;;  %345 = vmatprep.subr.bf16.mxu1 %v334_v26 }
  0x6a   :  { %337 = vmatpush3.bf16.msra.mxu0 %v334_v26  ;;  %353 = vmatpush3.bf16.msra.mxu1 %v334_v26 }
  0x6d   :  { %301 = vmatmul.mubr.f32.vlgmr.msra.gmra.mrb[0].mxu0 %v85_v27  ;;  %304 = vmatmul.mubr.f32.vlgmr.msra.gmra.mrb[0].mxu1 %v87_v28 }
 0x140   :  { %v302_v33 = vpop.f32.mrb[0].mxu0  ;;  %v305_v34 = vpop.f32.mrb[0].mxu1 }
 0x141   :  { %v190_v35 = vadd.f32 %v302_v33, %v81_v29  ;;  %v192_v36 = vadd.f32 %v305_v34, %v83_v30  ;;  %v170_v37 = vpop.f32.mrb[1].mxu0  ;;  %v180_v38 = vpop.f32.mrb[1].mxu1 }
 0x142   :  { %v189_v39 = vadd.f32 %v170_v37, %v80_v31  ;;  %v191_v40 = vadd.f32 %v180_v38, %v82_v32 }
 0x143   :  { %195 = vst.msk [vmem:[#allocation2 + $0x8] sm:$0xff] %vm75_vm0, %v190_v35  ;;  %197 = vst.msk [vmem:[#allocation2 + $0x18] sm:$0xff] %vm75_vm0, %v192_v36 }
 0x144   :  { %194 = vst.msk [vmem:[#allocation2] sm:$0xff] %vm75_vm0, %v189_v39  ;;  %196 = vst.msk [vmem:[#allocation2 + $0x10] sm:$0xff] %vm75_vm0, %v191_v40 }
 0x14a   :  { %v202_v44 = vld [vmem:[#allocation2 + $0x8] sm:$0xff]  ;;  %v204_v45 = vld [vmem:[#allocation2 + $0x18] sm:$0xff] }
 0x14b   :  { %v201_v47 = vld [vmem:[#allocation2] sm:$0xff]  ;;  %v203_v48 = vld [vmem:[#allocation2 + $0x10] sm:$0xff]  ;;  %v213_v49 = vadd.f32 %v247_v41, %v202_v44  ;;  %v215_v50 = vadd.f32 %v247_v41, %v204_v45 }
 0x14c   :  { %v212_v52 = vadd.f32 %v247_v41, %v201_v47  ;;  %v214_v53 = vadd.f32 %v247_v41, %v203_v48 }
 0x14d   :  { %v221_v54 = vadd.f32 %v217_v43, %v213_v49  ;;  %v223_v55 = vadd.f32 %v219_v46, %v215_v50 }
 0x14e   :  { %v220_v56 = vadd.f32 %v216_v42, %v212_v52  ;;  %v222_v57 = vadd.f32 %v218_v51, %v214_v53 }
 0x14f   :  { %225 = vst.msk [vmem:[#allocation11 + $0x8] sm:$0xff] %vm75_vm0, %v221_v54  ;;  %227 = vst.msk [vmem:[#allocation11 + $0x18] sm:$0xff] %vm75_vm0, %v223_v55 }
 0x150   :  { %224 = vst.msk [vmem:[#allocation11] sm:$0xff] %vm75_vm0, %v220_v56  ;;  %226 = vst.msk [vmem:[#allocation11 + $0x10] sm:$0xff] %vm75_vm0, %v222_v57 }
 0x151   :  { %461 = shalt.err (!%p458_p8)
}
 0x152   :  { %s462_s16 = scalar_lea.hbm %s615_s4, 512 }
 0x153   :  { %p463_p9 = scmp.ne.s32.totalorder %s615_s4, %s462_s16  ;;  %p466_p10 = scmp.lt.u32.totalorder %s462_s16, %s615_s4 }
 0x155   :  { %p468_p11 = pnand %p466_p10, %p463_p9 }
 0x157   :  { %471 = shalt.err (!%p468_p11)
}
 0x158   :  { %239 = dma.vmem_to_hbm [thread:$0]  %s234_s1, 512, %s615_s4, [#allocation5], %s482_s27, %s482_s27, %s483_s28  }
 0x159   :  { %478 = dma.done.wait [#allocation5], 512  }
 0x15a   :  { %479 = vsyncadd [#allocation5], 4294966784 }
 0x15b   :  { %243 = vsyncpa [#allocation4], 1 }
 0x15c   :  { %244 = vsyncpa [#allocation7], 1 }
 0x15d   :  { %245 = vsyncpa [#allocation10], 1 }
 0x15e   :  { %246 = vsyncpa [#allocation5], 1 }

// kernel: clip_caption_forward.27
= control target key start
LH: loop header
LB: loop body
LE: loop exit
PB: predicated region body
PF: predicated region fallthrough
CT: control target
= control target key end

     0   :  { %7 = vsyncpa [#allocation4], 0  ;;  %s501_s0 = inlined_call_operand.hbm [shape: f32[32,32], index: 0, kind: input, shape index: {}]   ;;  %s502_s1 = inlined_call_operand.hbm [shape: f32[64,32], index: 1, kind: input, shape index: {}]   ;;  %s503_s2 = inlined_call_operand.hbm [shape: f32[32,64], index: 2, kind: output, shape index: {}]  }
   0x1   :  { %8 = vsyncpa [#allocation7], 0 }
   0x2   :  { %9 = vsyncpa [#allocation5], 0  ;;  %s381_s9 = smov [#allocation3]   ;;  %s309_s13 = scalar_lea.hbm %s501_s0, 512 }
   0x3   :  { %s15_s10 = sshll.u32 %s381_s9, 4  ;;  %p310_p0 = scmp.ne.s32.totalorder %s501_s0, %s309_s13  ;;  %s16_s10 = int_to_ptr.vmem [resolvable:$true] %s15_s10 }
   0x4   :  { %p313_p1 = scmp.lt.u32.totalorder %s309_s13, %s501_s0 }
   0x6   :  { %p315_p2 = pnand %p313_p1, %p310_p0 }
   0x8   :  { %318 = shalt.err (!%p315_p2)
}
   0x9   :  { %s319_s18 = scalar_lea.vmem %s16_s10, 512  ;;  %p324_p4 = scmp.lt.s32.totalorder %s16_s10, %s16_s10 }
   0xa   :  { %p320_p3 = scmp.ne.s32.totalorder %s16_s10, %s319_s18  ;;  %p325_p5 = scmp.lt.s32.totalorder %s319_s18, %s319_s18 }
   0xc   :  { %p326_p6 = por %p325_p5, %p324_p4 }
   0xe   :  { %p327_p7 = pnand %p326_p6, %p320_p3 }
  0x10   :  { %330 = shalt.err (!%p327_p7)
}
  0x11   :  { %s382_s19 = smov 128   ;;  %s383_s20 = smov 8  }
  0x12   :  { %21 = dma.hbm_to_vmem [thread:$0]  %s501_s0, 512, %s16_s10, [#allocation4], %s382_s19, %s382_s19, %s383_s20  }
  0x13   :  { %s384_s23 = smov [#allocation6]   ;;  %s331_s27 = scalar_lea.hbm %s502_s1, 1024 }
  0x14   :  { %s27_s24 = sshll.u32 %s384_s23, 4  ;;  %p332_p8 = scmp.ne.s32.totalorder %s502_s1, %s331_s27  ;;  %s28_s24 = int_to_ptr.vmem [resolvable:$true] %s27_s24 }
  0x15   :  { %p335_p9 = scmp.lt.u32.totalorder %s331_s27, %s502_s1 }
  0x17   :  { %p337_p10 = pnand %p335_p9, %p332_p8 }
  0x19   :  { %340 = shalt.err (!%p337_p10)
}
  0x1a   :  { %s341_s4 = scalar_lea.vmem %s28_s24, 1024  ;;  %p346_p12 = scmp.lt.s32.totalorder %s28_s24, %s28_s24 }
  0x1b   :  { %p342_p11 = scmp.ne.s32.totalorder %s28_s24, %s341_s4  ;;  %p347_p13 = scmp.lt.s32.totalorder %s341_s4, %s341_s4 }
  0x1d   :  { %p348_p0 = por %p347_p13, %p346_p12 }
  0x1f   :  { %p349_p1 = pnand %p348_p0, %p342_p11 }
  0x21   :  { %352 = shalt.err (!%p349_p1)
}
  0x22   :  { %33 = dma.hbm_to_vmem [thread:$0]  %s502_s1, 1024, %s28_s24, [#allocation7], %s382_s19, %s382_s19, %s383_s20  }
  0x23   :  { %375 = dma.done.wait [#allocation4], 512  }
  0x24   :  { %376 = vsyncadd [#allocation4], 4294966784 }
  0x25   :  { %377 = dma.done.wait [#allocation7], 1024  }
  0x26   :  { %378 = vsyncadd [#allocation7], 4294966272  ;;  %vm44_vm0 = vcmask 523264   ;;  %v385_v0 = vmov 0.0   ;;  %vm65_vm1 = vcmask 261120   ;;  %v57_v2 = vld [vmem:[#allocation6] sm:$0xff] }
  0x27   :  { %46 = vst.msk [vmem:[#allocation2 + $0x8] sm:$0xff] %vm44_vm0, %v385_v0  ;;  %45 = vst.msk [vmem:[#allocation2] sm:$0xff] %vm44_vm0, %v385_v0  ;;  %v58_v3 = vld [vmem:[#allocation6 + $0x8] sm:$0xff]  ;;  %v59_v4 = vld [vmem:[#allocation6 + $0x10] sm:$0xff]  ;;  %s386_s1 = smov [#allocation8]  }
  0x28   :  { %47 = vst.msk [vmem:[#allocation2 + $0x10] sm:$0xff] %vm44_vm0, %v385_v0  ;;  %48 = vst.msk [vmem:[#allocation2 + $0x18] sm:$0xff] %vm44_vm0, %v385_v0  ;;  %v271_v5 = vpack.c.bf16 %v58_v3, %v57_v2  ;;  %v60_v6 = vld [vmem:[#allocation6 + $0x18] sm:$0xff]  ;;  %v53_v8 = vld [vmem:[#allocation3] sm:$0xff]  ;;  %s212_s6 = sshll.u32 %s386_s1, 4  ;;  %s213_s6 = int_to_ptr.vmem [resolvable:$true] %s212_s6 }
  0x29   :  { %vm438_vm2 = vmpackc.low %vm65_vm1, %vm65_vm1  ;;  %v277_v7 = vpack.c.bf16 %v60_v6, %v59_v4  ;;  %v55_v9 = vld [vmem:[#allocation3 + $0x10] sm:$0xff]  ;;  %v61_v10 = vld [vmem:[#allocation6 + $0x20] sm:$0xff]  ;;  %265 = vmatprep.mubr.msk.f32.mxu0 %vm65_vm1, %v53_v8  ;;  %s353_s7 = scalar_lea.vmem %s213_s6, 512  ;;  %p358_p3 = scmp.lt.s32.totalorder %s213_s6, %s213_s6 }
  0x2a   :  { %273 = vmatprep.subr.msk.bf16.mxu0 %vm438_vm2, %v271_v5  ;;  %295 = vmatprep.subr.msk.bf16.mxu1 %vm438_vm2, %v271_v5  ;;  %v62_v11 = vld [vmem:[#allocation6 + $0x28] sm:$0xff]  ;;  %v63_v13 = vld [vmem:[#allocation6 + $0x30] sm:$0xff]  ;;  %v64_v14 = vld [vmem:[#allocation6 + $0x38] sm:$0xff]  ;;  %p354_p2 = scmp.ne.s32.totalorder %s213_s6, %s353_s7  ;;  %p359_p4 = scmp.lt.s32.totalorder %s353_s7, %s353_s7 }
  0x2b   :  { %276 = vmatpush3.bf16.xpose.msk.msra.mxu0 %vm438_vm2, %v271_v5  ;;  %299 = vmatpush3.bf16.xpose.msk.msra.mxu1 %vm438_vm2, %v271_v5  ;;  %v283_v12 = vpack.c.bf16 %v62_v11, %v61_v10  ;;  %v289_v15 = vpack.c.bf16 %v64_v14, %v63_v13  ;;  %v54_v16 = vld [vmem:[#allocation3 + $0x8] sm:$0xff]  ;;  %v56_v17 = vld [vmem:[#allocation3 + $0x18] sm:$0xff] }
  0x2c   :  { %279 = vmatprep.subr.msk.bf16.mxu0 %vm438_vm2, %v277_v7  ;;  %296 = vmatprep.subr.msk.bf16.mxu1 %vm438_vm2, %v277_v7  ;;  %p360_p5 = por %p359_p4, %p358_p3 }
  0x2d   :  { %268 = vmatprep.mubr.msk.f32.mxu1 %vm65_vm1, %v55_v9 }
  0x2e   :  { %v50_v18 = vld [vmem:[#allocation2 + $0x8] sm:$0xff]  ;;  %v49_v20 = vld [vmem:[#allocation2] sm:$0xff]  ;;  %p361_p6 = pnand %p360_p5, %p354_p2 }
  0x2f   :  { %v52_v19 = vld [vmem:[#allocation2 + $0x18] sm:$0xff]  ;;  %v51_v21 = vld [vmem:[#allocation2 + $0x10] sm:$0xff] }
  0x33   :  { %282 = vmatpush3.bf16.xpose.msk.msra.mxu0 %vm438_vm2, %v277_v7  ;;  %300 = vmatpush3.bf16.xpose.msk.msra.mxu1 %vm438_vm2, %v277_v7 }
  0x34   :  { %285 = vmatprep.subr.msk.bf16.mxu0 %vm438_vm2, %v283_v12  ;;  %297 = vmatprep.subr.msk.bf16.mxu1 %vm438_vm2, %v283_v12 }
  0x3b   :  { %288 = vmatpush3.bf16.xpose.msk.msra.mxu0 %vm438_vm2, %v283_v12  ;;  %301 = vmatpush3.bf16.xpose.msk.msra.mxu1 %vm438_vm2, %v283_v12 }
  0x3c   :  { %291 = vmatprep.subr.msk.bf16.mxu0 %vm438_vm2, %v289_v15  ;;  %298 = vmatprep.subr.msk.bf16.mxu1 %vm438_vm2, %v289_v15 }
  0x43   :  { %294 = vmatpush3.bf16.xpose.msk.msra.mxu0 %vm438_vm2, %v289_v15  ;;  %302 = vmatpush3.bf16.xpose.msk.msra.mxu1 %vm438_vm2, %v289_v15 }
  0x4a   :  { %266 = vmatmul.mubr.msk.f32.vlgmr.msra.gmra.mrb[0].mxu0 %vm65_vm1, %v54_v16  ;;  %269 = vmatmul.mubr.msk.f32.vlgmr.msra.gmra.mrb[0].mxu1 %vm65_vm1, %v56_v17 }
 0x11d   :  { %v267_v22 = vpop.f32.mrb[0].mxu0  ;;  %v270_v23 = vpop.f32.mrb[0].mxu1 }
 0x11e   :  { %v188_v24 = vadd.f32 %v267_v22, %v50_v18  ;;  %v190_v25 = vadd.f32 %v270_v23, %v52_v19  ;;  %v168_v26 = vpop.f32.mrb[1].mxu0  ;;  %v178_v27 = vpop.f32.mrb[1].mxu1 }
 0x11f   :  { %v187_v28 = vadd.f32 %v168_v26, %v49_v20  ;;  %v189_v29 = vadd.f32 %v178_v27, %v51_v21 }
 0x120   :  { %193 = vst.msk [vmem:[#allocation2 + $0x8] sm:$0xff] %vm44_vm0, %v188_v24  ;;  %195 = vst.msk [vmem:[#allocation2 + $0x18] sm:$0xff] %vm44_vm0, %v190_v25 }
 0x121   :  { %192 = vst.msk [vmem:[#allocation2] sm:$0xff] %vm44_vm0, %v187_v28  ;;  %194 = vst.msk [vmem:[#allocation2 + $0x10] sm:$0xff] %vm44_vm0, %v189_v29 }
 0x127   :  { %v200_v30 = vld [vmem:[#allocation2 + $0x8] sm:$0xff]  ;;  %v202_v31 = vld [vmem:[#allocation2 + $0x18] sm:$0xff] }
 0x128   :  { %v199_v32 = vld [vmem:[#allocation2] sm:$0xff]  ;;  %v201_v33 = vld [vmem:[#allocation2 + $0x10] sm:$0xff]  ;;  %204 = vst.msk [vmem:[#allocation8 + $0x8] sm:$0xff] %vm44_vm0, %v200_v30  ;;  %206 = vst.msk [vmem:[#allocation8 + $0x18] sm:$0xff] %vm44_vm0, %v202_v31 }
 0x129   :  { %203 = vst.msk [vmem:[#allocation8] sm:$0xff] %vm44_vm0, %v199_v32  ;;  %205 = vst.msk [vmem:[#allocation8 + $0x10] sm:$0xff] %vm44_vm0, %v201_v33 }
 0x12a   :  { %364 = shalt.err (!%p361_p6)
}
 0x12b   :  { %s365_s10 = scalar_lea.hbm %s503_s2, 512 }
 0x12c   :  { %p366_p7 = scmp.ne.s32.totalorder %s503_s2, %s365_s10  ;;  %p369_p8 = scmp.lt.u32.totalorder %s365_s10, %s503_s2 }
 0x12e   :  { %p371_p9 = pnand %p369_p8, %p366_p7 }
 0x130   :  { %374 = shalt.err (!%p371_p9)
}
 0x131   :  { %218 = dma.vmem_to_hbm [thread:$0]  %s213_s6, 512, %s503_s2, [#allocation5], %s382_s19, %s382_s19, %s383_s20  }
 0x132   :  { %379 = dma.done.wait [#allocation5], 512  }
 0x133   :  { %380 = vsyncadd [#allocation5], 4294966784 }
 0x134   :  { %222 = vsyncpa [#allocation4], 1 }
 0x135   :  { %223 = vsyncpa [#allocation7], 1 }
 0x136   :  { %224 = vsyncpa [#allocation5], 1 }

</bundles_post_ra>
